<compile_context>
chip_gen: v7x
topology: tpu7x:2x2x1
jax: 0.10.0
libtpu: 0.0.40
codegen_flags: <defaults>
</compile_context>

<pallas_src>
import functools

import jax
import jax.numpy as jnp
from jax import lax
from jax.experimental import pallas as pl
from jax.experimental.pallas import tpu as pltpu


def _round_up(x: int, m: int) -> int:
    return ((x + m - 1) // m) * m


def _choose_block_b(batch: int, max_block: int, max_waste_frac: float = 0.125) -> int:
    """Pick a batch tile (multiple of 8) that bounds padding waste."""
    b8 = _round_up(batch, 8)
    bb = min(_round_up(max_block, 8), b8)
    while bb > 8:
        waste = _round_up(batch, bb) - batch
        if waste <= max(8, int(max_waste_frac * batch)):
            break
        bb = max(8, _round_up(bb // 2, 8))
    return max(bb, 8)


def _resid_fused_kernel(x_ref, w_ref, p_ref, wf_ref, bf_ref, o_ref, *,
                        n_layers: int, eps: float, neg_slope: float, mxu_dtype):
    """One batch tile; all layers run in an in-kernel loop (weights fully resident).

    x_ref : (TB, D)        input batch tile
    w_ref : (L, D, D)      all residual weights (pre-transposed, constant index map)
    p_ref : (L, 3, D) f32  fused [bias; ln_gamma; ln_beta] per layer
    wf_ref: (D, OUT_P)     final weight (transposed, lane-padded)
    bf_ref: (1, OUT_P)     final bias (lane-padded)
    o_ref : (TB, OUT_P)    output tile
    """

    def layer_body(i, out):
        # Residual linear on the MXU (bf16 operands by default, f32 accumulation).
        res = jnp.dot(out.astype(mxu_dtype), w_ref[i],
                      preferred_element_type=jnp.float32)
        p = p_ref[i]                                   # (3, D) f32
        res = res + p[0:1]
        # LeakyReLU(0.01): max(x, slope*x) == where(x>=0, x, slope*x) for 0<slope<1.
        res = jnp.maximum(res, neg_slope * res)
        out = out + res
        # LayerNorm, centered two-pass variance, all in f32 on the VPU/XLU.
        mean = jnp.mean(out, axis=-1, keepdims=True)
        cent = out - mean
        var = jnp.mean(cent * cent, axis=-1, keepdims=True)
        out = cent * lax.rsqrt(var + eps)
        return out * p[1:2] + p[2:3]

    out = lax.fori_loop(0, n_layers, layer_body,
                        x_ref[...].astype(jnp.float32),
                        unroll=n_layers <= 8)

    proj = jnp.dot(out.astype(mxu_dtype), wf_ref[...],
                   preferred_element_type=jnp.float32) + bf_ref[...]
    o_ref[...] = proj.astype(o_ref.dtype)


def _resid_streaming_kernel(x_ref, w_ref, p_ref, wf_ref, bf_ref, o_ref, acc_ref, *,
                            eps: float, neg_slope: float, mxu_dtype):
    """Fallback: one (batch-tile, layer) grid step, weights streamed per layer.

    Grid = (num_batch_tiles, n_layers); layer axis is the inner ("arbitrary") axis,
    so activations stay resident in the f32 VMEM scratch `acc_ref`.
    """
    layer = pl.program_id(1)
    n_layers = pl.num_programs(1)

    @pl.when(layer == 0)
    def _():
        acc_ref[...] = x_ref[...].astype(jnp.float32)

    out = acc_ref[...]
    p = p_ref[0]                                       # (3, D) f32
    res = jnp.dot(out.astype(mxu_dtype), w_ref[0],
                  preferred_element_type=jnp.float32)
    res = res + p[0:1]
    res = jnp.maximum(res, neg_slope * res)
    out = out + res
    mean = jnp.mean(out, axis=-1, keepdims=True)
    cent = out - mean
    var = jnp.mean(cent * cent, axis=-1, keepdims=True)
    out = cent * lax.rsqrt(var + eps)
    out = out * p[1:2] + p[2:3]

    # Writeback is dead on the last layer step (scratch is re-initialised at layer 0
    # of the next batch tile): skip it to save a (TB, D) f32 VMEM store.
    @pl.when(layer < n_layers - 1)
    def _():
        acc_ref[...] = out

    @pl.when(layer == n_layers - 1)
    def _():
        proj = jnp.dot(out.astype(mxu_dtype), wf_ref[...],
                       preferred_element_type=jnp.float32) + bf_ref[...]
        o_ref[...] = proj.astype(o_ref.dtype)


def resid_linear_forward(x, w_resid, b_resid, ln_gamma, ln_beta, w_final, b_final, *,
                         block_b: int = 256, eps: float = 1e-5, neg_slope: float = 0.01,
                         mxu_dtype=jnp.bfloat16,
                         fused_vmem_budget_bytes: int = 40 * 1024 * 1024,
                         vmem_limit_bytes: int = 48 * 1024 * 1024):
    """Pallas forward.  x: (B, D); weights pre-transposed so the kernel does x @ W.

    w_resid: (L, D, D); b_resid/ln_gamma/ln_beta: (L, D); w_final: (D, OUT);
    b_final: (1, OUT).  Returns (B, OUT) in x.dtype.

    block_b tuning notes:
      * v7x : keep >= 2 batch tiles so both TensorCores get work (B=512 @ 256 -> 2).
      * v6e/v5e: one TC and 128 MiB VMEM, so a single larger tile (e.g. 512 or the
        whole padded batch) is fine and saves per-step fixed cost.
    """
    B, D = x.shape
    L = w_resid.shape[0]
    OUT = w_final.shape[1]

    # --- lane-dense final projection: pad OUT up to a multiple of 128 ---
    out_p = _round_up(max(OUT, 128), 128)
    if out_p != OUT:
        w_final = jnp.pad(w_final, ((0, 0), (0, out_p - OUT)))
        b_final = jnp.pad(b_final, ((0, 0), (0, out_p - OUT)))

    # --- adaptive batch tiling: large MXU-friendly tiles, bounded padding waste ---
    block_b = _choose_block_b(B, block_b)
    b_pad = _round_up(B, block_b)
    if b_pad != B:
        x = jnp.pad(x, ((0, b_pad - B), (0, 0)))

    # --- bf16 MXU operands; element-wise params fused into one array and kept f32 ---
    w_resid = w_resid.astype(mxu_dtype)
    w_final = w_final.astype(mxu_dtype)
    params = jnp.stack([b_resid, ln_gamma, ln_beta], axis=1).astype(jnp.float32)  # (L,3,D)
    b_final = b_final.astype(jnp.float32)

    w_bytes = jnp.dtype(mxu_dtype).itemsize
    x_bytes = x.dtype.itemsize
    # Rough fused-path VMEM (2 pipeline buffers per operand), compared against a
    # conservative budget that also fits v7x's 64 MiB VMEM.
    fused_bytes = 2 * (block_b * D * x_bytes            # input tile
                       + L * D * D * w_bytes            # all residual weights
                       + L * 3 * D * 4                  # fused per-layer params
                       + D * out_p * w_bytes            # final weight
                       + out_p * 4                      # final bias
                       + block_b * out_p * x_bytes)     # output tile
    use_fused = fused_bytes <= fused_vmem_budget_bytes

    num_tiles = b_pad // block_b

    if use_fused:
        kernel = functools.partial(_resid_fused_kernel, n_layers=L, eps=eps,
                                   neg_slope=neg_slope, mxu_dtype=mxu_dtype)
        grid_spec = pltpu.PrefetchScalarGridSpec(
            num_scalar_prefetch=0,
            grid=(num_tiles,),
            in_specs=[
                pl.BlockSpec((block_b, D), lambda i: (i, 0)),     # x tile
                pl.BlockSpec((L, D, D),    lambda i: (0, 0, 0)),  # all residual weights
                pl.BlockSpec((L, 3, D),    lambda i: (0, 0, 0)),  # bias/gamma/beta
                pl.BlockSpec((D, out_p),   lambda i: (0, 0)),     # final weight
                pl.BlockSpec((1, out_p),   lambda i: (0, 0)),     # final bias
            ],
            out_specs=pl.BlockSpec((block_b, out_p), lambda i: (i, 0)),
        )
        dim_sem = ("parallel",)
    else:
        # Fallback: stream one (D, D) weight per grid step; activations persist in a
        # VMEM scratch across the inner ("arbitrary") layer axis.
        # TODO(synk): for D large enough that even one double-buffered (D, D) bf16
        # block exceeds the v7x scoped-VMEM budget, add a K/N tiling grid axis with a
        # partial-sum f32 accumulator for the residual matmul.
        kernel = functools.partial(_resid_streaming_kernel, eps=eps,
                                   neg_slope=neg_slope, mxu_dtype=mxu_dtype)
        grid_spec = pltpu.PrefetchScalarGridSpec(
            num_scalar_prefetch=0,
            grid=(num_tiles, L),
            in_specs=[
                pl.BlockSpec((block_b, D), lambda i, k: (i, 0)),     # x tile
                pl.BlockSpec((1, D, D),    lambda i, k: (k, 0, 0)),  # layer-k weight
                pl.BlockSpec((1, 3, D),    lambda i, k: (k, 0, 0)),  # layer-k params
                pl.BlockSpec((D, out_p),   lambda i, k: (0, 0)),     # final weight
                pl.BlockSpec((1, out_p),   lambda i, k: (0, 0)),     # final bias
            ],
            out_specs=pl.BlockSpec((block_b, out_p), lambda i, k: (i, 0)),
            scratch_shapes=[pltpu.VMEM((block_b, D), jnp.float32)],
        )
        dim_sem = ("parallel", "arbitrary")

    out = pl.pallas_call(
        kernel,
        out_shape=jax.ShapeDtypeStruct((b_pad, out_p), x.dtype),
        grid_spec=grid_spec,
        compiler_params=pltpu.CompilerParams(
            dimension_semantics=dim_sem,
            vmem_limit_bytes=vmem_limit_bytes),
    )(x, w_resid, params, w_final, b_final)

    return out[:B, :OUT]


def init_params(key, in_dim, out_dim, n_resid_layers):
    """Deterministic parameter init matching ResidLinear.__init__ shapes/init."""
    k1, k2, k3 = jax.random.split(key, 3)
    # residual linears: weight ~ U(-0.01, 0.01), bias = 0   (init_parameters)
    w_resid = jax.random.uniform(k1, (n_resid_layers, in_dim, in_dim),
                                 jnp.float32, -0.01, 0.01)
    b_resid = jnp.zeros((n_resid_layers, in_dim), jnp.float32)
    # LayerNorm default init: gamma = 1, beta = 0
    ln_gamma = jnp.ones((n_resid_layers, in_dim), jnp.float32)
    ln_beta = jnp.zeros((n_resid_layers, in_dim), jnp.float32)
    # final linear: PyTorch default U(-1/sqrt(in_dim), 1/sqrt(in_dim))
    bound = 1.0 / jnp.sqrt(jnp.float32(in_dim))
    w_final = jax.random.uniform(k2, (in_dim, out_dim), jnp.float32, -bound, bound)
    b_final = jax.random.uniform(k3, (1, out_dim), jnp.float32, -bound, bound)
    return w_resid, b_resid, ln_gamma, ln_beta, w_final, b_final


def reference_forward(x, w_resid, b_resid, ln_gamma, ln_beta, w_final, b_final,
                      eps=1e-5, neg_slope=0.01):
    """Pure-JAX reference of the same math (for verification)."""
    out = x.astype(jnp.float32)
    L = w_resid.shape[0]
    for i in range(L):
        res = out @ w_resid[i] + b_resid[i]
        res = jnp.where(res >= 0, res, neg_slope * res)
        out = out + res
        mean = jnp.mean(out, axis=-1, keepdims=True)
        var = jnp.mean((out - mean) ** 2, axis=-1, keepdims=True)
        out = (out - mean) * lax.rsqrt(var + eps)
        out = out * ln_gamma[i] + ln_beta[i]
    return (out @ w_final + b_final).astype(x.dtype)


if __name__ == "__main__":
    # x of shape (batch, in_dim) as the module's forward implies.
    B, IN_DIM, OUT_DIM, N_LAYERS = 512, 128, 2, 3

    key = jax.random.PRNGKey(0)
    kx, kp = jax.random.split(key)
    x = jax.random.normal(kx, (B, IN_DIM), jnp.float32)
    params = init_params(kp, IN_DIM, OUT_DIM, N_LAYERS)

    ref = reference_forward(x, *params)

    # Fused (layers-in-kernel) path, f32 MXU: tight check of the kernel math.
    out_f32 = jax.block_until_ready(
        resid_linear_forward(x, *params, mxu_dtype=jnp.float32))
    assert out_f32.shape == (B, OUT_DIM)
    assert jnp.allclose(out_f32, ref, atol=2e-4, rtol=2e-4), "fused f32 mismatch"

    # Fused path, default bf16 MXU operands (f32 accumulation / LayerNorm).
    out_bf16 = jax.block_until_ready(resid_linear_forward(x, *params))
    assert out_bf16.shape == (B, OUT_DIM)
    assert jnp.allclose(out_bf16, ref, atol=5e-2, rtol=5e-2), "fused bf16 mismatch"

    # Streaming fallback path (forced via zero fused-VMEM budget), f32 MXU: tight check.
    out_stream = jax.block_until_ready(
        resid_linear_forward(x, *params, mxu_dtype=jnp.float32,
                             fused_vmem_budget_bytes=0))
    assert out_stream.shape == (B, OUT_DIM)
    assert jnp.allclose(out_stream, ref, atol=2e-4, rtol=2e-4), "streaming mismatch"

    # Ragged batch exercises the adaptive tile / padding path.
    B2 = 300
    x2 = jax.random.normal(kx, (B2, IN_DIM), jnp.float32)
    ref2 = reference_forward(x2, *params)
    out2 = jax.block_until_ready(resid_linear_forward(x2, *params))
    assert out2.shape == (B2, OUT_DIM)
    assert jnp.allclose(out2, ref2, atol=5e-2, rtol=5e-2), "ragged-batch mismatch"

    print("KERNEL_OK")
</pallas_src>

<mosaic_0001>
module attributes {stable_mosaic.version = 11 : i64} {
  func.func @_resid_fused_kernel(%arg0: i32, %arg1: memref<256x128xf32, #tpu.memory_space<vmem>>, %arg2: memref<3x128x128xf32, #tpu.memory_space<vmem>>, %arg3: memref<3x3x128xf32, #tpu.memory_space<vmem>>, %arg4: memref<128x128xf32, #tpu.memory_space<vmem>>, %arg5: memref<1x128xf32, #tpu.memory_space<vmem>>, %arg6: memref<256x128xf32, #tpu.memory_space<vmem>>) attributes {dimension_semantics = [#tpu.dimension_semantics<parallel>], iteration_bounds = array<i64: 2>, scalar_prefetch = 0 : i64, scratch_operands = 0 : i64, tpu.core_type = #tpu.core_type<tc>, window_params = [{transform_indices = @transform_0, window_bounds = array<i64: 256, 128>}, {pipeline_mode = #tpu.pipeline_mode<synchronous>, transform_indices = @transform_1, window_bounds = array<i64: 3, 128, 128>}, {pipeline_mode = #tpu.pipeline_mode<synchronous>, transform_indices = @transform_2, window_bounds = array<i64: 3, 3, 128>}, {pipeline_mode = #tpu.pipeline_mode<synchronous>, transform_indices = @transform_3, window_bounds = array<i64: 128, 128>}, {pipeline_mode = #tpu.pipeline_mode<synchronous>, transform_indices = @transform_4, window_bounds = array<i64: 1, 128>}, {transform_indices = @transform_5, window_bounds = array<i64: 256, 128>}]} {
    %c0 = arith.constant 0 : index
    %c0_0 = arith.constant 0 : index
    %0 = vector.load %arg1[%c0, %c0_0] : memref<256x128xf32, #tpu.memory_space<vmem>>, vector<256x128xf32>
    %c0_i32 = arith.constant 0 : i32
    %1 = arith.index_cast %c0_i32 : i32 to index
    %c0_1 = arith.constant 0 : index
    %c0_2 = arith.constant 0 : index
    %2 = vector.load %arg2[%1, %c0_1, %c0_2] : memref<3x128x128xf32, #tpu.memory_space<vmem>>, vector<1x128x128xf32>
    %3 = vector.shape_cast %2 : vector<1x128x128xf32> to vector<128x128xf32>
    %cst = arith.constant dense<0.000000e+00> : vector<256x128xf32>
    %4 = tpu.matmul %0, %3, %cst {dimension_numbers = #tpu.dot_dimension_numbers<[1], [0], [0], [1], [0, 0, 1, 1], [], []>} : vector<256x128xf32>, vector<128x128xf32>, vector<256x128xf32> -> vector<256x128xf32>
    %5 = arith.index_cast %c0_i32 : i32 to index
    %c0_3 = arith.constant 0 : index
    %c0_4 = arith.constant 0 : index
    %6 = vector.load %arg3[%5, %c0_3, %c0_4] : memref<3x3x128xf32, #tpu.memory_space<vmem>>, vector<1x3x128xf32>
    %7 = vector.shape_cast %6 : vector<1x3x128xf32> to vector<3x128xf32>
    %8 = vector.extract_strided_slice %7 {offsets = [0, 0], sizes = [1, 128], strides = [1, 1]} : vector<3x128xf32> to vector<1x128xf32>
    %9 = vector.broadcast %8 : vector<1x128xf32> to vector<256x128xf32>
    %10 = arith.addf %4, %9 : vector<256x128xf32>
    %cst_5 = arith.constant 0.00999999977 : f32
    %11 = vector.broadcast %cst_5 : f32 to vector<256x128xf32>
    %12 = arith.mulf %11, %10 : vector<256x128xf32>
    %13 = arith.maximumf %10, %12 : vector<256x128xf32>
    %14 = arith.addf %0, %13 : vector<256x128xf32>
    %cst_6 = arith.constant dense<0.000000e+00> : vector<256xf32>
    %15 = vector.multi_reduction <add>, %14, %cst_6 [1] : vector<256x128xf32> to vector<256xf32>
    %16 = vector.shape_cast %15 : vector<256xf32> to vector<256x1xf32>
    %cst_7 = arith.constant 1.280000e+02 : f32
    %17 = vector.broadcast %cst_7 : f32 to vector<256x1xf32>
    %18 = arith.divf %16, %17 : vector<256x1xf32>
    %19 = vector.broadcast %18 : vector<256x1xf32> to vector<256x128xf32>
    %20 = arith.subf %14, %19 : vector<256x128xf32>
    %21 = arith.mulf %20, %20 : vector<256x128xf32>
    %cst_8 = arith.constant dense<0.000000e+00> : vector<256xf32>
    %22 = vector.multi_reduction <add>, %21, %cst_8 [1] : vector<256x128xf32> to vector<256xf32>
    %23 = vector.shape_cast %22 : vector<256xf32> to vector<256x1xf32>
    %cst_9 = arith.constant 1.280000e+02 : f32
    %24 = vector.broadcast %cst_9 : f32 to vector<256x1xf32>
    %25 = arith.divf %23, %24 : vector<256x1xf32>
    %cst_10 = arith.constant 9.99999974E-6 : f32
    %26 = vector.broadcast %cst_10 : f32 to vector<256x1xf32>
    %27 = arith.addf %25, %26 : vector<256x1xf32>
    %28 = math.rsqrt %27 : vector<256x1xf32>
    %29 = vector.broadcast %28 : vector<256x1xf32> to vector<256x128xf32>
    %30 = arith.mulf %20, %29 : vector<256x128xf32>
    %31 = vector.extract_strided_slice %7 {offsets = [1, 0], sizes = [1, 128], strides = [1, 1]} : vector<3x128xf32> to vector<1x128xf32>
    %32 = vector.broadcast %31 : vector<1x128xf32> to vector<256x128xf32>
    %33 = arith.mulf %30, %32 : vector<256x128xf32>
    %34 = vector.extract_strided_slice %7 {offsets = [2, 0], sizes = [1, 128], strides = [1, 1]} : vector<3x128xf32> to vector<1x128xf32>
    %35 = vector.broadcast %34 : vector<1x128xf32> to vector<256x128xf32>
    %36 = arith.addf %33, %35 : vector<256x128xf32>
    %c1_i32 = arith.constant 1 : i32
    %37 = arith.index_cast %c1_i32 : i32 to index
    %c0_11 = arith.constant 0 : index
    %c0_12 = arith.constant 0 : index
    %38 = vector.load %arg2[%37, %c0_11, %c0_12] : memref<3x128x128xf32, #tpu.memory_space<vmem>>, vector<1x128x128xf32>
    %39 = vector.shape_cast %38 : vector<1x128x128xf32> to vector<128x128xf32>
    %cst_13 = arith.constant dense<0.000000e+00> : vector<256x128xf32>
    %40 = tpu.matmul %36, %39, %cst_13 {dimension_numbers = #tpu.dot_dimension_numbers<[1], [0], [0], [1], [0, 0, 1, 1], [], []>} : vector<256x128xf32>, vector<128x128xf32>, vector<256x128xf32> -> vector<256x128xf32>
    %41 = arith.index_cast %c1_i32 : i32 to index
    %c0_14 = arith.constant 0 : index
    %c0_15 = arith.constant 0 : index
    %42 = vector.load %arg3[%41, %c0_14, %c0_15] : memref<3x3x128xf32, #tpu.memory_space<vmem>>, vector<1x3x128xf32>
    %43 = vector.shape_cast %42 : vector<1x3x128xf32> to vector<3x128xf32>
    %44 = vector.extract_strided_slice %43 {offsets = [0, 0], sizes = [1, 128], strides = [1, 1]} : vector<3x128xf32> to vector<1x128xf32>
    %45 = vector.broadcast %44 : vector<1x128xf32> to vector<256x128xf32>
    %46 = arith.addf %40, %45 : vector<256x128xf32>
    %cst_16 = arith.constant 0.00999999977 : f32
    %47 = vector.broadcast %cst_16 : f32 to vector<256x128xf32>
    %48 = arith.mulf %47, %46 : vector<256x128xf32>
    %49 = arith.maximumf %46, %48 : vector<256x128xf32>
    %50 = arith.addf %36, %49 : vector<256x128xf32>
    %cst_17 = arith.constant dense<0.000000e+00> : vector<256xf32>
    %51 = vector.multi_reduction <add>, %50, %cst_17 [1] : vector<256x128xf32> to vector<256xf32>
    %52 = vector.shape_cast %51 : vector<256xf32> to vector<256x1xf32>
    %cst_18 = arith.constant 1.280000e+02 : f32
    %53 = vector.broadcast %cst_18 : f32 to vector<256x1xf32>
    %54 = arith.divf %52, %53 : vector<256x1xf32>
    %55 = vector.broadcast %54 : vector<256x1xf32> to vector<256x128xf32>
    %56 = arith.subf %50, %55 : vector<256x128xf32>
    %57 = arith.mulf %56, %56 : vector<256x128xf32>
    %cst_19 = arith.constant dense<0.000000e+00> : vector<256xf32>
    %58 = vector.multi_reduction <add>, %57, %cst_19 [1] : vector<256x128xf32> to vector<256xf32>
    %59 = vector.shape_cast %58 : vector<256xf32> to vector<256x1xf32>
    %cst_20 = arith.constant 1.280000e+02 : f32
    %60 = vector.broadcast %cst_20 : f32 to vector<256x1xf32>
    %61 = arith.divf %59, %60 : vector<256x1xf32>
    %cst_21 = arith.constant 9.99999974E-6 : f32
    %62 = vector.broadcast %cst_21 : f32 to vector<256x1xf32>
    %63 = arith.addf %61, %62 : vector<256x1xf32>
    %64 = math.rsqrt %63 : vector<256x1xf32>
    %65 = vector.broadcast %64 : vector<256x1xf32> to vector<256x128xf32>
    %66 = arith.mulf %56, %65 : vector<256x128xf32>
    %67 = vector.extract_strided_slice %43 {offsets = [1, 0], sizes = [1, 128], strides = [1, 1]} : vector<3x128xf32> to vector<1x128xf32>
    %68 = vector.broadcast %67 : vector<1x128xf32> to vector<256x128xf32>
    %69 = arith.mulf %66, %68 : vector<256x128xf32>
    %70 = vector.extract_strided_slice %43 {offsets = [2, 0], sizes = [1, 128], strides = [1, 1]} : vector<3x128xf32> to vector<1x128xf32>
    %71 = vector.broadcast %70 : vector<1x128xf32> to vector<256x128xf32>
    %72 = arith.addf %69, %71 : vector<256x128xf32>
    %c2_i32 = arith.constant 2 : i32
    %73 = arith.index_cast %c2_i32 : i32 to index
    %c0_22 = arith.constant 0 : index
    %c0_23 = arith.constant 0 : index
    %74 = vector.load %arg2[%73, %c0_22, %c0_23] : memref<3x128x128xf32, #tpu.memory_space<vmem>>, vector<1x128x128xf32>
    %75 = vector.shape_cast %74 : vector<1x128x128xf32> to vector<128x128xf32>
    %cst_24 = arith.constant dense<0.000000e+00> : vector<256x128xf32>
    %76 = tpu.matmul %72, %75, %cst_24 {dimension_numbers = #tpu.dot_dimension_numbers<[1], [0], [0], [1], [0, 0, 1, 1], [], []>} : vector<256x128xf32>, vector<128x128xf32>, vector<256x128xf32> -> vector<256x128xf32>
    %77 = arith.index_cast %c2_i32 : i32 to index
    %c0_25 = arith.constant 0 : index
    %c0_26 = arith.constant 0 : index
    %78 = vector.load %arg3[%77, %c0_25, %c0_26] : memref<3x3x128xf32, #tpu.memory_space<vmem>>, vector<1x3x128xf32>
    %79 = vector.shape_cast %78 : vector<1x3x128xf32> to vector<3x128xf32>
    %80 = vector.extract_strided_slice %79 {offsets = [0, 0], sizes = [1, 128], strides = [1, 1]} : vector<3x128xf32> to vector<1x128xf32>
    %81 = vector.broadcast %80 : vector<1x128xf32> to vector<256x128xf32>
    %82 = arith.addf %76, %81 : vector<256x128xf32>
    %cst_27 = arith.constant 0.00999999977 : f32
    %83 = vector.broadcast %cst_27 : f32 to vector<256x128xf32>
    %84 = arith.mulf %83, %82 : vector<256x128xf32>
    %85 = arith.maximumf %82, %84 : vector<256x128xf32>
    %86 = arith.addf %72, %85 : vector<256x128xf32>
    %cst_28 = arith.constant dense<0.000000e+00> : vector<256xf32>
    %87 = vector.multi_reduction <add>, %86, %cst_28 [1] : vector<256x128xf32> to vector<256xf32>
    %88 = vector.shape_cast %87 : vector<256xf32> to vector<256x1xf32>
    %cst_29 = arith.constant 1.280000e+02 : f32
    %89 = vector.broadcast %cst_29 : f32 to vector<256x1xf32>
    %90 = arith.divf %88, %89 : vector<256x1xf32>
    %91 = vector.broadcast %90 : vector<256x1xf32> to vector<256x128xf32>
    %92 = arith.subf %86, %91 : vector<256x128xf32>
    %93 = arith.mulf %92, %92 : vector<256x128xf32>
    %cst_30 = arith.constant dense<0.000000e+00> : vector<256xf32>
    %94 = vector.multi_reduction <add>, %93, %cst_30 [1] : vector<256x128xf32> to vector<256xf32>
    %95 = vector.shape_cast %94 : vector<256xf32> to vector<256x1xf32>
    %cst_31 = arith.constant 1.280000e+02 : f32
    %96 = vector.broadcast %cst_31 : f32 to vector<256x1xf32>
    %97 = arith.divf %95, %96 : vector<256x1xf32>
    %cst_32 = arith.constant 9.99999974E-6 : f32
    %98 = vector.broadcast %cst_32 : f32 to vector<256x1xf32>
    %99 = arith.addf %97, %98 : vector<256x1xf32>
    %100 = math.rsqrt %99 : vector<256x1xf32>
    %101 = vector.broadcast %100 : vector<256x1xf32> to vector<256x128xf32>
    %102 = arith.mulf %92, %101 : vector<256x128xf32>
    %103 = vector.extract_strided_slice %79 {offsets = [1, 0], sizes = [1, 128], strides = [1, 1]} : vector<3x128xf32> to vector<1x128xf32>
    %104 = vector.broadcast %103 : vector<1x128xf32> to vector<256x128xf32>
    %105 = arith.mulf %102, %104 : vector<256x128xf32>
    %106 = vector.extract_strided_slice %79 {offsets = [2, 0], sizes = [1, 128], strides = [1, 1]} : vector<3x128xf32> to vector<1x128xf32>
    %107 = vector.broadcast %106 : vector<1x128xf32> to vector<256x128xf32>
    %108 = arith.addf %105, %107 : vector<256x128xf32>
    %c3_i32 = arith.constant 3 : i32
    %c0_33 = arith.constant 0 : index
    %c0_34 = arith.constant 0 : index
    %109 = vector.load %arg4[%c0_33, %c0_34] : memref<128x128xf32, #tpu.memory_space<vmem>>, vector<128x128xf32>
    %cst_35 = arith.constant dense<0.000000e+00> : vector<256x128xf32>
    %110 = tpu.matmul %108, %109, %cst_35 {dimension_numbers = #tpu.dot_dimension_numbers<[1], [0], [0], [1], [0, 0, 1, 1], [], []>} : vector<256x128xf32>, vector<128x128xf32>, vector<256x128xf32> -> vector<256x128xf32>
    %c0_36 = arith.constant 0 : index
    %c0_37 = arith.constant 0 : index
    %111 = vector.load %arg5[%c0_36, %c0_37] : memref<1x128xf32, #tpu.memory_space<vmem>>, vector<1x128xf32>
    %112 = vector.broadcast %111 : vector<1x128xf32> to vector<256x128xf32>
    %113 = arith.addf %110, %112 : vector<256x128xf32>
    %c0_38 = arith.constant 0 : index
    %c0_39 = arith.constant 0 : index
    %114 = vector.load %arg6[%c0_38, %c0_39] : memref<256x128xf32, #tpu.memory_space<vmem>>, vector<256x128xf32>
    tpu.vector_store %arg6[%c0_38, %c0_39], %113 {strides = array<i32>} : memref<256x128xf32, #tpu.memory_space<vmem>>, vector<256x128xf32>,
    return
  }
  func.func @transform_0(%arg0: i32) -> (i32, i32) {
    %c0_i32 = arith.constant 0 : i32
    %c0_i32_0 = arith.constant 0 : i32
    return %arg0, %c0_i32 : i32, i32
  }
  func.func @transform_1(%arg0: i32) -> (i32, i32, i32) {
    %c0_i32 = arith.constant 0 : i32
    %c0_i32_0 = arith.constant 0 : i32
    %c0_i32_1 = arith.constant 0 : i32
    %c0_i32_2 = arith.constant 0 : i32
    return %c0_i32, %c0_i32_0, %c0_i32_1 : i32, i32, i32
  }
  func.func @transform_2(%arg0: i32) -> (i32, i32, i32) {
    %c0_i32 = arith.constant 0 : i32
    %c0_i32_0 = arith.constant 0 : i32
    %c0_i32_1 = arith.constant 0 : i32
    %c0_i32_2 = arith.constant 0 : i32
    return %c0_i32, %c0_i32_0, %c0_i32_1 : i32, i32, i32
  }
  func.func @transform_3(%arg0: i32) -> (i32, i32) {
    %c0_i32 = arith.constant 0 : i32
    %c0_i32_0 = arith.constant 0 : i32
    %c0_i32_1 = arith.constant 0 : i32
    return %c0_i32, %c0_i32_0 : i32, i32
  }
  func.func @transform_4(%arg0: i32) -> (i32, i32) {
    %c0_i32 = arith.constant 0 : i32
    %c0_i32_0 = arith.constant 0 : i32
    %c0_i32_1 = arith.constant 0 : i32
    return %c0_i32, %c0_i32_0 : i32, i32
  }
  func.func @transform_5(%arg0: i32) -> (i32, i32) {
    %c0_i32 = arith.constant 0 : i32
    %c0_i32_0 = arith.constant 0 : i32
    return %arg0, %c0_i32 : i32, i32
  }
}

</mosaic_0001>

<bundles_post_ra>
// kernel: tpu_custom_call.1
= control target key start
LH: loop header
LB: loop body
LE: loop exit
PB: predicated region body
PF: predicated region fallthrough
CT: control target
= control target key end

     0   :  { %10 = vsyncpa [#allocation3], 0  ;;  %s6153_s0 = inlined_call_operand.hbm [shape: f32[512,128], index: 0, kind: input, shape index: {}]   ;;  %s6154_s1 = inlined_call_operand.hbm [shape: f32[3,128,128], index: 1, kind: input, shape index: {}]   ;;  %s6155_s2 = inlined_call_operand.hbm [shape: f32[3,3,128], index: 2, kind: input, shape index: {}]   ;;  %s6156_s3 = inlined_call_operand.hbm [shape: f32[128,128], index: 3, kind: input, shape index: {}]   ;;  %s6157_s4 = inlined_call_operand.vmem [shape: f32[1,128], index: 4, kind: input, shape index: {}]   ;;  %s6158_s5 = inlined_call_operand.hbm [shape: f32[512,128], index: 5, kind: output, shape index: {}]  }
   0x1   :  { %12 = vsyncpa [#allocation3 + $0x1], 0 }
   0x2   :  { %13 = vsyncpa [#allocation6], 0 }
   0x3   :  { %14 = vsyncpa [#allocation9], 0 }
   0x4   :  { %15 = vsyncpa [#allocation4], 0 }
   0x5   :  { %17 = vsyncpa [#allocation4 + $0x1], 0  ;;  %s4189_s18 = smov 0   ;;  %s4191_s19 = smov 0  }
   0x6   :  { %s4193_s20 = smov 0   ;;  %s4195_s21 = smov 0  }
   0x7 LB: > { %s4210_s22 = sadd.s32 4294967295, %s4146_s21   ;;  %s3020_s23 = sadd.s32 4294967294, %s4146_s21   ;;  %s4146_s21 = sphi %s4195_s21, %s6187_s21   ;;  %s4142_s20 = sphi %s4193_s20, %s6186_s20   ;;  %s4138_s19 = sphi %s4191_s19, %s6185_s19   ;;  %s4134_s18 = sphi %s4189_s18, %s6184_s18  }
   0x8   : > { %p43_p0 = scmp.ne.s32.totalorder %s4138_s19, %s4134_s18  ;;  %p6159_p1 = scmp.eq.s32.totalorder %s4210_s22, 0 }
   0x9   : > { %p157_p3 = scmp.eq.s32.totalorder %s3020_s23, 1  ;;  %p3021_p5 = scmp.ge.s32.totalorder %s4146_s21, 1 }
   0xa   : > { %p4219_p4 = por %p6159_p1, %p43_p0  ;;  %p164_p7 = scmp.lt.s32.totalorder %s4146_s21, 3 }
   0xb   : > { %p4224_p6 = por %p157_p3, %p43_p0  ;;  %s4148_s27 = smov [#allocation5]  }
   0xc   : > { %s6166_s24 = scalar_select %p4219_p4, 1, 0 }
   0xd   : > { %s6167_s25 = scalar_select %p4224_p6, 1, 0 }
   0xe   : > { %p4229_p8 = pnand %p3021_p5, %p164_p7  ;;  %s176_s28 = sshll.u32 %s4148_s27, 4  ;;  %s4233_s28 = int_to_ptr.vmem [resolvable:$true] %s176_s28 }
   0xf   : > { %s4149_s30 = smov [#allocation7]   ;;  %s3958_s9 = scalar_lea.hbm %s6154_s1, 6144 }
  0x10   : > { %s6168_s26 = scalar_select %p4229_p8, 1, 0 }
  0x11   : > { %p3699_p9 = pneg %p4229_p8  ;;  %s189_s6 = sshll.u32 %s4149_s30, 4  ;;  %s4244_s6 = int_to_ptr.vmem [resolvable:$true] %s189_s6 }
  0x12   : > { %p3959_p12 = scmp.ne.s32.totalorder %s6154_s1, %s3958_s9  ;;  %p3965_p5 = scmp.lt.u32.totalorder %s3958_s9, %s6154_s1 }
  0x13   : > { %p4240_p11 = pnand %p3699_p9, %p6159_p1 }
  0x15   : > { %p4254_p13 = pneg %p4240_p11 }
  0x17   : > { %p3961_p0 = pnand %p4254_p13, %p3959_p12 }
  0x19   : > { %p3962_p3 = pneg %p3961_p0 }
  0x1b   : > { %p3967_p7 = pnand %p3965_p5, %p3962_p3 }
  0x1d   : > { %3970 = shalt.err (!%p3967_p7)
}
  0x1e   : > { %s3971_s15 = scalar_lea.vmem %s4233_s28, 6144  ;;  %p3979_p2 = scmp.lt.s32.totalorder %s4233_s28, %s4233_s28 }
  0x1f   : > { %p3972_p9 = scmp.ne.s32.totalorder %s4233_s28, %s3971_s15  ;;  %p3980_p6 = scmp.lt.s32.totalorder %s3971_s15, %s3971_s15 }
  0x21   : > { %p3974_p10 = pnand %p3972_p9, %p4254_p13  ;;  %p3981_p12 = por %p3980_p6, %p3979_p2 }
  0x23   : > { %p3975_p1 = pneg %p3974_p10 }
  0x25   : > { %p3982_p0 = pnand %p3981_p12, %p3975_p1 }
  0x27   : > { %3985 = shalt.err (!%p3982_p0)
}
  0x28   : > { %s6160_s16 = smov 128   ;;  %s6162_s17 = smov 8  }
  0x29   : > { %3702 = dma.hbm_to_vmem [thread:$0]  (!%p4240_p11), %s6154_s1, 6144, %s4233_s28, [#allocation6], %s6160_s16, %s6160_s16, %s6162_s17  }
  0x2a   : > { %s3986_s8 = scalar_lea.hbm %s6155_s2, 192 }
  0x2b   : > { %p3987_p1 = scmp.ne.s32.totalorder %s6155_s2, %s3986_s8  ;;  %p3993_p10 = scmp.lt.u32.totalorder %s3986_s8, %s6155_s2 }
  0x2d   : > { %p3989_p2 = pnand %p3987_p1, %p4254_p13 }
  0x2f   : > { %p3990_p6 = pneg %p3989_p2 }
  0x31   : > { %p3995_p3 = pnand %p3993_p10, %p3990_p6 }
  0x33   : > { %3998 = shalt.err (!%p3995_p3)
}
  0x34   : > { %s3999_s28 = scalar_lea.vmem %s4244_s6, 192  ;;  %p4007_p12 = scmp.lt.s32.totalorder %s4244_s6, %s4244_s6 }
  0x35   : > { %p4000_p5 = scmp.ne.s32.totalorder %s4244_s6, %s3999_s28  ;;  %p4008_p0 = scmp.lt.s32.totalorder %s3999_s28, %s3999_s28 }
  0x37   : > { %p4002_p7 = pnand %p4000_p5, %p4254_p13  ;;  %p4009_p1 = por %p4008_p0, %p4007_p12 }
  0x39   : > { %p4003_p9 = pneg %p4002_p7 }
  0x3b   : > { %p4010_p2 = pnand %p4009_p1, %p4003_p9 }
  0x3d   : > { %4013 = shalt.err (!%p4010_p2)
}
  0x3e   : > { %s4152_s14 = smov 64   ;;  %s4153_s15 = smov 4  }
  0x3f   : > { %3705 = dma.hbm_to_vmem [thread:$0]  (!%p4240_p11), %s6155_s2, 192, %s4244_s6, [#allocation6], %s4152_s14, %s4152_s14, %s4153_s15  }
  0x40   : > { %s4154_s30 = smov [#allocation8]   ;;  %s4302_s8 = sadd.s32 1, %s4146_s21  }
  0x41   : > { %s202_s7 = sshll.u32 %s4154_s30, 4  ;;  %s4014_s11 = scalar_lea.hbm %s6156_s3, 2048  ;;  %s203_s7 = int_to_ptr.vmem [resolvable:$true] %s202_s7 }
  0x42   : > { %p4015_p6 = scmp.ne.s32.totalorder %s6156_s3, %s4014_s11  ;;  %p4021_p5 = scmp.lt.u32.totalorder %s4014_s11, %s6156_s3 }
  0x44   : > { %p4017_p10 = pnand %p4015_p6, %p4254_p13 }
  0x46   : > { %p4018_p3 = pneg %p4017_p10 }
  0x48   : > { %p4023_p7 = pnand %p4021_p5, %p4018_p3 }
  0x4a   : > { %4026 = shalt.err (!%p4023_p7)
}
  0x4b   : > { %s4027_s6 = scalar_lea.vmem %s203_s7, 2048  ;;  %p4035_p1 = scmp.lt.s32.totalorder %s203_s7, %s203_s7 }
  0x4c   : > { %p4028_p9 = scmp.ne.s32.totalorder %s203_s7, %s4027_s6  ;;  %p4036_p2 = scmp.lt.s32.totalorder %s4027_s6, %s4027_s6 }
  0x4e   : > { %p4030_p12 = pnand %p4028_p9, %p4254_p13  ;;  %p4037_p4 = por %p4036_p2, %p4035_p1 }
  0x50   : > { %p4031_p0 = pneg %p4030_p12 }
  0x52   : > { %p4038_p8 = pnand %p4037_p4, %p4031_p0 }
  0x54   : > { %4041 = shalt.err (!%p4038_p8)
}
  0x55   : > { %s6171_s14 = smov 8   ;;  %s6172_s15 = smov 128  }
  0x56   : > { %3708 = dma.hbm_to_vmem [thread:$0]  (!%p4240_p11), %s6156_s3, 2048, %s203_s7, [#allocation9], %s6172_s15, %s6172_s15, %s6171_s14  }
  0x57   : > { %s27_s12 = ssub.s32 %s4146_s21, %s4302_s8  ;;  %s30_s29 = sadd.s32 1, %s4142_s20 }
  0x58   : > { %p28_p4 = scmp.eq.s32.totalorder %s27_s12, 0  ;;  %p37_p8 = scmp.ne.s32.totalorder %s4142_s20, %s4138_s19 }
  0x59   : > { %p38_p13 = scmp.eq.s32.totalorder %s4146_s21, 0  ;;  %p3720_p6 = scmp.lt.s32.totalorder %s4146_s21, 2 }
  0x5a   : > { %s4333_s23 = scalar_select %p28_p4, %s4142_s20, %s30_s29  }
  0x5b   : > { %p39_p10 = por %p38_p13, %p37_p8  ;;  %p6173_p3 = scmp.eq.s32.totalorder %s4210_s22, 1 }
  0x5c   : > { %s219_s30 = sand.u32 1, %s4142_s20   ;;  %s3041_s9 = sshll.u32 %s4146_s21, 12 }
  0x5d   : > { %p4337_p5 = por %p6173_p3, %p37_p8  ;;  %s3026_s10 = sshll.u32 %s219_s30, 8 }
  0x5e   : > { %s4346_s7 = scalar_lea.hbm %s6153_s0, %s3041_s9  ;;  %s223_s28 = scalar_lea.vmem [#allocation2], %s3026_s10 }
  0x5f   : > { %s230_s6 = sshll.u32 %s223_s28, 4  ;;  %p4348_p11 = pnand %p3720_p6, %p39_p10  ;;  %s4352_s6 = int_to_ptr.vmem [resolvable:$true] %s230_s6 }
  0x60   : > { %s4354_s17 = scalar_lea.sflag [#allocation3], %s219_s30  ;;  %s4042_s12 = scalar_lea.hbm %s4346_s7, 4096 }
  0x61   : > { %p4043_p7 = scmp.ne.s32.totalorder %s4346_s7, %s4042_s12  ;;  %p4044_p9 = pneg %p4348_p11 }
  0x62   : > { %s4047_s10 = scalar_lea.hbm %s6153_s0, 8192  ;;  %p4048_p1 = scmp.lt.u32.totalorder %s4346_s7, %s6153_s0 }
  0x63   : > { %p4045_p12 = pnand %p4044_p9, %p4043_p7  ;;  %p4049_p2 = scmp.lt.u32.totalorder %s4047_s10, %s4042_s12 }
  0x64   : > { %p4051_p8 = scmp.lt.u32.totalorder %s4042_s12, %s4346_s7 }
  0x65   : > { %p4046_p0 = pneg %p4045_p12  ;;  %p4050_p4 = por %p4049_p2, %p4048_p1 }
  0x67   : > { %p4052_p13 = por %p4051_p8, %p4050_p4 }
  0x69   : > { %p4053_p6 = pnand %p4052_p13, %p4046_p0 }
  0x6b   : > { %4056 = shalt.err (!%p4053_p6)
}
  0x6c   : > { %s4057_s30 = scalar_lea.vmem %s4352_s6, 4096  ;;  %s4155_s28 = smov [#allocation2]  }
  0x6d   : > { %p4058_p10 = scmp.ne.s32.totalorder %s4352_s6, %s4057_s30  ;;  %s4062_s29 = sshll.u32 %s4155_s28, 4  ;;  %s4063_s29 = int_to_ptr.vmem [resolvable:$false] %s4062_s29 }
  0x6e   : > { %s4064_s9 = scalar_lea.vmem %s4063_s29, 8192  ;;  %p4065_p12 = scmp.lt.s32.totalorder %s4352_s6, %s4063_s29 }
  0x6f   : > { %p4060_p3 = pnand %p4058_p10, %p4044_p9  ;;  %p4066_p1 = scmp.lt.s32.totalorder %s4064_s9, %s4057_s30 }
  0x71   : > { %p4061_p7 = pneg %p4060_p3  ;;  %p4067_p2 = por %p4066_p1, %p4065_p12 }
  0x73   : > { %p4068_p4 = pnand %p4067_p2, %p4061_p7 }
  0x75   : > { %4071 = shalt.err (!%p4068_p4)
}
  0x76   : > { %3712 = dma.hbm_to_vmem [thread:$0]  (!%p4348_p11), %s4346_s7, 4096, %s4352_s6, %s4354_s17, %s6172_s15, %s6172_s15, %s6171_s14  }
  0x77   : > { %p6176_p9 = scmp.ne.s32.totalorder %s6168_s26, 0 }
  0x78   : > { %s4388_s12 = sand.u32 (!%p6176_p9), 1, %s4138_s19   ;;  %p6177_p0 = scmp.ne.s32.totalorder (!%p6176_p9), %s6166_s24, 0 }
  0x79   : > { %242 = sbr.rel (%p6176_p9) target bundleno = 2063 (0x80f), region = 40  ;;  %s3030_s10 = sshll.u32 (!%p6176_p9), %s4388_s12, 8 }
  0x7a   : > { %s245_s11 = scalar_lea.sflag (!%p6176_p9), [#allocation3], %s4388_s12  ;;  %s4394_s16 = scalar_lea.vmem (!%p6176_p9), [#allocation2], %s3030_s10 }
  0x80   : > { %4117 = dma.done.wait (%p6177_p0), %s245_s11, 4096  }
  0x81   : > { %4119 = vsyncadd (%p6177_p0), %s245_s11, 4294963200  ;;  %p6178_p11 = scmp.eq.s32.totalorder %s4210_s22, 0 }
  0x83   : > { %4121 = dma.done.wait (%p6178_p11), [#allocation6], 6336   ;;  %p6179_p8 = pmov %p6178_p11 }
  0x85   : > { %4123 = vsyncadd (%p6179_p8), [#allocation6], 4294960960  ;;  %p6180_p13 = pmov %p6179_p8 }
  0x86   : > { %p6181_p6 = pmov %p6179_p8 }
  0x87   : > { %4125 = dma.done.wait (%p6180_p13), [#allocation9], 2048  }
  0x88   : > { %4127 = vsyncadd (%p6181_p6), [#allocation9], 4294965248  ;;  %v321_v0 = vld [vmem:[#allocation5] sm:$0xff]  ;;  %v322_v1 = vld [vmem:[#allocation5 + $0x8] sm:$0xff]  ;;  %v338_v56 = vlaneseq  ;;  %s6038_s14 = scalar_lea.vmem [#allocation10], %s3030_s10  ;;  %s3042_s15 = sshll.u32 %s4210_s22, 12 }
  0x89   : > { %v323_v2 = vld [vmem:[#allocation5 + $0x10] sm:$0xff]  ;;  %v3555_v3 = vpack.c.bf16 %v322_v1, %v321_v0  ;;  %v324_v4 = vld [vmem:[#allocation5 + $0x18] sm:$0xff]  ;;  %v325_v6 = vld [vmem:[#allocation5 + $0x20] sm:$0xff]  ;;  %s2918_s7 = sshll.u32 %s6038_s14, 4  ;;  %s6104_s13 = scalar_lea.hbm %s6158_s5, %s3042_s15  ;;  %s6106_s7 = int_to_ptr.vmem [resolvable:$true] %s2918_s7 }
  0x8a   : > { %v3559_v5 = vpack.c.bf16 %v324_v4, %v323_v2  ;;  %v326_v7 = vld [vmem:[#allocation5 + $0x28] sm:$0xff]  ;;  %v4409_v9 = vld [vmem:[%s4394_s16] sm:$0xff]  ;;  %v327_v10 = vld [vmem:[#allocation5 + $0x30] sm:$0xff]  ;;  %v4536_v57 = vshrl.u32 %v338_v56, 7  ;;  %s2905_s22 = scalar_lea.sflag [#allocation4], %s4388_s12  ;;  %s4072_s30 = scalar_lea.vmem %s6106_s7, 4096 }
  0x8b   : > { %3556 = vmatprep.subr.bf16.mxu0 %v3555_v3  ;;  %v3563_v8 = vpack.c.bf16 %v326_v7, %v325_v6  ;;  %v328_v11 = vld [vmem:[#allocation5 + $0x38] sm:$0xff]  ;;  %3267 = vmatprep.mubr.f32.mxu0 %v4409_v9  ;;  %v329_v13 = vld [vmem:[#allocation5 + $0x40] sm:$0xff]  ;;  %v330_v14 = vld [vmem:[#allocation5 + $0x48] sm:$0xff]  ;;  %p4073_p10 = scmp.ne.s32.totalorder %s6106_s7, %s4072_s30  ;;  %s4156_s28 = smov [#allocation10]  }
  0x8c   : > { %3558 = vmatpush3.bf16.msra.mxu0 %v3555_v3  ;;  %v3567_v12 = vpack.c.bf16 %v328_v11, %v327_v10  ;;  %v3571_v15 = vpack.c.bf16 %v330_v14, %v329_v13  ;;  %v331_v16 = vld [vmem:[#allocation5 + $0x50] sm:$0xff]  ;;  %v332_v17 = vld [vmem:[#allocation5 + $0x58] sm:$0xff]  ;;  %v333_v19 = vld [vmem:[#allocation5 + $0x60] sm:$0xff]  ;;  %v4539_v58 = vsub.s32 0, %v4536_v57  ;;  %s4076_s29 = sshll.u32 %s4156_s28, 4  ;;  %s4077_s29 = int_to_ptr.vmem [resolvable:$false] %s4076_s29 }
  0x8d   : > { %3560 = vmatprep.subr.bf16.mxu0 %v3559_v5  ;;  %v3575_v18 = vpack.c.bf16 %v332_v17, %v331_v16  ;;  %v334_v20 = vld [vmem:[#allocation5 + $0x68] sm:$0xff]  ;;  %v335_v22 = vld [vmem:[#allocation5 + $0x70] sm:$0xff]  ;;  %v336_v23 = vld [vmem:[#allocation5 + $0x78] sm:$0xff]  ;;  %p4074_p3 = pnand %p4073_p10, %p4337_p5  ;;  %s4078_s9 = scalar_lea.vmem %s4077_s29, 8192 }
  0x8e   : > { %v3579_v21 = vpack.c.bf16 %v334_v20, %v333_v19  ;;  %v3583_v24 = vpack.c.bf16 %v336_v23, %v335_v22  ;;  %v4413_v25 = vld [vmem:[%s4394_s16 + $0x8] sm:$0xff]  ;;  %v4416_v26 = vld [vmem:[%s4394_s16 + $0x10] sm:$0xff]  ;;  %v4421_v27 = vld [vmem:[%s4394_s16 + $0x18] sm:$0xff]  ;;  %p4079_p12 = scmp.lt.s32.totalorder %s6106_s7, %s4077_s29  ;;  %p4080_p1 = scmp.lt.s32.totalorder %s4078_s9, %s4072_s30 }
  0x8f   : > { %v4424_v28 = vld [vmem:[%s4394_s16 + $0x20] sm:$0xff]  ;;  %v4429_v29 = vld [vmem:[%s4394_s16 + $0x28] sm:$0xff]  ;;  %v4432_v30 = vld [vmem:[%s4394_s16 + $0x30] sm:$0xff]  ;;  %p4075_p7 = pneg %p4074_p3 }
  0x90   : > { %3562 = vmatpush3.bf16.msra.mxu0 %v3559_v5  ;;  %v4437_v31 = vld [vmem:[%s4394_s16 + $0x38] sm:$0xff]  ;;  %v4440_v32 = vld [vmem:[%s4394_s16 + $0x40] sm:$0xff]  ;;  %v4445_v33 = vld [vmem:[%s4394_s16 + $0x48] sm:$0xff]  ;;  %p4081_p2 = por %p4080_p1, %p4079_p12 }
  0x91   : > { %3564 = vmatprep.subr.bf16.mxu0 %v3563_v8  ;;  %v4448_v34 = vld [vmem:[%s4394_s16 + $0x50] sm:$0xff]  ;;  %v4453_v35 = vld [vmem:[%s4394_s16 + $0x58] sm:$0xff]  ;;  %v4456_v36 = vld [vmem:[%s4394_s16 + $0x60] sm:$0xff] }
  0x92   : > { %v4461_v37 = vld [vmem:[%s4394_s16 + $0x68] sm:$0xff]  ;;  %v4464_v38 = vld [vmem:[%s4394_s16 + $0x70] sm:$0xff]  ;;  %v4469_v39 = vld [vmem:[%s4394_s16 + $0x78] sm:$0xff]  ;;  %p4082_p4 = pnand %p4081_p2, %p4075_p7 }
  0x93   : > { %v4472_v40 = vld [vmem:[%s4394_s16 + $0x80] sm:$0xff]  ;;  %v4477_v41 = vld [vmem:[%s4394_s16 + $0x88] sm:$0xff]  ;;  %v4480_v42 = vld [vmem:[%s4394_s16 + $0x90] sm:$0xff] }
  0x94   : > { %3566 = vmatpush3.bf16.msra.mxu0 %v3563_v8  ;;  %v4485_v43 = vld [vmem:[%s4394_s16 + $0x98] sm:$0xff]  ;;  %v4488_v44 = vld [vmem:[%s4394_s16 + $0xa0] sm:$0xff]  ;;  %v4493_v45 = vld [vmem:[%s4394_s16 + $0xa8] sm:$0xff] }
  0x95   : > { %3568 = vmatprep.subr.bf16.mxu0 %v3567_v12  ;;  %v4496_v46 = vld [vmem:[%s4394_s16 + $0xb0] sm:$0xff]  ;;  %v4501_v47 = vld [vmem:[%s4394_s16 + $0xb8] sm:$0xff]  ;;  %v4504_v48 = vld [vmem:[%s4394_s16 + $0xc0] sm:$0xff] }
  0x96   : > { %v4509_v49 = vld [vmem:[%s4394_s16 + $0xc8] sm:$0xff]  ;;  %v4512_v50 = vld [vmem:[%s4394_s16 + $0xd0] sm:$0xff]  ;;  %v4517_v51 = vld [vmem:[%s4394_s16 + $0xd8] sm:$0xff] }
  0x97   : > { %v4520_v52 = vld [vmem:[%s4394_s16 + $0xe0] sm:$0xff]  ;;  %v4525_v53 = vld [vmem:[%s4394_s16 + $0xe8] sm:$0xff]  ;;  %v4528_v54 = vld [vmem:[%s4394_s16 + $0xf0] sm:$0xff] }
  0x98   : > { %3570 = vmatpush3.bf16.msra.mxu0 %v3567_v12  ;;  %v4533_v55 = vld [vmem:[%s4394_s16 + $0xf8] sm:$0xff]  ;;  %v4541_v59 = vld [vmem:[#allocation7] sm:$0x7] }
  0x99   : > { %3572 = vmatprep.subr.bf16.mxu0 %v3571_v15  ;;  %v4545_v60 = vrot.slane %v4541_v59, %v4539_v58 }
  0x9c   : > { %3574 = vmatpush3.bf16.msra.mxu0 %v3571_v15 }
  0x9d   : > { %3576 = vmatprep.subr.bf16.mxu0 %v3575_v18 }
  0xa0   : > { %3578 = vmatpush3.bf16.msra.mxu0 %v3575_v18 }
  0xa1   : > { %3580 = vmatprep.subr.bf16.mxu0 %v3579_v21 }
  0xa4   : > { %3582 = vmatpush3.bf16.msra.mxu0 %v3579_v21 }
  0xa5   : > { %3584 = vmatprep.subr.bf16.mxu0 %v3583_v24 }
  0xa8   : > { %3586 = vmatpush3.bf16.msra.mxu0 %v3583_v24 }
  0xab   : > { %3268 = vmatmul.mubr.f32.vlgmr.msra.gmra.mrb[0].mxu0 %v4413_v25 }
  0xac   : > { %3270 = vmatprep.mubr.f32.mxu0 %v4416_v26 }
  0xaf   : > { %3271 = vmatmul.mubr.f32.gmra.mrb[2].mxu0 %v4421_v27 }
  0xb0   : > { %3273 = vmatprep.mubr.f32.mxu0 %v4424_v28 }
  0xb3   : > { %3274 = vmatmul.mubr.f32.gmra.mrb[4].mxu0 %v4429_v29 }
  0xb4   : > { %3276 = vmatprep.mubr.f32.mxu0 %v4432_v30 }
  0xb7   : > { %3277 = vmatmul.mubr.f32.gmra.mrb[6].mxu0 %v4437_v31 }
  0xb8   : > { %3279 = vmatprep.mubr.f32.mxu0 %v4440_v32 }
  0xbb   : > { %3280 = vmatmul.mubr.f32.gmra.mrb[8].mxu0 %v4445_v33 }
  0xbc   : > { %3282 = vmatprep.mubr.f32.mxu0 %v4448_v34 }
  0xbf   : > { %3283 = vmatmul.mubr.f32.gmra.mrb[10].mxu0 %v4453_v35 }
  0xc0   : > { %3285 = vmatprep.mubr.f32.mxu0 %v4456_v36 }
  0xc3   : > { %3286 = vmatmul.mubr.f32.gmra.mrb[12].mxu0 %v4461_v37 }
  0xc4   : > { %3288 = vmatprep.mubr.f32.mxu0 %v4464_v38 }
  0xc7   : > { %3289 = vmatmul.mubr.f32.gmra.mrb[14].mxu0 %v4469_v39 }
  0xc8   : > { %3291 = vmatprep.mubr.f32.mxu0 %v4472_v40 }
  0xcb   : > { %3292 = vmatmul.mubr.f32.gmra.mrb[16].mxu0 %v4477_v41 }
  0xcc   : > { %3294 = vmatprep.mubr.f32.mxu0 %v4480_v42 }
  0xcf   : > { %3295 = vmatmul.mubr.f32.gmra.mrb[18].mxu0 %v4485_v43 }
  0xd0   : > { %3297 = vmatprep.mubr.f32.mxu0 %v4488_v44 }
  0xd3   : > { %3298 = vmatmul.mubr.f32.gmra.mrb[20].mxu0 %v4493_v45 }
  0xd4   : > { %3300 = vmatprep.mubr.f32.mxu0 %v4496_v46 }
  0xd7   : > { %3301 = vmatmul.mubr.f32.gmra.mrb[22].mxu0 %v4501_v47 }
  0xd8   : > { %3303 = vmatprep.mubr.f32.mxu0 %v4504_v48 }
  0xdb   : > { %3304 = vmatmul.mubr.f32.gmra.mrb[24].mxu0 %v4509_v49 }
  0xdc   : > { %3306 = vmatprep.mubr.f32.mxu0 %v4512_v50 }
  0xdf   : > { %3307 = vmatmul.mubr.f32.gmra.mrb[26].mxu0 %v4517_v51 }
  0xe0   : > { %3309 = vmatprep.mubr.f32.mxu0 %v4520_v52 }
  0xe3   : > { %3310 = vmatmul.mubr.f32.gmra.mrb[28].mxu0 %v4525_v53 }
  0xe4   : > { %3312 = vmatprep.mubr.f32.mxu0 %v4528_v54 }
  0xe7   : > { %3313 = vmatmul.mubr.f32.gmra.mrb[30].mxu0 %v4533_v55 }
 0x17e   : > { %v3269_v61 = vpop.f32.mrb[0].mxu0 }
 0x17f   : > { %v414_v62 = vadd.f32 %v3269_v61, %v4545_v60  ;;  %v408_v63 = vpop.f32.mrb[1].mxu0 }
 0x180   : > { %v409_v0 = vadd.f32 %v408_v63, %v4545_v60 }
 0x181   : > { %v568_v1 = vmul.f32 0.01, %v414_v62 }
 0x182   : > { %v567_v2 = vmul.f32 0.01, %v409_v0  ;;  %v3272_v3 = vpop.f32.mrb[2].mxu0 }
 0x183   : > { %v424_v4 = vadd.f32 %v3272_v3, %v4545_v60  ;;  %v418_v5 = vpop.f32.mrb[3].mxu0  ;;  %v600_v10 = vmax.f32 %v414_v62, %v568_v1 }
 0x184   : > { %v599_v6 = vmax.f32 %v409_v0, %v567_v2  ;;  %v419_v7 = vadd.f32 %v418_v5, %v4545_v60 }
 0x185   : > { %v570_v8 = vmul.f32 0.01, %v424_v4  ;;  %v4561_v23 = vadd.f32 %v600_v10, %v4413_v25 }
 0x186   : > { %v569_v11 = vmul.f32 0.01, %v419_v7  ;;  %v3275_v12 = vpop.f32.mrb[4].mxu0  ;;  %v4552_v13 = vadd.f32 %v599_v6, %v4409_v9 }
 0x187   : > { %v434_v14 = vadd.f32 %v3275_v12, %v4545_v60  ;;  %v428_v15 = vpop.f32.mrb[5].mxu0  ;;  %v602_v18 = vmax.f32 %v424_v4, %v570_v8 }
 0x188   : > { %v601_v16 = vmax.f32 %v419_v7, %v569_v11  ;;  %v429_v17 = vadd.f32 %v428_v15, %v4545_v60  ;;  %663 = vadd.xlane.f32.xlu0 %v4552_v13 }
 0x189   : > { %v572_v19 = vmul.f32 0.01, %v434_v14  ;;  %v4568_v62 = vadd.f32 %v602_v18, %v4421_v27 }
 0x18a   : > { %v571_v20 = vmul.f32 0.01, %v429_v17  ;;  %v3278_v21 = vpop.f32.mrb[6].mxu0  ;;  %v4558_v22 = vadd.f32 %v601_v16, %v4416_v26 }
 0x18b   : > { %v444_v9 = vadd.f32 %v3278_v21, %v4545_v60  ;;  %v438_v24 = vpop.f32.mrb[7].mxu0  ;;  %v604_v63 = vmax.f32 %v434_v14, %v572_v19 }
 0x18c   : > { %v603_v56 = vmax.f32 %v429_v17, %v571_v20  ;;  %v439_v61 = vadd.f32 %v438_v24, %v4545_v60  ;;  %667 = vadd.xlane.f32.xlu1 %v4558_v22  ;;  %665 = vadd.xlane.f32.xlu0 %v4561_v23 }
 0x18d   : > { %v574_v0 = vmul.f32 0.01, %v444_v9  ;;  %v4578_v10 = vadd.f32 %v604_v63, %v4429_v29 }
 0x18e   : > { %v573_v26 = vmul.f32 0.01, %v439_v61  ;;  %v3281_v1 = vpop.f32.mrb[8].mxu0  ;;  %v4571_v25 = vadd.f32 %v603_v56, %v4424_v28 }
 0x18f   : > { %v454_v2 = vadd.f32 %v3281_v1, %v4545_v60  ;;  %v448_v3 = vpop.f32.mrb[9].mxu0  ;;  %v606_v27 = vmax.f32 %v444_v9, %v574_v0 }
 0x190   : > { %v605_v4 = vmax.f32 %v439_v61, %v573_v26  ;;  %v449_v5 = vadd.f32 %v448_v3, %v4545_v60  ;;  %669 = vadd.xlane.f32.xlu1 %v4568_v62  ;;  %671 = vadd.xlane.f32.xlu0 %v4571_v25 }
 0x191   : > { %v576_v6 = vmul.f32 0.01, %v454_v2  ;;  %v4588_v29 = vadd.f32 %v606_v27, %v4437_v31 }
 0x192   : > { %v575_v7 = vmul.f32 0.01, %v449_v5  ;;  %v3284_v8 = vpop.f32.mrb[10].mxu0  ;;  %v4581_v28 = vadd.f32 %v605_v4, %v4432_v30 }
 0x193   : > { %v464_v11 = vadd.f32 %v3284_v8, %v4545_v60  ;;  %v458_v12 = vpop.f32.mrb[11].mxu0  ;;  %v608_v16 = vmax.f32 %v454_v2, %v576_v6 }
 0x194   : > { %v607_v14 = vmax.f32 %v449_v5, %v575_v7  ;;  %v459_v15 = vadd.f32 %v458_v12, %v4545_v60  ;;  %673 = vadd.xlane.f32.xlu1 %v4578_v10  ;;  %675 = vadd.xlane.f32.xlu0 %v4581_v28 }
 0x195   : > { %v578_v17 = vmul.f32 0.01, %v464_v11  ;;  %v4598_v56 = vadd.f32 %v608_v16, %v4445_v33 }
 0x196   : > { %v577_v18 = vmul.f32 0.01, %v459_v15  ;;  %v3287_v19 = vpop.f32.mrb[12].mxu0  ;;  %v4591_v30 = vadd.f32 %v607_v14, %v4440_v32 }
 0x197   : > { %v474_v20 = vadd.f32 %v3287_v19, %v4545_v60  ;;  %v468_v21 = vpop.f32.mrb[13].mxu0  ;;  %v610_v61 = vmax.f32 %v464_v11, %v578_v17 }
 0x198   : > { %v609_v9 = vmax.f32 %v459_v15, %v577_v18  ;;  %v469_v24 = vadd.f32 %v468_v21, %v4545_v60  ;;  %677 = vadd.xlane.f32.xlu1 %v4588_v29  ;;  %679 = vadd.xlane.f32.xlu0 %v4591_v30 }
 0x199   : > { %v580_v63 = vmul.f32 0.01, %v474_v20  ;;  %v4608_v27 = vadd.f32 %v610_v61, %v4453_v35 }
 0x19a   : > { %v579_v31 = vmul.f32 0.01, %v469_v24  ;;  %v3290_v0 = vpop.f32.mrb[14].mxu0  ;;  %v4601_v32 = vadd.f32 %v609_v9, %v4448_v34 }
 0x19b   : > { %v484_v26 = vadd.f32 %v3290_v0, %v4545_v60  ;;  %v478_v1 = vpop.f32.mrb[15].mxu0  ;;  %v612_v33 = vmax.f32 %v474_v20, %v580_v63 }
 0x19c   : > { %v611_v2 = vmax.f32 %v469_v24, %v579_v31  ;;  %v479_v3 = vadd.f32 %v478_v1, %v4545_v60  ;;  %681 = vadd.xlane.f32.xlu1 %v4598_v56  ;;  %683 = vadd.xlane.f32.xlu0 %v4601_v32 }
 0x19d   : > { %v582_v4 = vmul.f32 0.01, %v484_v26  ;;  %v4618_v35 = vadd.f32 %v612_v33, %v4461_v37 }
 0x19e   : > { %v581_v5 = vmul.f32 0.01, %v479_v3  ;;  %v3293_v6 = vpop.f32.mrb[16].mxu0  ;;  %v4611_v34 = vadd.f32 %v611_v2, %v4456_v36 }
 0x19f   : > { %v494_v7 = vadd.f32 %v3293_v6, %v4545_v60  ;;  %v488_v8 = vpop.f32.mrb[17].mxu0  ;;  %v614_v14 = vmax.f32 %v484_v26, %v582_v4 }
 0x1a0   : > { %v613_v11 = vmax.f32 %v479_v3, %v581_v5  ;;  %v489_v12 = vadd.f32 %v488_v8, %v4545_v60  ;;  %685 = vadd.xlane.f32.xlu1 %v4608_v27  ;;  %687 = vadd.xlane.f32.xlu0 %v4611_v34 }
 0x1a1   : > { %v584_v15 = vmul.f32 0.01, %v494_v7  ;;  %v4628_v9 = vadd.f32 %v614_v14, %v4469_v39 }
 0x1a2   : > { %v583_v16 = vmul.f32 0.01, %v489_v12  ;;  %v3296_v17 = vpop.f32.mrb[18].mxu0  ;;  %v4621_v36 = vadd.f32 %v613_v11, %v4464_v38 }
 0x1a3   : > { %v504_v18 = vadd.f32 %v3296_v17, %v4545_v60  ;;  %v498_v19 = vpop.f32.mrb[19].mxu0  ;;  %v616_v24 = vmax.f32 %v494_v7, %v584_v15 }
 0x1a4   : > { %v615_v20 = vmax.f32 %v489_v12, %v583_v16  ;;  %v499_v21 = vadd.f32 %v498_v19, %v4545_v60  ;;  %689 = vadd.xlane.f32.xlu1 %v4618_v35  ;;  %691 = vadd.xlane.f32.xlu0 %v4621_v36 }
 0x1a5   : > { %v586_v61 = vmul.f32 0.01, %v504_v18  ;;  %v4638_v33 = vadd.f32 %v616_v24, %v4477_v41 }
 0x1a6   : > { %v585_v37 = vmul.f32 0.01, %v499_v21  ;;  %v3299_v63 = vpop.f32.mrb[20].mxu0  ;;  %v4631_v38 = vadd.f32 %v615_v20, %v4472_v40 }
 0x1a7   : > { %v514_v31 = vadd.f32 %v3299_v63, %v4545_v60  ;;  %v508_v0 = vpop.f32.mrb[21].mxu0  ;;  %v618_v39 = vmax.f32 %v504_v18, %v586_v61 }
 0x1a8   : > { %v617_v26 = vmax.f32 %v499_v21, %v585_v37  ;;  %v509_v1 = vadd.f32 %v508_v0, %v4545_v60  ;;  %693 = vadd.xlane.f32.xlu1 %v4628_v9  ;;  %695 = vadd.xlane.f32.xlu0 %v4631_v38 }
 0x1a9   : > { %v588_v2 = vmul.f32 0.01, %v514_v31  ;;  %v4648_v41 = vadd.f32 %v618_v39, %v4485_v43 }
 0x1aa   : > { %v587_v3 = vmul.f32 0.01, %v509_v1  ;;  %v3302_v4 = vpop.f32.mrb[22].mxu0  ;;  %v4641_v40 = vadd.f32 %v617_v26, %v4480_v42 }
 0x1ab   : > { %v524_v5 = vadd.f32 %v3302_v4, %v4545_v60  ;;  %v518_v6 = vpop.f32.mrb[23].mxu0  ;;  %v620_v11 = vmax.f32 %v514_v31, %v588_v2 }
 0x1ac   : > { %v619_v7 = vmax.f32 %v509_v1, %v587_v3  ;;  %v519_v8 = vadd.f32 %v518_v6, %v4545_v60  ;;  %697 = vadd.xlane.f32.xlu1 %v4638_v33  ;;  %699 = vadd.xlane.f32.xlu0 %v4641_v40 }
 0x1ad   : > { %v590_v12 = vmul.f32 0.01, %v524_v5  ;;  %v4658_v20 = vadd.f32 %v620_v11, %v4493_v45 }
 0x1ae   : > { %v589_v14 = vmul.f32 0.01, %v519_v8  ;;  %v3305_v15 = vpop.f32.mrb[24].mxu0  ;;  %v4651_v42 = vadd.f32 %v619_v7, %v4488_v44 }
 0x1af   : > { %v534_v16 = vadd.f32 %v3305_v15, %v4545_v60  ;;  %v528_v17 = vpop.f32.mrb[25].mxu0  ;;  %v622_v21 = vmax.f32 %v524_v5, %v590_v12 }
 0x1b0   : > { %v621_v18 = vmax.f32 %v519_v8, %v589_v14  ;;  %v529_v19 = vadd.f32 %v528_v17, %v4545_v60  ;;  %701 = vadd.xlane.f32.xlu1 %v4648_v41  ;;  %703 = vadd.xlane.f32.xlu0 %v4651_v42 }
 0x1b1   : > { %v592_v24 = vmul.f32 0.01, %v534_v16  ;;  %v4668_v39 = vadd.f32 %v622_v21, %v4501_v47 }
 0x1b2   : > { %v591_v43 = vmul.f32 0.01, %v529_v19  ;;  %v3308_v61 = vpop.f32.mrb[26].mxu0  ;;  %v4661_v44 = vadd.f32 %v621_v18, %v4496_v46 }
 0x1b3   : > { %v544_v37 = vadd.f32 %v3308_v61, %v4545_v60  ;;  %v538_v63 = vpop.f32.mrb[27].mxu0  ;;  %v624_v45 = vmax.f32 %v534_v16, %v592_v24 }
 0x1b4   : > { %v623_v31 = vmax.f32 %v529_v19, %v591_v43  ;;  %v539_v0 = vadd.f32 %v538_v63, %v4545_v60  ;;  %705 = vadd.xlane.f32.xlu1 %v4658_v20  ;;  %707 = vadd.xlane.f32.xlu0 %v4661_v44  ;;  %v1091_v63 = vld [vmem:[#allocation5 + $0x90] sm:$0xff] }
 0x1b5   : > { %v594_v26 = vmul.f32 0.01, %v544_v37  ;;  %v4678_v47 = vadd.f32 %v624_v45, %v4509_v49 }
 0x1b6   : > { %v593_v1 = vmul.f32 0.01, %v539_v0  ;;  %v3311_v2 = vpop.f32.mrb[28].mxu0  ;;  %v4671_v46 = vadd.f32 %v623_v31, %v4504_v48 }
 0x1b7   : > { %v554_v3 = vadd.f32 %v3311_v2, %v4545_v60  ;;  %v548_v4 = vpop.f32.mrb[29].mxu0  ;;  %v626_v7 = vmax.f32 %v544_v37, %v594_v26  ;;  %v1090_v37 = vld [vmem:[#allocation5 + $0x88] sm:$0xff] }
 0x1b8   : > { %v625_v5 = vmax.f32 %v539_v0, %v593_v1  ;;  %v549_v6 = vadd.f32 %v548_v4, %v4545_v60  ;;  %709 = vadd.xlane.f32.xlu1 %v4668_v39  ;;  %711 = vadd.xlane.f32.xlu0 %v4671_v46  ;;  %v1092_v0 = vld [vmem:[#allocation5 + $0x98] sm:$0xff] }
 0x1b9   : > { %v596_v8 = vmul.f32 0.01, %v554_v3  ;;  %v4688_v18 = vadd.f32 %v626_v7, %v4517_v51  ;;  %v3591_v26 = vpack.c.bf16 %v1092_v0, %v1091_v63 }
 0x1ba   : > { %v595_v11 = vmul.f32 0.01, %v549_v6  ;;  %v3314_v12 = vpop.f32.mrb[30].mxu0  ;;  %v4681_v48 = vadd.f32 %v625_v5, %v4512_v50 }
 0x1bb   : > { %v564_v14 = vadd.f32 %v3314_v12, %v4545_v60  ;;  %v558_v15 = vpop.f32.mrb[31].mxu0  ;;  %v628_v19 = vmax.f32 %v554_v3, %v596_v8 }
 0x1bc   : > { %v627_v16 = vmax.f32 %v549_v6, %v595_v11  ;;  %v559_v17 = vadd.f32 %v558_v15, %v4545_v60  ;;  %713 = vadd.xlane.f32.xlu1 %v4678_v47  ;;  %715 = vadd.xlane.f32.xlu0 %v4681_v48 }
 0x1bd   : > { %v598_v21 = vmul.f32 0.01, %v564_v14  ;;  %v4696_v60 = vadd.f32 %v628_v19, %v4525_v53 }
 0x1be   : > { %v597_v49 = vmul.f32 0.01, %v559_v17  ;;  %v4691_v24 = vadd.f32 %v627_v16, %v4520_v52  ;;  %v1089_v52 = vld [vmem:[#allocation5 + $0x80] sm:$0xff] }
 0x1bf   : > { %v630_v43 = vmax.f32 %v564_v14, %v598_v21  ;;  %v3587_v31 = vpack.c.bf16 %v1090_v37, %v1089_v52 }
 0x1c0   : > { %v629_v50 = vmax.f32 %v559_v17, %v597_v49  ;;  %717 = vadd.xlane.f32.xlu1 %v4688_v18  ;;  %719 = vadd.xlane.f32.xlu0 %v4691_v24 }
 0x1c1   : > { %v4704_v51 = vadd.f32 %v630_v43, %v4533_v55  ;;  %3588 = vmatprep.subr.bf16.mxu1 %v3587_v31 }
 0x1c2   : > { %v4699_v61 = vadd.f32 %v629_v50, %v4528_v54  ;;  %3590 = vmatpush3.bf16.msra.mxu1 %v3587_v31 }
 0x1c3   : > { %3592 = vmatprep.subr.bf16.mxu1 %v3591_v26 }
 0x1c4   : > { %721 = vadd.xlane.f32.xlu1 %v4696_v60  ;;  %723 = vadd.xlane.f32.xlu0 %v4699_v61 }
 0x1c6   : > { %3594 = vmatpush3.bf16.msra.mxu1 %v3591_v26  ;;  %v1094_v26 = vld [vmem:[#allocation5 + $0xa8] sm:$0xff] }
 0x1c8   : > { %725 = vadd.xlane.f32.xlu1 %v4704_v51 }
 0x215   : > { %v664_v53 = vpop.xlane.xlu0 %663 }
 0x216   : > { %v728_v54 = vmul.f32 0.0078125, %v664_v53 }
 0x218   : > { %v4708_v45 = vsub.f32 %v4552_v13, %v728_v54 }
 0x219   : > { %v668_v1 = vpop.xlane.xlu1 %667  ;;  %v666_v55 = vpop.xlane.xlu0 %665 }
 0x21a   : > { %v730_v2 = vmul.f32 0.0078125, %v668_v1  ;;  %v729_v3 = vmul.f32 0.0078125, %v666_v55  ;;  %v792_v4 = vmul.f32 %v4708_v45, %v4708_v45 }
 0x21c   : > { %824 = vadd.xlane.f32.xlu0 %v792_v4  ;;  %v4713_v5 = vsub.f32 %v4558_v22, %v730_v2  ;;  %v4716_v6 = vsub.f32 %v4561_v23, %v729_v3 }
 0x21d   : > { %v670_v7 = vpop.xlane.xlu1 %669  ;;  %v672_v8 = vpop.xlane.xlu0 %671 }
 0x21e   : > { %v731_v11 = vmul.f32 0.0078125, %v670_v7  ;;  %v732_v12 = vmul.f32 0.0078125, %v672_v8  ;;  %v794_v13 = vmul.f32 %v4713_v5, %v4713_v5  ;;  %v793_v14 = vmul.f32 %v4716_v6, %v4716_v6 }
 0x220   : > { %828 = vadd.xlane.f32.xlu0 %v794_v13  ;;  %826 = vadd.xlane.f32.xlu1 %v793_v14  ;;  %v4723_v15 = vsub.f32 %v4568_v62, %v731_v11  ;;  %v4726_v22 = vsub.f32 %v4571_v25, %v732_v12  ;;  %v1095_v11 = vld [vmem:[#allocation5 + $0xb0] sm:$0xff]  ;;  %v1096_v12 = vld [vmem:[#allocation5 + $0xb8] sm:$0xff] }
 0x221   : > { %v674_v23 = vpop.xlane.xlu1 %673  ;;  %v676_v16 = vpop.xlane.xlu0 %675 }
 0x222   : > { %v733_v17 = vmul.f32 0.0078125, %v674_v23  ;;  %v734_v19 = vmul.f32 0.0078125, %v676_v16  ;;  %v795_v21 = vmul.f32 %v4723_v15, %v4723_v15  ;;  %v796_v49 = vmul.f32 %v4726_v22, %v4726_v22 }
 0x224   : > { %830 = vadd.xlane.f32.xlu1 %v795_v21  ;;  %832 = vadd.xlane.f32.xlu0 %v796_v49  ;;  %v4733_v50 = vsub.f32 %v4578_v10, %v733_v17  ;;  %v4736_v62 = vsub.f32 %v4581_v28, %v734_v19  ;;  %v1093_v28 = vld [vmem:[#allocation5 + $0xa0] sm:$0xff]  ;;  %v3599_v17 = vpack.c.bf16 %v1096_v12, %v1095_v11  ;;  %v1102_v12 = vld [vmem:[#allocation5 + $0xe8] sm:$0xff] }
 0x225   : > { %v678_v25 = vpop.xlane.xlu1 %677  ;;  %v680_v43 = vpop.xlane.xlu0 %679  ;;  %v3595_v1 = vpack.c.bf16 %v1094_v26, %v1093_v28  ;;  %v1097_v49 = vld [vmem:[#allocation5 + $0xc0] sm:$0xff] }
 0x226   : > { %v735_v52 = vmul.f32 0.0078125, %v678_v25  ;;  %v736_v37 = vmul.f32 0.0078125, %v680_v43  ;;  %v797_v63 = vmul.f32 %v4733_v50, %v4733_v50  ;;  %v798_v31 = vmul.f32 %v4736_v62, %v4736_v62  ;;  %v1098_v25 = vld [vmem:[#allocation5 + $0xc8] sm:$0xff]  ;;  %v1101_v11 = vld [vmem:[#allocation5 + $0xe0] sm:$0xff] }
 0x227   : > { %3596 = vmatprep.subr.bf16.mxu1 %v3595_v1 }
 0x228   : > { %834 = vadd.xlane.f32.xlu1 %v797_v63  ;;  %836 = vadd.xlane.f32.xlu0 %v798_v31  ;;  %v4743_v0 = vsub.f32 %v4588_v29, %v735_v52  ;;  %v4746_v10 = vsub.f32 %v4591_v30, %v736_v37  ;;  %v3603_v31 = vpack.c.bf16 %v1098_v25, %v1097_v49  ;;  %v1103_v49 = vld [vmem:[#allocation5 + $0xf0] sm:$0xff]  ;;  %v1104_v25 = vld [vmem:[#allocation5 + $0xf8] sm:$0xff] }
 0x229   : > { %v682_v53 = vpop.xlane.xlu1 %681  ;;  %v684_v54 = vpop.xlane.xlu0 %683  ;;  %3598 = vmatpush3.bf16.msra.mxu1 %v3595_v1 }
 0x22a   : > { %v737_v55 = vmul.f32 0.0078125, %v682_v53  ;;  %v738_v2 = vmul.f32 0.0078125, %v684_v54  ;;  %v799_v3 = vmul.f32 %v4743_v0, %v4743_v0  ;;  %v800_v4 = vmul.f32 %v4746_v10, %v4746_v10  ;;  %3600 = vmatprep.subr.bf16.mxu1 %v3599_v17  ;;  %v1099_v53 = vld [vmem:[#allocation5 + $0xd0] sm:$0xff]  ;;  %v1100_v54 = vld [vmem:[#allocation5 + $0xd8] sm:$0xff] }
 0x22c   : > { %838 = vadd.xlane.f32.xlu1 %v799_v3  ;;  %840 = vadd.xlane.f32.xlu0 %v800_v4  ;;  %v4753_v29 = vsub.f32 %v4598_v56, %v737_v55  ;;  %v4756_v30 = vsub.f32 %v4601_v32, %v738_v2  ;;  %v3607_v4 = vpack.c.bf16 %v1100_v54, %v1099_v53 }
 0x22d   : > { %v686_v7 = vpop.xlane.xlu1 %685  ;;  %v688_v8 = vpop.xlane.xlu0 %687  ;;  %3602 = vmatpush3.bf16.msra.mxu1 %v3599_v17  ;;  %v3611_v17 = vpack.c.bf16 %v1102_v12, %v1101_v11 }
 0x22e   : > { %v739_v13 = vmul.f32 0.0078125, %v686_v7  ;;  %v740_v14 = vmul.f32 0.0078125, %v688_v8  ;;  %v801_v23 = vmul.f32 %v4753_v29, %v4753_v29  ;;  %v802_v16 = vmul.f32 %v4756_v30, %v4756_v30  ;;  %3604 = vmatprep.subr.bf16.mxu1 %v3603_v31 }
 0x230   : > { %842 = vadd.xlane.f32.xlu1 %v801_v23  ;;  %844 = vadd.xlane.f32.xlu0 %v802_v16  ;;  %v4763_v56 = vsub.f32 %v4608_v27, %v739_v13  ;;  %v4766_v32 = vsub.f32 %v4611_v34, %v740_v14 }
 0x231   : > { %v690_v19 = vpop.xlane.xlu1 %689  ;;  %v692_v21 = vpop.xlane.xlu0 %691  ;;  %3606 = vmatpush3.bf16.msra.mxu1 %v3603_v31  ;;  %v3615_v31 = vpack.c.bf16 %v1104_v25, %v1103_v49 }
 0x232   : > { %v741_v43 = vmul.f32 0.0078125, %v690_v19  ;;  %v742_v52 = vmul.f32 0.0078125, %v692_v21  ;;  %v803_v37 = vmul.f32 %v4763_v56, %v4763_v56  ;;  %v804_v63 = vmul.f32 %v4766_v32, %v4766_v32  ;;  %3608 = vmatprep.subr.bf16.mxu1 %v3607_v4 }
 0x234   : > { %846 = vadd.xlane.f32.xlu1 %v803_v37  ;;  %848 = vadd.xlane.f32.xlu0 %v804_v63  ;;  %v4773_v27 = vsub.f32 %v4618_v35, %v741_v43  ;;  %v4776_v34 = vsub.f32 %v4621_v36, %v742_v52 }
 0x235   : > { %v694_v28 = vpop.xlane.xlu1 %693  ;;  %v696_v26 = vpop.xlane.xlu0 %695  ;;  %3610 = vmatpush3.bf16.msra.mxu1 %v3607_v4 }
 0x236   : > { %v743_v1 = vmul.f32 0.0078125, %v694_v28  ;;  %v744_v55 = vmul.f32 0.0078125, %v696_v26  ;;  %v805_v2 = vmul.f32 %v4773_v27, %v4773_v27  ;;  %v806_v3 = vmul.f32 %v4776_v34, %v4776_v34  ;;  %3612 = vmatprep.subr.bf16.mxu1 %v3611_v17 }
 0x238   : > { %850 = vadd.xlane.f32.xlu1 %v805_v2  ;;  %852 = vadd.xlane.f32.xlu0 %v806_v3  ;;  %v4783_v35 = vsub.f32 %v4628_v9, %v743_v1  ;;  %v4786_v36 = vsub.f32 %v4631_v38, %v744_v55 }
 0x239   : > { %v698_v7 = vpop.xlane.xlu1 %697  ;;  %v700_v8 = vpop.xlane.xlu0 %699  ;;  %3614 = vmatpush3.bf16.msra.mxu1 %v3611_v17 }
 0x23a   : > { %v745_v13 = vmul.f32 0.0078125, %v698_v7  ;;  %v746_v14 = vmul.f32 0.0078125, %v700_v8  ;;  %v807_v23 = vmul.f32 %v4783_v35, %v4783_v35  ;;  %v808_v16 = vmul.f32 %v4786_v36, %v4786_v36  ;;  %3616 = vmatprep.subr.bf16.mxu1 %v3615_v31 }
 0x23c   : > { %854 = vadd.xlane.f32.xlu1 %v807_v23  ;;  %856 = vadd.xlane.f32.xlu0 %v808_v16  ;;  %v4793_v9 = vsub.f32 %v4638_v33, %v745_v13  ;;  %v4796_v38 = vsub.f32 %v4641_v40, %v746_v14 }
 0x23d   : > { %v702_v19 = vpop.xlane.xlu1 %701  ;;  %v704_v21 = vpop.xlane.xlu0 %703  ;;  %3618 = vmatpush3.bf16.msra.mxu1 %v3615_v31 }
 0x23e   : > { %v747_v43 = vmul.f32 0.0078125, %v702_v19  ;;  %v748_v52 = vmul.f32 0.0078125, %v704_v21  ;;  %v809_v37 = vmul.f32 %v4793_v9, %v4793_v9  ;;  %v810_v63 = vmul.f32 %v4796_v38, %v4796_v38 }
 0x240   : > { %858 = vadd.xlane.f32.xlu1 %v809_v37  ;;  %860 = vadd.xlane.f32.xlu0 %v810_v63  ;;  %v4803_v33 = vsub.f32 %v4648_v41, %v747_v43  ;;  %v4806_v40 = vsub.f32 %v4651_v42, %v748_v52 }
 0x241   : > { %v706_v28 = vpop.xlane.xlu1 %705  ;;  %v708_v26 = vpop.xlane.xlu0 %707 }
 0x242   : > { %v749_v53 = vmul.f32 0.0078125, %v706_v28  ;;  %v750_v54 = vmul.f32 0.0078125, %v708_v26  ;;  %v811_v1 = vmul.f32 %v4803_v33, %v4803_v33  ;;  %v812_v55 = vmul.f32 %v4806_v40, %v4806_v40 }
 0x244   : > { %862 = vadd.xlane.f32.xlu1 %v811_v1  ;;  %864 = vadd.xlane.f32.xlu0 %v812_v55  ;;  %v4813_v41 = vsub.f32 %v4658_v20, %v749_v53  ;;  %v4816_v42 = vsub.f32 %v4661_v44, %v750_v54 }
 0x245   : > { %v710_v2 = vpop.xlane.xlu1 %709  ;;  %v712_v3 = vpop.xlane.xlu0 %711 }
 0x246   : > { %v751_v4 = vmul.f32 0.0078125, %v710_v2  ;;  %v752_v7 = vmul.f32 0.0078125, %v712_v3  ;;  %v813_v8 = vmul.f32 %v4813_v41, %v4813_v41  ;;  %v814_v11 = vmul.f32 %v4816_v42, %v4816_v42 }
 0x248   : > { %866 = vadd.xlane.f32.xlu1 %v813_v8  ;;  %868 = vadd.xlane.f32.xlu0 %v814_v11  ;;  %v4823_v12 = vsub.f32 %v4668_v39, %v751_v4  ;;  %v4826_v20 = vsub.f32 %v4671_v46, %v752_v7 }
 0x249   : > { %v714_v44 = vpop.xlane.xlu1 %713  ;;  %v716_v13 = vpop.xlane.xlu0 %715 }
 0x24a   : > { %v753_v14 = vmul.f32 0.0078125, %v714_v44  ;;  %v754_v23 = vmul.f32 0.0078125, %v716_v13  ;;  %v815_v16 = vmul.f32 %v4823_v12, %v4823_v12  ;;  %v816_v17 = vmul.f32 %v4826_v20, %v4826_v20 }
 0x24c   : > { %870 = vadd.xlane.f32.xlu1 %v815_v16  ;;  %872 = vadd.xlane.f32.xlu0 %v816_v17  ;;  %v4833_v19 = vsub.f32 %v4678_v47, %v753_v14  ;;  %v4836_v39 = vsub.f32 %v4681_v48, %v754_v23 }
 0x24d   : > { %v718_v46 = vpop.xlane.xlu1 %717  ;;  %v720_v21 = vpop.xlane.xlu0 %719 }
 0x24e   : > { %v755_v49 = vmul.f32 0.0078125, %v718_v46  ;;  %v756_v25 = vmul.f32 0.0078125, %v720_v21  ;;  %v817_v43 = vmul.f32 %v4833_v19, %v4833_v19  ;;  %v818_v52 = vmul.f32 %v4836_v39, %v4836_v39 }
 0x24f   : > { %v4868_v21 = vsub.s32 1, %v4536_v57 }
 0x250   : > { %874 = vadd.xlane.f32.xlu1 %v817_v43  ;;  %876 = vadd.xlane.f32.xlu0 %v818_v52  ;;  %v4843_v37 = vsub.f32 %v4688_v18, %v755_v49  ;;  %v4846_v47 = vsub.f32 %v4691_v24, %v756_v25 }
 0x251   : > { %v722_v48 = vpop.xlane.xlu1 %721  ;;  %v724_v63 = vpop.xlane.xlu0 %723 }
 0x252   : > { %v757_v31 = vmul.f32 0.0078125, %v722_v48  ;;  %v758_v28 = vmul.f32 0.0078125, %v724_v63  ;;  %v819_v26 = vmul.f32 %v4843_v37, %v4843_v37  ;;  %v820_v53 = vmul.f32 %v4846_v47, %v4846_v47 }
 0x253   : > { %v4871_v48 = vsub.s32 2, %v4536_v57 }
 0x254   : > { %878 = vadd.xlane.f32.xlu1 %v819_v26  ;;  %880 = vadd.xlane.f32.xlu0 %v820_v53  ;;  %v4853_v54 = vsub.f32 %v4696_v60, %v757_v31  ;;  %v4856_v18 = vsub.f32 %v4699_v61, %v758_v28  ;;  %v4875_v28 = vrot.slane %v4541_v59, %v4868_v21 }
 0x255   : > { %v726_v24 = vpop.xlane.xlu1 %725 }
 0x256   : > { %v759_v1 = vmul.f32 0.0078125, %v726_v24  ;;  %v821_v55 = vmul.f32 %v4853_v54, %v4853_v54  ;;  %v822_v2 = vmul.f32 %v4856_v18, %v4856_v18 }
 0x258   : > { %882 = vadd.xlane.f32.xlu1 %v821_v55  ;;  %884 = vadd.xlane.f32.xlu0 %v822_v2  ;;  %v4863_v3 = vsub.f32 %v4704_v51, %v759_v1 }
 0x25a   : > { %v823_v60 = vmul.f32 %v4863_v3, %v4863_v3 }
 0x25c   : > { %886 = vadd.xlane.f32.xlu1 %v823_v60  ;;  %v4880_v60 = vrot.slane %v4541_v59, %v4871_v48 }
 0x2a9   : > { %v825_v4 = vpop.xlane.xlu0 %824 }
 0x2aa   : > { %v888_v61 = vmul.f32 0.0078125, %v825_v4 }
 0x2ac   : > { %v920_v7 = vadd.f32 1e-05, %v888_v61 }
 0x2ad   : > { %v827_v8 = vpop.xlane.xlu1 %826  ;;  %v829_v11 = vpop.xlane.xlu0 %828 }
 0x2ae   : > { %3766 = vrsqrt.f32 %v920_v7  ;;  %v889_v44 = vmul.f32 0.0078125, %v827_v8  ;;  %v890_v13 = vmul.f32 0.0078125, %v829_v11 }
 0x2b0   : > { %v921_v14 = vadd.f32 1e-05, %v889_v44  ;;  %v922_v23 = vadd.f32 1e-05, %v890_v13 }
 0x2b1   : > { %v831_v16 = vpop.xlane.xlu1 %830  ;;  %v833_v17 = vpop.xlane.xlu0 %832 }
 0x2b2   : > { %3768 = vrsqrt.f32 %v921_v14  ;;  %v891_v46 = vmul.f32 0.0078125, %v831_v16  ;;  %v892_v51 = vmul.f32 0.0078125, %v833_v17 }
 0x2b3   : > { %3770 = vrsqrt.f32 %v922_v23 }
 0x2b4   : > { %v923_v49 = vadd.f32 1e-05, %v891_v46  ;;  %v924_v25 = vadd.f32 1e-05, %v892_v51 }
 0x2b5   : > { %v835_v43 = vpop.xlane.xlu1 %834  ;;  %v837_v52 = vpop.xlane.xlu0 %836 }
 0x2b6   : > { %3772 = vrsqrt.f32 %v923_v49  ;;  %v893_v63 = vmul.f32 0.0078125, %v835_v43  ;;  %v894_v31 = vmul.f32 0.0078125, %v837_v52 }
 0x2b7   : > { %3774 = vrsqrt.f32 %v924_v25 }
 0x2b8   : > { %v3767_v26 = vpop.eup %3766  ;;  %v925_v53 = vadd.f32 1e-05, %v893_v63  ;;  %v926_v24 = vadd.f32 1e-05, %v894_v31 }
 0x2b9   : > { %v839_v1 = vpop.xlane.xlu1 %838  ;;  %v841_v55 = vpop.xlane.xlu0 %840  ;;  %v984_v2 = vmul.f32 %v3767_v26, %v4708_v45 }
 0x2ba   : > { %3776 = vrsqrt.f32 %v925_v53  ;;  %v895_v57 = vmul.f32 0.0078125, %v839_v1  ;;  %v896_v4 = vmul.f32 0.0078125, %v841_v55 }
 0x2bb   : > { %3778 = vrsqrt.f32 %v926_v24  ;;  %v1020_v61 = vmul.f32 %v4875_v28, %v984_v2 }
 0x2bc   : > { %v3769_v7 = vpop.eup %3768  ;;  %v927_v8 = vadd.f32 1e-05, %v895_v57  ;;  %v928_v11 = vadd.f32 1e-05, %v896_v4 }
 0x2bd   : > { %v3771_v44 = vpop.eup %3770  ;;  %v843_v13 = vpop.xlane.xlu1 %842  ;;  %v4884_v23 = vadd.f32 %v4880_v60, %v1020_v61  ;;  %v985_v45 = vmul.f32 %v3769_v7, %v4716_v6 }
 0x2be   : > { %v845_v14 = vpop.xlane.xlu0 %844  ;;  %3780 = vrsqrt.f32 %v927_v8  ;;  %v897_v59 = vmul.f32 0.0078125, %v843_v13  ;;  %v986_v17 = vmul.f32 %v3771_v44, %v4713_v5 }
 0x2bf   : > { %v898_v16 = vmul.f32 0.0078125, %v845_v14  ;;  %3782 = vrsqrt.f32 %v928_v11  ;;  %3347 = vmatprep.mubr.f32.mxu1 %v4884_v23  ;;  %v1021_v46 = vmul.f32 %v4875_v28, %v985_v45 }
 0x2c0   : > { %v3773_v51 = vpop.eup %3772  ;;  %v929_v49 = vadd.f32 1e-05, %v897_v59  ;;  %v1022_v43 = vmul.f32 %v4875_v28, %v986_v17 }
 0x2c1   : > { %v930_v25 = vadd.f32 1e-05, %v898_v16  ;;  %v3775_v52 = vpop.eup %3774  ;;  %v847_v63 = vpop.xlane.xlu1 %846  ;;  %v4892_v6 = vadd.f32 %v4880_v60, %v1021_v46  ;;  %v987_v26 = vmul.f32 %v3773_v51, %v4723_v15 }
 0x2c2   : > { %v849_v31 = vpop.xlane.xlu0 %848  ;;  %3784 = vrsqrt.f32 %v929_v49  ;;  %v899_v5 = vmul.f32 0.0078125, %v847_v63  ;;  %v4896_v24 = vadd.f32 %v4880_v60, %v1022_v43  ;;  %v988_v55 = vmul.f32 %v3775_v52, %v4726_v22 }
 0x2c3   : > { %v900_v53 = vmul.f32 0.0078125, %v849_v31  ;;  %3786 = vrsqrt.f32 %v930_v25  ;;  %3348 = vmatmul.mubr.f32.vlgmr.msra.gmra.mrb[0].mxu1 %v4892_v6  ;;  %v1023_v1 = vmul.f32 %v4875_v28, %v987_v26 }
 0x2c4   : > { %v3777_v2 = vpop.eup %3776  ;;  %v931_v57 = vadd.f32 1e-05, %v899_v5  ;;  %3350 = vmatprep.mubr.f32.mxu1 %v4896_v24  ;;  %v1024_v11 = vmul.f32 %v4875_v28, %v988_v55 }
 0x2c5   : > { %v932_v4 = vadd.f32 1e-05, %v900_v53  ;;  %v3779_v61 = vpop.eup %3778  ;;  %v851_v15 = vpop.xlane.xlu1 %850  ;;  %v4903_v8 = vadd.f32 %v4880_v60, %v1023_v1  ;;  %v989_v44 = vmul.f32 %v3777_v2, %v4733_v50 }
 0x2c6   : > { %v853_v7 = vpop.xlane.xlu0 %852  ;;  %3788 = vrsqrt.f32 %v931_v57  ;;  %v901_v13 = vmul.f32 0.0078125, %v851_v15  ;;  %v990_v22 = vmul.f32 %v3779_v61, %v4736_v62  ;;  %v4910_v45 = vadd.f32 %v4880_v60, %v1024_v11 }
 0x2c7   : > { %v902_v14 = vmul.f32 0.0078125, %v853_v7  ;;  %3790 = vrsqrt.f32 %v932_v4  ;;  %3351 = vmatmul.mubr.f32.gmra.mrb[2].mxu1 %v4903_v8  ;;  %v1025_v59 = vmul.f32 %v4875_v28, %v989_v44 }
 0x2c8   : > { %v3781_v16 = vpop.eup %3780  ;;  %v933_v17 = vadd.f32 1e-05, %v901_v13  ;;  %v1026_v51 = vmul.f32 %v4875_v28, %v990_v22  ;;  %3353 = vmatprep.mubr.f32.mxu1 %v4910_v45 }
 0x2c9   : > { %v934_v46 = vadd.f32 1e-05, %v902_v14  ;;  %v3783_v49 = vpop.eup %3782  ;;  %v855_v50 = vpop.xlane.xlu1 %854  ;;  %v4916_v62 = vadd.f32 %v4880_v60, %v1025_v59  ;;  %v991_v43 = vmul.f32 %v3781_v16, %v4743_v0 }
 0x2ca   : > { %v857_v25 = vpop.xlane.xlu0 %856  ;;  %3792 = vrsqrt.f32 %v933_v17  ;;  %v903_v52 = vmul.f32 0.0078125, %v855_v50  ;;  %v4920_v31 = vadd.f32 %v4880_v60, %v1026_v51  ;;  %v992_v5 = vmul.f32 %v3783_v49, %v4746_v10 }
 0x2cb   : > { %v904_v63 = vmul.f32 0.0078125, %v857_v25  ;;  %3794 = vrsqrt.f32 %v934_v46  ;;  %3354 = vmatmul.mubr.f32.gmra.mrb[4].mxu1 %v4916_v62  ;;  %v1027_v26 = vmul.f32 %v4875_v28, %v991_v43 }
 0x2cc   : > { %v3785_v53 = vpop.eup %3784  ;;  %v935_v1 = vadd.f32 1e-05, %v903_v52  ;;  %3356 = vmatprep.mubr.f32.mxu1 %v4920_v31  ;;  %v1028_v61 = vmul.f32 %v4875_v28, %v992_v5 }
 0x2cd   : > { %v936_v55 = vadd.f32 1e-05, %v904_v63  ;;  %v3787_v2 = vpop.eup %3786  ;;  %v859_v0 = vpop.xlane.xlu1 %858  ;;  %v4927_v4 = vadd.f32 %v4880_v60, %v1027_v26  ;;  %v993_v15 = vmul.f32 %v3785_v53, %v4753_v29 }
 0x2ce   : > { %v861_v57 = vpop.xlane.xlu0 %860  ;;  %3796 = vrsqrt.f32 %v935_v1  ;;  %v905_v7 = vmul.f32 0.0078125, %v859_v0  ;;  %v994_v10 = vmul.f32 %v3787_v2, %v4756_v30  ;;  %v4934_v44 = vadd.f32 %v4880_v60, %v1028_v61 }
 0x2cf   : > { %v906_v11 = vmul.f32 0.0078125, %v861_v57  ;;  %3798 = vrsqrt.f32 %v936_v55  ;;  %3357 = vmatmul.mubr.f32.gmra.mrb[6].mxu1 %v4927_v4  ;;  %v1029_v13 = vmul.f32 %v4875_v28, %v993_v15 }
 0x2d0   : > { %v3789_v14 = vpop.eup %3788  ;;  %v937_v22 = vadd.f32 1e-05, %v905_v7  ;;  %v1030_v16 = vmul.f32 %v4875_v28, %v994_v10  ;;  %3359 = vmatprep.mubr.f32.mxu1 %v4934_v44 }
 0x2d1   : > { %v938_v59 = vadd.f32 1e-05, %v906_v11  ;;  %v3791_v17 = vpop.eup %3790  ;;  %v863_v29 = vpop.xlane.xlu1 %862  ;;  %v4940_v30 = vadd.f32 %v4880_v60, %v1029_v13  ;;  %v995_v51 = vmul.f32 %v3789_v14, %v4763_v56 }
 0x2d2   : > { %v865_v46 = vpop.xlane.xlu0 %864  ;;  %3800 = vrsqrt.f32 %v937_v22  ;;  %v907_v49 = vmul.f32 0.0078125, %v863_v29  ;;  %v4944_v25 = vadd.f32 %v4880_v60, %v1030_v16  ;;  %v996_v52 = vmul.f32 %v3791_v17, %v4766_v32 }
 0x2d3   : > { %v908_v50 = vmul.f32 0.0078125, %v865_v46  ;;  %3802 = vrsqrt.f32 %v938_v59  ;;  %3360 = vmatmul.mubr.f32.gmra.mrb[8].mxu1 %v4940_v30  ;;  %v1031_v43 = vmul.f32 %v4875_v28, %v995_v51 }
 0x2d4   : > { %v3793_v63 = vpop.eup %3792  ;;  %v939_v26 = vadd.f32 1e-05, %v907_v49  ;;  %3362 = vmatprep.mubr.f32.mxu1 %v4944_v25  ;;  %v1032_v2 = vmul.f32 %v4875_v28, %v996_v52 }
 0x2d5   : > { %v940_v5 = vadd.f32 1e-05, %v908_v50  ;;  %v3795_v53 = vpop.eup %3794  ;;  %v867_v56 = vpop.xlane.xlu1 %866  ;;  %v4951_v55 = vadd.f32 %v4880_v60, %v1031_v43  ;;  %v997_v0 = vmul.f32 %v3793_v63, %v4773_v27 }
 0x2d6   : > { %v869_v1 = vpop.xlane.xlu0 %868  ;;  %3804 = vrsqrt.f32 %v939_v26  ;;  %v909_v57 = vmul.f32 0.0078125, %v867_v56  ;;  %v998_v32 = vmul.f32 %v3795_v53, %v4776_v34  ;;  %v4958_v15 = vadd.f32 %v4880_v60, %v1032_v2 }
 0x2d7   : > { %v910_v61 = vmul.f32 0.0078125, %v869_v1  ;;  %3806 = vrsqrt.f32 %v940_v5  ;;  %3363 = vmatmul.mubr.f32.gmra.mrb[10].mxu1 %v4951_v55  ;;  %v1033_v7 = vmul.f32 %v4875_v28, %v997_v0 }
 0x2d8   : > { %v3797_v11 = vpop.eup %3796  ;;  %v941_v10 = vadd.f32 1e-05, %v909_v57  ;;  %v1034_v14 = vmul.f32 %v4875_v28, %v998_v32  ;;  %3365 = vmatprep.mubr.f32.mxu1 %v4958_v15 }
 0x2d9   : > { %v942_v13 = vadd.f32 1e-05, %v910_v61  ;;  %v3799_v22 = vpop.eup %3798  ;;  %v871_v27 = vpop.xlane.xlu1 %870  ;;  %v4964_v34 = vadd.f32 %v4880_v60, %v1033_v7  ;;  %v999_v16 = vmul.f32 %v3797_v11, %v4783_v35 }
 0x2da   : > { %v873_v59 = vpop.xlane.xlu0 %872  ;;  %3808 = vrsqrt.f32 %v941_v10  ;;  %v911_v17 = vmul.f32 0.0078125, %v871_v27  ;;  %v4968_v46 = vadd.f32 %v4880_v60, %v1034_v14  ;;  %v1000_v49 = vmul.f32 %v3799_v22, %v4786_v36 }
 0x2db   : > { %v912_v29 = vmul.f32 0.0078125, %v873_v59  ;;  %3810 = vrsqrt.f32 %v942_v13  ;;  %3366 = vmatmul.mubr.f32.gmra.mrb[12].mxu1 %v4964_v34  ;;  %v1035_v51 = vmul.f32 %v4875_v28, %v999_v16 }
 0x2dc   : > { %v3801_v50 = vpop.eup %3800  ;;  %v943_v43 = vadd.f32 1e-05, %v911_v17  ;;  %3368 = vmatprep.mubr.f32.mxu1 %v4968_v46  ;;  %v1036_v53 = vmul.f32 %v4875_v28, %v1000_v49 }
 0x2dd   : > { %v944_v52 = vadd.f32 1e-05, %v912_v29  ;;  %v3803_v63 = vpop.eup %3802  ;;  %v875_v35 = vpop.xlane.xlu1 %874  ;;  %v4975_v5 = vadd.f32 %v4880_v60, %v1035_v51  ;;  %v1001_v56 = vmul.f32 %v3801_v50, %v4793_v9 }
 0x2de   : > { %v877_v26 = vpop.xlane.xlu0 %876  ;;  %3812 = vrsqrt.f32 %v943_v43  ;;  %v913_v1 = vmul.f32 0.0078125, %v875_v35  ;;  %v1002_v36 = vmul.f32 %v3803_v63, %v4796_v38  ;;  %v4982_v0 = vadd.f32 %v4880_v60, %v1036_v53 }
 0x2df   : > { %v914_v2 = vmul.f32 0.0078125, %v877_v26  ;;  %3814 = vrsqrt.f32 %v944_v52  ;;  %3369 = vmatmul.mubr.f32.gmra.mrb[14].mxu1 %v4975_v5  ;;  %v1037_v57 = vmul.f32 %v4875_v28, %v1001_v56 }
 0x2e0   : > { %v3805_v61 = vpop.eup %3804  ;;  %v945_v32 = vadd.f32 1e-05, %v913_v1  ;;  %v1038_v11 = vmul.f32 %v4875_v28, %v1002_v36  ;;  %3371 = vmatprep.mubr.f32.mxu1 %v4982_v0 }
 0x2e1   : > { %v946_v7 = vadd.f32 1e-05, %v914_v2  ;;  %v3807_v10 = vpop.eup %3806  ;;  %v879_v9 = vpop.xlane.xlu1 %878  ;;  %v4988_v38 = vadd.f32 %v4880_v60, %v1037_v57  ;;  %v1003_v14 = vmul.f32 %v3805_v61, %v4803_v33 }
 0x2e2   : > { %v881_v13 = vpop.xlane.xlu0 %880  ;;  %3816 = vrsqrt.f32 %v945_v32  ;;  %v915_v22 = vmul.f32 0.0078125, %v879_v9  ;;  %v4992_v59 = vadd.f32 %v4880_v60, %v1038_v11  ;;  %v1004_v17 = vmul.f32 %v3807_v10, %v4806_v40 }
 0x2e3   : > { %v916_v27 = vmul.f32 0.0078125, %v881_v13  ;;  %3818 = vrsqrt.f32 %v946_v7  ;;  %3372 = vmatmul.mubr.f32.gmra.mrb[16].mxu1 %v4988_v38  ;;  %v1039_v16 = vmul.f32 %v4875_v28, %v1003_v14 }
 0x2e4   : > { %v3809_v29 = vpop.eup %3808  ;;  %v947_v51 = vadd.f32 1e-05, %v915_v22  ;;  %3374 = vmatprep.mubr.f32.mxu1 %v4992_v59  ;;  %v1040_v63 = vmul.f32 %v4875_v28, %v1004_v17 }
 0x2e5   : > { %v948_v49 = vadd.f32 1e-05, %v916_v27  ;;  %v3811_v50 = vpop.eup %3810  ;;  %v883_v33 = vpop.xlane.xlu1 %882  ;;  %v4999_v52 = vadd.f32 %v4880_v60, %v1039_v16  ;;  %v1005_v35 = vmul.f32 %v3809_v29, %v4813_v41 }
 0x2e6   : > { %v885_v43 = vpop.xlane.xlu0 %884  ;;  %3820 = vrsqrt.f32 %v947_v51  ;;  %v917_v26 = vmul.f32 0.0078125, %v883_v33  ;;  %v1006_v40 = vmul.f32 %v3811_v50, %v4816_v42  ;;  %v5006_v56 = vadd.f32 %v4880_v60, %v1040_v63 }
 0x2e7   : > { %v918_v53 = vmul.f32 0.0078125, %v885_v43  ;;  %3822 = vrsqrt.f32 %v948_v49  ;;  %3375 = vmatmul.mubr.f32.gmra.mrb[18].mxu1 %v4999_v52  ;;  %v1041_v1 = vmul.f32 %v4875_v28, %v1005_v35 }
 0x2e8   : > { %v3813_v2 = vpop.eup %3812  ;;  %v949_v36 = vadd.f32 1e-05, %v917_v26  ;;  %v1042_v61 = vmul.f32 %v4875_v28, %v1006_v40  ;;  %3377 = vmatprep.mubr.f32.mxu1 %v5006_v56 }
 0x2e9   : > { %v950_v57 = vadd.f32 1e-05, %v918_v53  ;;  %v3815_v32 = vpop.eup %3814  ;;  %v887_v41 = vpop.xlane.xlu1 %886  ;;  %v5012_v7 = vadd.f32 %v4880_v60, %v1041_v1  ;;  %v1007_v42 = vmul.f32 %v3813_v2, %v4823_v12 }
 0x2ea   : > { %3824 = vrsqrt.f32 %v949_v36  ;;  %v919_v11 = vmul.f32 0.0078125, %v887_v41  ;;  %v5016_v10 = vadd.f32 %v4880_v60, %v1042_v61  ;;  %v1008_v9 = vmul.f32 %v3815_v32, %v4826_v20 }
 0x2eb   : > { %3826 = vrsqrt.f32 %v950_v57  ;;  %3378 = vmatmul.mubr.f32.gmra.mrb[20].mxu1 %v5012_v7  ;;  %v1043_v13 = vmul.f32 %v4875_v28, %v1007_v42 }
 0x2ec   : > { %v3817_v14 = vpop.eup %3816  ;;  %v951_v22 = vadd.f32 1e-05, %v919_v11  ;;  %3380 = vmatprep.mubr.f32.mxu1 %v5016_v10  ;;  %v1044_v27 = vmul.f32 %v4875_v28, %v1008_v9  ;;  %v5073_v11 = vld [vmem:[#allocation7 + $0x4] sm:$0x7] }
 0x2ed   : > { %v3819_v16 = vpop.eup %3818  ;;  %v5024_v12 = vadd.f32 %v4880_v60, %v1043_v13  ;;  %v1009_v17 = vmul.f32 %v3817_v14, %v4833_v19  ;;  %v5077_v9 = vrot.slane %v5073_v11, %v4539_v58 }
 0x2ee   : > { %3828 = vrsqrt.f32 %v951_v22  ;;  %v5028_v20 = vadd.f32 %v4880_v60, %v1044_v27  ;;  %v1010_v29 = vmul.f32 %v3819_v16, %v4836_v39 }
 0x2ef   : > { %3381 = vmatmul.mubr.f32.gmra.mrb[22].mxu1 %v5024_v12  ;;  %v1045_v51 = vmul.f32 %v4875_v28, %v1009_v17 }
 0x2f0   : > { %v3821_v49 = vpop.eup %3820  ;;  %3383 = vmatprep.mubr.f32.mxu1 %v5028_v20  ;;  %v1046_v50 = vmul.f32 %v4875_v28, %v1010_v29 }
 0x2f1   : > { %v3823_v33 = vpop.eup %3822  ;;  %v5036_v43 = vadd.f32 %v4880_v60, %v1045_v51  ;;  %v1011_v19 = vmul.f32 %v3821_v49, %v4843_v37 }
 0x2f2   : > { %v5040_v63 = vadd.f32 %v4880_v60, %v1046_v50  ;;  %v1012_v39 = vmul.f32 %v3823_v33, %v4846_v47 }
 0x2f3   : > { %3384 = vmatmul.mubr.f32.gmra.mrb[24].mxu1 %v5036_v43  ;;  %v1047_v35 = vmul.f32 %v4875_v28, %v1011_v19 }
 0x2f4   : > { %v3825_v26 = vpop.eup %3824  ;;  %3386 = vmatprep.mubr.f32.mxu1 %v5040_v63  ;;  %v1048_v53 = vmul.f32 %v4875_v28, %v1012_v39 }
 0x2f5   : > { %v3827_v40 = vpop.eup %3826  ;;  %v5048_v1 = vadd.f32 %v4880_v60, %v1047_v35  ;;  %v1013_v37 = vmul.f32 %v3825_v26, %v4853_v54 }
 0x2f6   : > { %v5052_v2 = vadd.f32 %v4880_v60, %v1048_v53  ;;  %v1014_v47 = vmul.f32 %v3827_v40, %v4856_v18 }
 0x2f7   : > { %3387 = vmatmul.mubr.f32.gmra.mrb[26].mxu1 %v5048_v1  ;;  %v1049_v36 = vmul.f32 %v4875_v28, %v1013_v37 }
 0x2f8   : > { %v3829_v57 = vpop.eup %3828  ;;  %3389 = vmatprep.mubr.f32.mxu1 %v5052_v2  ;;  %v1050_v61 = vmul.f32 %v4875_v28, %v1014_v47 }
 0x2f9   : > { %v5060_v32 = vadd.f32 %v4880_v60, %v1049_v36  ;;  %v1015_v41 = vmul.f32 %v3829_v57, %v4863_v3 }
 0x2fa   : > { %v5064_v54 = vadd.f32 %v4880_v60, %v1050_v61 }
 0x2fb   : > { %3390 = vmatmul.mubr.f32.gmra.mrb[28].mxu1 %v5060_v32  ;;  %v1051_v18 = vmul.f32 %v4875_v28, %v1015_v41 }
 0x2fc   : > { %3392 = vmatprep.mubr.f32.mxu1 %v5064_v54 }
 0x2fd   : > { %v5070_v42 = vadd.f32 %v4880_v60, %v1051_v18 }
 0x2ff   : > { %3393 = vmatmul.mubr.f32.gmra.mrb[30].mxu1 %v5070_v42 }
 0x396   : > { %v3349_v3 = vpop.f32.mrb[0].mxu1 }
 0x397   : > { %v1183_v13 = vadd.f32 %v3349_v3, %v5077_v9  ;;  %v1177_v14 = vpop.f32.mrb[1].mxu1 }
 0x398   : > { %v1178_v22 = vadd.f32 %v1177_v14, %v5077_v9 }
 0x399   : > { %v1337_v28 = vmul.f32 0.01, %v1183_v13 }
 0x39a   : > { %v1336_v27 = vmul.f32 0.01, %v1178_v22  ;;  %v3352_v16 = vpop.f32.mrb[2].mxu1 }
 0x39b   : > { %v1369_v17 = vmax.f32 %v1183_v13, %v1337_v28  ;;  %v1193_v60 = vadd.f32 %v3352_v16, %v5077_v9  ;;  %v1187_v29 = vpop.f32.mrb[3].mxu1 }
 0x39c   : > { %v1368_v51 = vmax.f32 %v1178_v22, %v1336_v27  ;;  %v1188_v49 = vadd.f32 %v1187_v29, %v5077_v9 }
 0x39d   : > { %v1339_v50 = vmul.f32 0.01, %v1193_v60  ;;  %v5084_v33 = vadd.f32 %v1369_v17, %v4892_v6 }
 0x39e   : > { %v1338_v19 = vmul.f32 0.01, %v1188_v49  ;;  %v3355_v39 = vpop.f32.mrb[4].mxu1  ;;  %v5087_v35 = vadd.f32 %v1368_v51, %v4884_v23 }
 0x39f   : > { %v1371_v26 = vmax.f32 %v1193_v60, %v1339_v50  ;;  %v1203_v53 = vadd.f32 %v3355_v39, %v5077_v9  ;;  %1434 = vadd.xlane.f32.xlu1 %v5084_v33  ;;  %v1197_v40 = vpop.f32.mrb[5].mxu1 }
 0x3a0   : > { %v1370_v37 = vmax.f32 %v1188_v49, %v1338_v19  ;;  %v1198_v47 = vadd.f32 %v1197_v40, %v5077_v9  ;;  %1432 = vadd.xlane.f32.xlu0 %v5087_v35 }
 0x3a1   : > { %v1341_v36 = vmul.f32 0.01, %v1203_v53  ;;  %v5094_v6 = vadd.f32 %v1371_v26, %v4903_v8 }
 0x3a2   : > { %v1340_v57 = vmul.f32 0.01, %v1198_v47  ;;  %v3358_v61 = vpop.f32.mrb[6].mxu1  ;;  %v5097_v23 = vadd.f32 %v1370_v37, %v4896_v24 }
 0x3a3   : > { %v1373_v41 = vmax.f32 %v1203_v53, %v1341_v36  ;;  %v1213_v18 = vadd.f32 %v3358_v61, %v5077_v9  ;;  %1438 = vadd.xlane.f32.xlu1 %v5094_v6  ;;  %v1207_v3 = vpop.f32.mrb[7].mxu1 }
 0x3a4   : > { %v1372_v13 = vmax.f32 %v1198_v47, %v1340_v57  ;;  %v1208_v14 = vadd.f32 %v1207_v3, %v5077_v9  ;;  %1436 = vadd.xlane.f32.xlu0 %v5097_v23 }
 0x3a5   : > { %v1343_v22 = vmul.f32 0.01, %v1213_v18  ;;  %v5104_v8 = vadd.f32 %v1373_v41, %v4916_v62 }
 0x3a6   : > { %v1342_v28 = vmul.f32 0.01, %v1208_v14  ;;  %v3361_v27 = vpop.f32.mrb[8].mxu1  ;;  %v5107_v24 = vadd.f32 %v1372_v13, %v4910_v45 }
 0x3a7   : > { %v1375_v16 = vmax.f32 %v1213_v18, %v1343_v22  ;;  %v1223_v17 = vadd.f32 %v3361_v27, %v5077_v9  ;;  %1442 = vadd.xlane.f32.xlu1 %v5104_v8  ;;  %v1217_v60 = vpop.f32.mrb[9].mxu1 }
 0x3a8   : > { %v1374_v29 = vmax.f32 %v1208_v14, %v1342_v28  ;;  %v1218_v51 = vadd.f32 %v1217_v60, %v5077_v9  ;;  %1440 = vadd.xlane.f32.xlu0 %v5107_v24 }
 0x3a9   : > { %v1345_v49 = vmul.f32 0.01, %v1223_v17  ;;  %v5114_v62 = vadd.f32 %v1375_v16, %v4927_v4 }
 0x3aa   : > { %v1344_v50 = vmul.f32 0.01, %v1218_v51  ;;  %v3364_v19 = vpop.f32.mrb[10].mxu1  ;;  %v5117_v45 = vadd.f32 %v1374_v29, %v4920_v31 }
 0x3ab   : > { %v1377_v39 = vmax.f32 %v1223_v17, %v1345_v49  ;;  %v1233_v26 = vadd.f32 %v3364_v19, %v5077_v9  ;;  %1446 = vadd.xlane.f32.xlu1 %v5114_v62  ;;  %v1227_v53 = vpop.f32.mrb[11].mxu1 }
 0x3ac   : > { %v1376_v40 = vmax.f32 %v1218_v51, %v1344_v50  ;;  %v1228_v37 = vadd.f32 %v1227_v53, %v5077_v9  ;;  %1444 = vadd.xlane.f32.xlu0 %v5117_v45 }
 0x3ad   : > { %v1347_v47 = vmul.f32 0.01, %v1233_v26  ;;  %v5124_v4 = vadd.f32 %v1377_v39, %v4940_v30 }
 0x3ae   : > { %v1346_v36 = vmul.f32 0.01, %v1228_v37  ;;  %v3367_v57 = vpop.f32.mrb[12].mxu1  ;;  %v5127_v31 = vadd.f32 %v1376_v40, %v4934_v44 }
 0x3af   : > { %v1379_v61 = vmax.f32 %v1233_v26, %v1347_v47  ;;  %v1243_v41 = vadd.f32 %v3367_v57, %v5077_v9  ;;  %1450 = vadd.xlane.f32.xlu1 %v5124_v4  ;;  %v1237_v18 = vpop.f32.mrb[13].mxu1 }
 0x3b0   : > { %v1378_v3 = vmax.f32 %v1228_v37, %v1346_v36  ;;  %v1238_v13 = vadd.f32 %v1237_v18, %v5077_v9  ;;  %1448 = vadd.xlane.f32.xlu0 %v5127_v31 }
 0x3b1   : > { %v1349_v14 = vmul.f32 0.01, %v1243_v41  ;;  %v5134_v30 = vadd.f32 %v1379_v61, %v4951_v55 }
 0x3b2   : > { %v1348_v22 = vmul.f32 0.01, %v1238_v13  ;;  %v3370_v28 = vpop.f32.mrb[14].mxu1  ;;  %v5137_v44 = vadd.f32 %v1378_v3, %v4944_v25 }
 0x3b3   : > { %v1381_v27 = vmax.f32 %v1243_v41, %v1349_v14  ;;  %v1253_v16 = vadd.f32 %v3370_v28, %v5077_v9  ;;  %1454 = vadd.xlane.f32.xlu1 %v5134_v30  ;;  %v1247_v17 = vpop.f32.mrb[15].mxu1 }
 0x3b4   : > { %v1380_v60 = vmax.f32 %v1238_v13, %v1348_v22  ;;  %v1248_v29 = vadd.f32 %v1247_v17, %v5077_v9  ;;  %1452 = vadd.xlane.f32.xlu0 %v5137_v44 }
 0x3b5   : > { %v1351_v51 = vmul.f32 0.01, %v1253_v16  ;;  %v5144_v55 = vadd.f32 %v1381_v27, %v4964_v34 }
 0x3b6   : > { %v1350_v49 = vmul.f32 0.01, %v1248_v29  ;;  %v3373_v50 = vpop.f32.mrb[16].mxu1  ;;  %v5147_v25 = vadd.f32 %v1380_v60, %v4958_v15 }
 0x3b7   : > { %v1383_v19 = vmax.f32 %v1253_v16, %v1351_v51  ;;  %v1263_v39 = vadd.f32 %v3373_v50, %v5077_v9  ;;  %1458 = vadd.xlane.f32.xlu1 %v5144_v55  ;;  %v1257_v26 = vpop.f32.mrb[17].mxu1 }
 0x3b8   : > { %v1382_v53 = vmax.f32 %v1248_v29, %v1350_v49  ;;  %v1258_v40 = vadd.f32 %v1257_v26, %v5077_v9  ;;  %1456 = vadd.xlane.f32.xlu0 %v5147_v25 }
 0x3b9   : > { %v1353_v37 = vmul.f32 0.01, %v1263_v39  ;;  %v5154_v34 = vadd.f32 %v1383_v19, %v4975_v5 }
 0x3ba   : > { %v1352_v47 = vmul.f32 0.01, %v1258_v40  ;;  %v3376_v36 = vpop.f32.mrb[18].mxu1  ;;  %v5157_v15 = vadd.f32 %v1382_v53, %v4968_v46 }
 0x3bb   : > { %v1385_v57 = vmax.f32 %v1263_v39, %v1353_v37  ;;  %v1273_v61 = vadd.f32 %v3376_v36, %v5077_v9  ;;  %1462 = vadd.xlane.f32.xlu1 %v5154_v34  ;;  %v1267_v41 = vpop.f32.mrb[19].mxu1 }
 0x3bc   : > { %v1384_v18 = vmax.f32 %v1258_v40, %v1352_v47  ;;  %v1268_v3 = vadd.f32 %v1267_v41, %v5077_v9  ;;  %1460 = vadd.xlane.f32.xlu0 %v5157_v15 }
 0x3bd   : > { %v1355_v13 = vmul.f32 0.01, %v1273_v61  ;;  %v5164_v5 = vadd.f32 %v1385_v57, %v4988_v38 }
 0x3be   : > { %v1354_v14 = vmul.f32 0.01, %v1268_v3  ;;  %v3379_v22 = vpop.f32.mrb[20].mxu1  ;;  %v5167_v46 = vadd.f32 %v1384_v18, %v4982_v0 }
 0x3bf   : > { %v1387_v28 = vmax.f32 %v1273_v61, %v1355_v13  ;;  %v1283_v27 = vadd.f32 %v3379_v22, %v5077_v9  ;;  %1466 = vadd.xlane.f32.xlu1 %v5164_v5  ;;  %v1277_v16 = vpop.f32.mrb[21].mxu1 }
 0x3c0   : > { %v1386_v17 = vmax.f32 %v1268_v3, %v1354_v14  ;;  %v1278_v60 = vadd.f32 %v1277_v16, %v5077_v9  ;;  %1464 = vadd.xlane.f32.xlu0 %v5167_v46 }
 0x3c1   : > { %v1357_v29 = vmul.f32 0.01, %v1283_v27  ;;  %v5174_v38 = vadd.f32 %v1387_v28, %v4999_v52 }
 0x3c2   : > { %v1356_v51 = vmul.f32 0.01, %v1278_v60  ;;  %v3382_v49 = vpop.f32.mrb[22].mxu1  ;;  %v5177_v0 = vadd.f32 %v1386_v17, %v4992_v59 }
 0x3c3   : > { %v1389_v50 = vmax.f32 %v1283_v27, %v1357_v29  ;;  %v1293_v19 = vadd.f32 %v3382_v49, %v5077_v9  ;;  %1470 = vadd.xlane.f32.xlu1 %v5174_v38  ;;  %v1287_v39 = vpop.f32.mrb[23].mxu1 }
 0x3c4   : > { %v1388_v26 = vmax.f32 %v1278_v60, %v1356_v51  ;;  %v1288_v53 = vadd.f32 %v1287_v39, %v5077_v9  ;;  %1468 = vadd.xlane.f32.xlu0 %v5177_v0 }
 0x3c5   : > { %v1359_v40 = vmul.f32 0.01, %v1293_v19  ;;  %v5184_v52 = vadd.f32 %v1389_v50, %v5012_v7 }
 0x3c6   : > { %v1358_v37 = vmul.f32 0.01, %v1288_v53  ;;  %v3385_v47 = vpop.f32.mrb[24].mxu1  ;;  %v5187_v59 = vadd.f32 %v1388_v26, %v5006_v56 }
 0x3c7   : > { %v1391_v36 = vmax.f32 %v1293_v19, %v1359_v40  ;;  %v1303_v57 = vadd.f32 %v3385_v47, %v5077_v9  ;;  %1474 = vadd.xlane.f32.xlu1 %v5184_v52  ;;  %v1297_v61 = vpop.f32.mrb[25].mxu1 }
 0x3c8   : > { %v1390_v41 = vmax.f32 %v1288_v53, %v1358_v37  ;;  %v1298_v18 = vadd.f32 %v1297_v61, %v5077_v9  ;;  %1472 = vadd.xlane.f32.xlu0 %v5187_v59 }
 0x3c9   : > { %v1361_v3 = vmul.f32 0.01, %v1303_v57  ;;  %v5194_v7 = vadd.f32 %v1391_v36, %v5024_v12 }
 0x3ca   : > { %v1360_v13 = vmul.f32 0.01, %v1298_v18  ;;  %v3388_v14 = vpop.f32.mrb[26].mxu1  ;;  %v5197_v56 = vadd.f32 %v1390_v41, %v5016_v10 }
 0x3cb   : > { %v1393_v22 = vmax.f32 %v1303_v57, %v1361_v3  ;;  %v1313_v28 = vadd.f32 %v3388_v14, %v5077_v9  ;;  %1478 = vadd.xlane.f32.xlu1 %v5194_v7  ;;  %v1307_v27 = vpop.f32.mrb[27].mxu1 }
 0x3cc   : > { %v1392_v16 = vmax.f32 %v1298_v18, %v1360_v13  ;;  %v1308_v17 = vadd.f32 %v1307_v27, %v5077_v9  ;;  %1476 = vadd.xlane.f32.xlu0 %v5197_v56 }
 0x3cd   : > { %v1363_v60 = vmul.f32 0.01, %v1313_v28  ;;  %v5204_v12 = vadd.f32 %v1393_v22, %v5036_v43 }
 0x3ce   : > { %v1362_v29 = vmul.f32 0.01, %v1308_v17  ;;  %v3391_v51 = vpop.f32.mrb[28].mxu1  ;;  %v5207_v10 = vadd.f32 %v1392_v16, %v5028_v20  ;;  %v1860_v16 = vld [vmem:[#allocation5 + $0x118] sm:$0xff] }
 0x3cf   : > { %v1395_v49 = vmax.f32 %v1313_v28, %v1363_v60  ;;  %v1323_v50 = vadd.f32 %v3391_v51, %v5077_v9  ;;  %1482 = vadd.xlane.f32.xlu1 %v5204_v12  ;;  %v1317_v19 = vpop.f32.mrb[29].mxu1  ;;  %v1858_v28 = vld [vmem:[#allocation5 + $0x108] sm:$0xff]  ;;  %v1861_v60 = vld [vmem:[#allocation5 + $0x120] sm:$0xff]  ;;  %v1863_v51 = vld [vmem:[#allocation5 + $0x130] sm:$0xff] }
 0x3d0   : > { %v1394_v39 = vmax.f32 %v1308_v17, %v1362_v29  ;;  %v1318_v26 = vadd.f32 %v1317_v19, %v5077_v9  ;;  %1480 = vadd.xlane.f32.xlu0 %v5207_v10  ;;  %v1862_v29 = vld [vmem:[#allocation5 + $0x128] sm:$0xff] }
 0x3d1   : > { %v1365_v53 = vmul.f32 0.01, %v1323_v50  ;;  %v5214_v43 = vadd.f32 %v1395_v49, %v5048_v1  ;;  %v1864_v49 = vld [vmem:[#allocation5 + $0x138] sm:$0xff]  ;;  %v1866_v19 = vld [vmem:[#allocation5 + $0x148] sm:$0xff] }
 0x3d2   : > { %v1364_v40 = vmul.f32 0.01, %v1318_v26  ;;  %v3394_v37 = vpop.f32.mrb[30].mxu1  ;;  %v5217_v20 = vadd.f32 %v1394_v39, %v5040_v63 }
 0x3d3   : > { %v1397_v47 = vmax.f32 %v1323_v50, %v1365_v53  ;;  %v1333_v36 = vadd.f32 %v3394_v37, %v5077_v9  ;;  %1486 = vadd.xlane.f32.xlu1 %v5214_v43  ;;  %v1327_v57 = vpop.f32.mrb[31].mxu1  ;;  %v1865_v50 = vld [vmem:[#allocation5 + $0x140] sm:$0xff]  ;;  %v1868_v53 = vld [vmem:[#allocation5 + $0x158] sm:$0xff] }
 0x3d4   : > { %v1396_v61 = vmax.f32 %v1318_v26, %v1364_v40  ;;  %v1328_v41 = vadd.f32 %v1327_v57, %v5077_v9  ;;  %1484 = vadd.xlane.f32.xlu0 %v5217_v20  ;;  %v3635_v39 = vpack.c.bf16 %v1866_v19, %v1865_v50  ;;  %v1867_v26 = vld [vmem:[#allocation5 + $0x150] sm:$0xff] }
 0x3d5   : > { %v1367_v18 = vmul.f32 0.01, %v1333_v36  ;;  %v5224_v1 = vadd.f32 %v1397_v47, %v5060_v32  ;;  %v1857_v32 = vld [vmem:[#allocation5 + $0x100] sm:$0xff]  ;;  %v3639_v40 = vpack.c.bf16 %v1868_v53, %v1867_v26 }
 0x3d6   : > { %v1366_v3 = vmul.f32 0.01, %v1328_v41  ;;  %v5227_v13 = vadd.f32 %v1396_v61, %v5052_v2  ;;  %v1859_v2 = vld [vmem:[#allocation5 + $0x110] sm:$0xff]  ;;  %v3619_v27 = vpack.c.bf16 %v1858_v28, %v1857_v32 }
 0x3d7   : > { %v1399_v63 = vmax.f32 %v1333_v36, %v1367_v18  ;;  %1490 = vadd.xlane.f32.xlu1 %v5224_v1  ;;  %v3623_v17 = vpack.c.bf16 %v1860_v16, %v1859_v2 }
 0x3d8   : > { %v1398_v14 = vmax.f32 %v1328_v41, %v1366_v3  ;;  %1488 = vadd.xlane.f32.xlu0 %v5227_v13  ;;  %3620 = vmatprep.subr.bf16.mxu0 %v3619_v27 }
 0x3d9   : > { %v5232_v22 = vadd.f32 %v1399_v63, %v5070_v42  ;;  %3622 = vmatpush3.bf16.msra.mxu0 %v3619_v27  ;;  %v3627_v42 = vpack.c.bf16 %v1862_v29, %v1861_v60 }
 0x3da   : > { %v5235_v9 = vadd.f32 %v1398_v14, %v5064_v54  ;;  %3624 = vmatprep.subr.bf16.mxu0 %v3623_v17  ;;  %v3631_v54 = vpack.c.bf16 %v1864_v49, %v1863_v51 }
 0x3db   : > { %1494 = vadd.xlane.f32.xlu1 %v5232_v22 }
 0x3dc   : > { %1492 = vadd.xlane.f32.xlu0 %v5235_v9 }
 0x3dd   : > { %3626 = vmatpush3.bf16.msra.mxu0 %v3623_v17 }
 0x3de   : > { %3628 = vmatprep.subr.bf16.mxu0 %v3627_v42 }
 0x3e1   : > { %3630 = vmatpush3.bf16.msra.mxu0 %v3627_v42 }
 0x3e2   : > { %3632 = vmatprep.subr.bf16.mxu0 %v3631_v54 }
 0x3e5   : > { %3634 = vmatpush3.bf16.msra.mxu0 %v3631_v54 }
 0x3e6   : > { %3636 = vmatprep.subr.bf16.mxu0 %v3635_v39 }
 0x3e9   : > { %3638 = vmatpush3.bf16.msra.mxu0 %v3635_v39 }
 0x3ea   : > { %3640 = vmatprep.subr.bf16.mxu0 %v3639_v40 }
 0x3ed   : > { %3642 = vmatpush3.bf16.msra.mxu0 %v3639_v40 }
 0x42c   : > { %v1435_v37 = vpop.xlane.xlu1 %1434 }
 0x42d   : > { %v1497_v47 = vmul.f32 0.0078125, %v1435_v37  ;;  %v1433_v36 = vpop.xlane.xlu0 %1432 }
 0x42e   : > { %v1496_v57 = vmul.f32 0.0078125, %v1433_v36 }
 0x42f   : > { %v5240_v61 = vsub.f32 %v5084_v33, %v1497_v47 }
 0x430   : > { %v1439_v41 = vpop.xlane.xlu1 %1438  ;;  %v5243_v18 = vsub.f32 %v5087_v35, %v1496_v57 }
 0x431   : > { %v1499_v3 = vmul.f32 0.0078125, %v1439_v41  ;;  %v1437_v63 = vpop.xlane.xlu0 %1436  ;;  %v1561_v14 = vmul.f32 %v5240_v61, %v5240_v61 }
 0x432   : > { %v1498_v32 = vmul.f32 0.0078125, %v1437_v63  ;;  %v1560_v28 = vmul.f32 %v5243_v18, %v5243_v18 }
 0x433   : > { %v5250_v2 = vsub.f32 %v5094_v6, %v1499_v3  ;;  %1594 = vadd.xlane.f32.xlu1 %v1561_v14 }
 0x434   : > { %v5253_v33 = vsub.f32 %v5097_v23, %v1498_v32  ;;  %v1443_v27 = vpop.xlane.xlu1 %1442  ;;  %1592 = vadd.xlane.f32.xlu0 %v1560_v28 }
 0x435   : > { %v1501_v35 = vmul.f32 0.0078125, %v1443_v27  ;;  %v1441_v16 = vpop.xlane.xlu0 %1440  ;;  %v1563_v17 = vmul.f32 %v5250_v2, %v5250_v2 }
 0x436   : > { %v1500_v60 = vmul.f32 0.0078125, %v1441_v16  ;;  %v1562_v29 = vmul.f32 %v5253_v33, %v5253_v33 }
 0x437   : > { %v5260_v42 = vsub.f32 %v5104_v8, %v1501_v35  ;;  %1598 = vadd.xlane.f32.xlu1 %v1563_v17 }
 0x438   : > { %v5263_v6 = vsub.f32 %v5107_v24, %v1500_v60  ;;  %v1447_v23 = vpop.xlane.xlu1 %1446  ;;  %1596 = vadd.xlane.f32.xlu0 %v1562_v29 }
 0x439   : > { %v1503_v51 = vmul.f32 0.0078125, %v1447_v23  ;;  %v1445_v49 = vpop.xlane.xlu0 %1444  ;;  %v1565_v54 = vmul.f32 %v5260_v42, %v5260_v42 }
 0x43a   : > { %v1502_v50 = vmul.f32 0.0078125, %v1445_v49  ;;  %v1564_v19 = vmul.f32 %v5263_v6, %v5263_v6 }
 0x43b   : > { %v5270_v39 = vsub.f32 %v5114_v62, %v1503_v51  ;;  %1602 = vadd.xlane.f32.xlu1 %v1565_v54 }
 0x43c   : > { %v5273_v8 = vsub.f32 %v5117_v45, %v1502_v50  ;;  %v1451_v24 = vpop.xlane.xlu1 %1450  ;;  %1600 = vadd.xlane.f32.xlu0 %v1564_v19 }
 0x43d   : > { %v1505_v26 = vmul.f32 0.0078125, %v1451_v24  ;;  %v1449_v53 = vpop.xlane.xlu0 %1448  ;;  %v1567_v40 = vmul.f32 %v5270_v39, %v5270_v39 }
 0x43e   : > { %v1504_v37 = vmul.f32 0.0078125, %v1449_v53  ;;  %v1566_v47 = vmul.f32 %v5273_v8, %v5273_v8 }
 0x43f   : > { %v5280_v36 = vsub.f32 %v5124_v4, %v1505_v26  ;;  %1606 = vadd.xlane.f32.xlu1 %v1567_v40 }
 0x440   : > { %v5283_v62 = vsub.f32 %v5127_v31, %v1504_v37  ;;  %v1455_v45 = vpop.xlane.xlu1 %1454  ;;  %1604 = vadd.xlane.f32.xlu0 %v1566_v47  ;;  %v1870_v47 = vld [vmem:[#allocation5 + $0x168] sm:$0xff] }
 0x441   : > { %v1507_v57 = vmul.f32 0.0078125, %v1455_v45  ;;  %v1453_v41 = vpop.xlane.xlu0 %1452  ;;  %v1569_v3 = vmul.f32 %v5280_v36, %v5280_v36 }
 0x442   : > { %v1506_v63 = vmul.f32 0.0078125, %v1453_v41  ;;  %v1568_v14 = vmul.f32 %v5283_v62, %v5283_v62 }
 0x443   : > { %v5290_v32 = vsub.f32 %v5134_v30, %v1507_v57  ;;  %1610 = vadd.xlane.f32.xlu1 %v1569_v3 }
 0x444   : > { %v5293_v4 = vsub.f32 %v5137_v44, %v1506_v63  ;;  %v1459_v31 = vpop.xlane.xlu1 %1458  ;;  %1608 = vadd.xlane.f32.xlu0 %v1568_v14 }
 0x445   : > { %v1509_v28 = vmul.f32 0.0078125, %v1459_v31  ;;  %v1457_v27 = vpop.xlane.xlu0 %1456  ;;  %v1571_v35 = vmul.f32 %v5290_v32, %v5290_v32 }
 0x446   : > { %v1508_v16 = vmul.f32 0.0078125, %v1457_v27  ;;  %v1570_v17 = vmul.f32 %v5293_v4, %v5293_v4 }
 0x447   : > { %v5300_v60 = vsub.f32 %v5144_v55, %v1509_v28  ;;  %1614 = vadd.xlane.f32.xlu1 %v1571_v35  ;;  %v1872_v28 = vld [vmem:[#allocation5 + $0x178] sm:$0xff] }
 0x448   : > { %v5303_v30 = vsub.f32 %v5147_v25, %v1508_v16  ;;  %v1463_v44 = vpop.xlane.xlu1 %1462  ;;  %1612 = vadd.xlane.f32.xlu0 %v1570_v17 }
 0x449   : > { %v1511_v29 = vmul.f32 0.0078125, %v1463_v44  ;;  %v1461_v23 = vpop.xlane.xlu0 %1460  ;;  %v1573_v51 = vmul.f32 %v5300_v60, %v5300_v60 }
 0x44a   : > { %v1510_v49 = vmul.f32 0.0078125, %v1461_v23  ;;  %v1572_v54 = vmul.f32 %v5303_v30, %v5303_v30 }
 0x44b   : > { %v5310_v50 = vsub.f32 %v5154_v34, %v1511_v29  ;;  %1618 = vadd.xlane.f32.xlu1 %v1573_v51  ;;  %v1869_v34 = vld [vmem:[#allocation5 + $0x160] sm:$0xff] }
 0x44c   : > { %v5313_v55 = vsub.f32 %v5157_v15, %v1510_v49  ;;  %v1467_v25 = vpop.xlane.xlu1 %1466  ;;  %1616 = vadd.xlane.f32.xlu0 %v1572_v54  ;;  %v3643_v57 = vpack.c.bf16 %v1870_v47, %v1869_v34 }
 0x44d   : > { %v1513_v19 = vmul.f32 0.0078125, %v1467_v25  ;;  %v1465_v24 = vpop.xlane.xlu0 %1464  ;;  %v1575_v26 = vmul.f32 %v5310_v50, %v5310_v50 }
 0x44e   : > { %v1512_v53 = vmul.f32 0.0078125, %v1465_v24  ;;  %v1574_v40 = vmul.f32 %v5313_v55, %v5313_v55  ;;  %3644 = vmatprep.subr.bf16.mxu0 %v3643_v57 }
 0x44f   : > { %v5320_v37 = vsub.f32 %v5164_v5, %v1513_v19  ;;  %1622 = vadd.xlane.f32.xlu1 %v1575_v26  ;;  %v1871_v5 = vld [vmem:[#allocation5 + $0x170] sm:$0xff]  ;;  %3646 = vmatpush3.bf16.msra.mxu0 %v3643_v57 }
 0x450   : > { %v5323_v15 = vsub.f32 %v5167_v46, %v1512_v53  ;;  %v1471_v45 = vpop.xlane.xlu1 %1470  ;;  %1620 = vadd.xlane.f32.xlu0 %v1574_v40  ;;  %v3647_v46 = vpack.c.bf16 %v1872_v28, %v1871_v5 }
 0x451   : > { %v1515_v41 = vmul.f32 0.0078125, %v1471_v45  ;;  %v1469_v3 = vpop.xlane.xlu0 %1468  ;;  %v1577_v63 = vmul.f32 %v5320_v37, %v5320_v37 }
 0x452   : > { %v1514_v14 = vmul.f32 0.0078125, %v1469_v3  ;;  %v1576_v31 = vmul.f32 %v5323_v15, %v5323_v15  ;;  %3648 = vmatprep.subr.bf16.mxu0 %v3647_v46 }
 0x453   : > { %v5330_v27 = vsub.f32 %v5174_v38, %v1515_v41  ;;  %1626 = vadd.xlane.f32.xlu1 %v1577_v63  ;;  %3650 = vmatpush3.bf16.msra.mxu0 %v3647_v46 }
 0x454   : > { %v5333_v35 = vsub.f32 %v5177_v0, %v1514_v14  ;;  %v1475_v16 = vpop.xlane.xlu1 %1474  ;;  %1624 = vadd.xlane.f32.xlu0 %v1576_v31 }
 0x455   : > { %v1517_v17 = vmul.f32 0.0078125, %v1475_v16  ;;  %v1473_v44 = vpop.xlane.xlu0 %1472  ;;  %v1579_v29 = vmul.f32 %v5330_v27, %v5330_v27 }
 0x456   : > { %v1516_v23 = vmul.f32 0.0078125, %v1473_v44  ;;  %v1578_v51 = vmul.f32 %v5333_v35, %v5333_v35 }
 0x457   : > { %v5340_v38 = vsub.f32 %v5184_v52, %v1517_v17  ;;  %1630 = vadd.xlane.f32.xlu1 %v1579_v29 }
 0x458   : > { %v5343_v0 = vsub.f32 %v5187_v59, %v1516_v23  ;;  %v1479_v49 = vpop.xlane.xlu1 %1478  ;;  %1628 = vadd.xlane.f32.xlu0 %v1578_v51 }
 0x459   : > { %v1519_v54 = vmul.f32 0.0078125, %v1479_v49  ;;  %v1477_v25 = vpop.xlane.xlu0 %1476  ;;  %v1581_v19 = vmul.f32 %v5340_v38, %v5340_v38 }
 0x45a   : > { %v1518_v24 = vmul.f32 0.0078125, %v1477_v25  ;;  %v1580_v26 = vmul.f32 %v5343_v0, %v5343_v0 }
 0x45b   : > { %v5350_v53 = vsub.f32 %v5194_v7, %v1519_v54  ;;  %1634 = vadd.xlane.f32.xlu1 %v1581_v19 }
 0x45c   : > { %v5353_v52 = vsub.f32 %v5197_v56, %v1518_v24  ;;  %v1483_v59 = vpop.xlane.xlu1 %1482  ;;  %1632 = vadd.xlane.f32.xlu0 %v1580_v26 }
 0x45d   : > { %v1521_v40 = vmul.f32 0.0078125, %v1483_v59  ;;  %v1481_v34 = vpop.xlane.xlu0 %1480  ;;  %v1583_v47 = vmul.f32 %v5350_v53, %v5350_v53 }
 0x45e   : > { %v1520_v45 = vmul.f32 0.0078125, %v1481_v34  ;;  %v1582_v57 = vmul.f32 %v5353_v52, %v5353_v52 }
 0x45f   : > { %v5360_v41 = vsub.f32 %v5204_v12, %v1521_v40  ;;  %1638 = vadd.xlane.f32.xlu1 %v1583_v47 }
 0x460   : > { %v5363_v7 = vsub.f32 %v5207_v10, %v1520_v45  ;;  %v1487_v56 = vpop.xlane.xlu1 %1486  ;;  %1636 = vadd.xlane.f32.xlu0 %v1582_v57 }
 0x461   : > { %v1523_v3 = vmul.f32 0.0078125, %v1487_v56  ;;  %v1485_v63 = vpop.xlane.xlu0 %1484  ;;  %v1585_v14 = vmul.f32 %v5360_v41, %v5360_v41 }
 0x462   : > { %v1522_v31 = vmul.f32 0.0078125, %v1485_v63  ;;  %v1584_v5 = vmul.f32 %v5363_v7, %v5363_v7 }
 0x463   : > { %v5370_v28 = vsub.f32 %v5214_v43, %v1523_v3  ;;  %1642 = vadd.xlane.f32.xlu1 %v1585_v14 }
 0x464   : > { %v5373_v12 = vsub.f32 %v5217_v20, %v1522_v31  ;;  %v1491_v10 = vpop.xlane.xlu1 %1490  ;;  %1640 = vadd.xlane.f32.xlu0 %v1584_v5 }
 0x465   : > { %v1525_v46 = vmul.f32 0.0078125, %v1491_v10  ;;  %v1489_v16 = vpop.xlane.xlu0 %1488  ;;  %v1587_v17 = vmul.f32 %v5370_v28, %v5370_v28 }
 0x466   : > { %v1524_v44 = vmul.f32 0.0078125, %v1489_v16  ;;  %v1586_v29 = vmul.f32 %v5373_v12, %v5373_v12 }
 0x467   : > { %v5380_v23 = vsub.f32 %v5224_v1, %v1525_v46  ;;  %1646 = vadd.xlane.f32.xlu1 %v1587_v17 }
 0x468   : > { %v5383_v43 = vsub.f32 %v5227_v13, %v1524_v44  ;;  %v1495_v20 = vpop.xlane.xlu1 %1494  ;;  %1644 = vadd.xlane.f32.xlu0 %v1586_v29 }
 0x469   : > { %v1527_v51 = vmul.f32 0.0078125, %v1495_v20  ;;  %v1493_v49 = vpop.xlane.xlu0 %1492  ;;  %v1589_v54 = vmul.f32 %v5380_v23, %v5380_v23 }
 0x46a   : > { %v1526_v25 = vmul.f32 0.0078125, %v1493_v49  ;;  %v1588_v19 = vmul.f32 %v5383_v43, %v5383_v43  ;;  %v5401_v49 = vrot.slane %v5073_v11, %v4868_v21 }
 0x46b   : > { %v5390_v24 = vsub.f32 %v5232_v22, %v1527_v51  ;;  %1650 = vadd.xlane.f32.xlu1 %v1589_v54 }
 0x46c   : > { %v5393_v1 = vsub.f32 %v5235_v9, %v1526_v25  ;;  %1648 = vadd.xlane.f32.xlu0 %v1588_v19 }
 0x46d   : > { %v1591_v13 = vmul.f32 %v5390_v24, %v5390_v24 }
 0x46e   : > { %v1590_v26 = vmul.f32 %v5393_v1, %v5393_v1 }
 0x46f   : > { %1654 = vadd.xlane.f32.xlu1 %v1591_v13 }
 0x470   : > { %1652 = vadd.xlane.f32.xlu0 %v1590_v26 }
 0x4c0   : > { %v1595_v59 = vpop.xlane.xlu1 %1594 }
 0x4c1   : > { %v1657_v40 = vmul.f32 0.0078125, %v1595_v59  ;;  %v1593_v34 = vpop.xlane.xlu0 %1592 }
 0x4c2   : > { %v1656_v47 = vmul.f32 0.0078125, %v1593_v34 }
 0x4c3   : > { %v1689_v45 = vadd.f32 1e-05, %v1657_v40 }
 0x4c4   : > { %v1688_v22 = vadd.f32 1e-05, %v1656_v47  ;;  %v1599_v57 = vpop.xlane.xlu1 %1598 }
 0x4c5   : > { %3830 = vrsqrt.f32 %v1689_v45  ;;  %v1659_v56 = vmul.f32 0.0078125, %v1599_v57  ;;  %v1597_v9 = vpop.xlane.xlu0 %1596  ;;  %v5407_v45 = vrot.slane %v5073_v11, %v4871_v48 }
 0x4c6   : > { %3832 = vrsqrt.f32 %v1688_v22  ;;  %v1658_v3 = vmul.f32 0.0078125, %v1597_v9 }
 0x4c7   : > { %v1691_v63 = vadd.f32 1e-05, %v1659_v56 }
 0x4c8   : > { %v1690_v14 = vadd.f32 1e-05, %v1658_v3  ;;  %v1603_v31 = vpop.xlane.xlu1 %1602 }
 0x4c9   : > { %3834 = vrsqrt.f32 %v1691_v63  ;;  %v1661_v5 = vmul.f32 0.0078125, %v1603_v31  ;;  %v1601_v10 = vpop.xlane.xlu0 %1600 }
 0x4ca   : > { %3836 = vrsqrt.f32 %v1690_v14  ;;  %v1660_v46 = vmul.f32 0.0078125, %v1601_v10 }
 0x4cb   : > { %v1693_v16 = vadd.f32 1e-05, %v1661_v5 }
 0x4cc   : > { %v1692_v17 = vadd.f32 1e-05, %v1660_v46  ;;  %v1607_v44 = vpop.xlane.xlu1 %1606 }
 0x4cd   : > { %3838 = vrsqrt.f32 %v1693_v16  ;;  %v1663_v29 = vmul.f32 0.0078125, %v1607_v44  ;;  %v1605_v20 = vpop.xlane.xlu0 %1604 }
 0x4ce   : > { %3840 = vrsqrt.f32 %v1692_v17  ;;  %v1662_v51 = vmul.f32 0.0078125, %v1605_v20 }
 0x4cf   : > { %v3831_v54 = vpop.eup %3830  ;;  %v1695_v25 = vadd.f32 1e-05, %v1663_v29 }
 0x4d0   : > { %v3833_v19 = vpop.eup %3832  ;;  %v1753_v13 = vmul.f32 %v3831_v54, %v5240_v61  ;;  %v1694_v26 = vadd.f32 1e-05, %v1662_v51  ;;  %v1611_v59 = vpop.xlane.xlu1 %1610 }
 0x4d1   : > { %3842 = vrsqrt.f32 %v1695_v25  ;;  %v1665_v40 = vmul.f32 0.0078125, %v1611_v59  ;;  %v1609_v34 = vpop.xlane.xlu0 %1608  ;;  %v1752_v47 = vmul.f32 %v3833_v19, %v5243_v18 }
 0x4d2   : > { %3844 = vrsqrt.f32 %v1694_v26  ;;  %v1664_v22 = vmul.f32 0.0078125, %v1609_v34  ;;  %v1789_v57 = vmul.f32 %v5401_v49, %v1753_v13 }
 0x4d3   : > { %v3835_v56 = vpop.eup %3834  ;;  %v1697_v9 = vadd.f32 1e-05, %v1665_v40  ;;  %v1788_v3 = vmul.f32 %v5401_v49, %v1752_v47 }
 0x4d4   : > { %v3837_v61 = vpop.eup %3836  ;;  %v1696_v63 = vadd.f32 1e-05, %v1664_v22  ;;  %v1615_v14 = vpop.xlane.xlu1 %1614  ;;  %v1755_v31 = vmul.f32 %v3835_v56, %v5250_v2  ;;  %v5417_v16 = vadd.f32 %v5407_v45, %v1789_v57 }
 0x4d5   : > { %3846 = vrsqrt.f32 %v1697_v9  ;;  %v1667_v5 = vmul.f32 0.0078125, %v1615_v14  ;;  %v1613_v18 = vpop.xlane.xlu0 %1612  ;;  %v5413_v10 = vadd.f32 %v5407_v45, %v1788_v3  ;;  %v1754_v11 = vmul.f32 %v3837_v61, %v5253_v33 }
 0x4d6   : > { %3848 = vrsqrt.f32 %v1696_v63  ;;  %v1666_v46 = vmul.f32 0.0078125, %v1613_v18  ;;  %v1791_v17 = vmul.f32 %v5401_v49, %v1755_v31 }
 0x4d7   : > { %v3839_v44 = vpop.eup %3838  ;;  %v1699_v29 = vadd.f32 1e-05, %v1667_v5  ;;  %3427 = vmatprep.mubr.f32.mxu0 %v5413_v10  ;;  %v1790_v2 = vmul.f32 %v5401_v49, %v1754_v11 }
 0x4d8   : > { %v3841_v20 = vpop.eup %3840  ;;  %v1698_v51 = vadd.f32 1e-05, %v1666_v46  ;;  %v1619_v54 = vpop.xlane.xlu1 %1618  ;;  %3428 = vmatmul.mubr.f32.vlgmr.msra.gmra.mrb[32].mxu0 %v5417_v16  ;;  %v1757_v33 = vmul.f32 %v3839_v44, %v5260_v42  ;;  %v5429_v40 = vadd.f32 %v5407_v45, %v1791_v17 }
 0x4d9   : > { %3850 = vrsqrt.f32 %v1699_v29  ;;  %v1669_v25 = vmul.f32 0.0078125, %v1619_v54  ;;  %v1617_v19 = vpop.xlane.xlu0 %1616  ;;  %v5425_v13 = vadd.f32 %v5407_v45, %v1790_v2  ;;  %v1756_v26 = vmul.f32 %v3841_v20, %v5263_v6 }
 0x4da   : > { %3852 = vrsqrt.f32 %v1698_v51  ;;  %v1668_v59 = vmul.f32 0.0078125, %v1617_v19  ;;  %v1793_v34 = vmul.f32 %v5401_v49, %v1757_v33 }
 0x4db   : > { %v3843_v47 = vpop.eup %3842  ;;  %v1701_v22 = vadd.f32 1e-05, %v1669_v25  ;;  %3430 = vmatprep.mubr.f32.mxu0 %v5425_v13  ;;  %v1792_v42 = vmul.f32 %v5401_v49, %v1756_v26 }
 0x4dc   : > { %v3845_v57 = vpop.eup %3844  ;;  %v1700_v56 = vadd.f32 1e-05, %v1668_v59  ;;  %v1623_v9 = vpop.xlane.xlu1 %1622  ;;  %3431 = vmatmul.mubr.f32.gmra.mrb[34].mxu0 %v5429_v40  ;;  %v1759_v6 = vmul.f32 %v3843_v47, %v5270_v39  ;;  %v5441_v5 = vadd.f32 %v5407_v45, %v1793_v34 }
 0x4dd   : > { %3854 = vrsqrt.f32 %v1701_v22  ;;  %v1671_v3 = vmul.f32 0.0078125, %v1623_v9  ;;  %v1621_v61 = vpop.xlane.xlu0 %1620  ;;  %v5437_v63 = vadd.f32 %v5407_v45, %v1792_v42  ;;  %v1758_v14 = vmul.f32 %v3845_v57, %v5273_v8 }
 0x4de   : > { %3856 = vrsqrt.f32 %v1700_v56  ;;  %v1670_v31 = vmul.f32 0.0078125, %v1621_v61  ;;  %v1795_v18 = vmul.f32 %v5401_v49, %v1759_v6 }
 0x4df   : > { %v3847_v11 = vpop.eup %3846  ;;  %v1703_v46 = vadd.f32 1e-05, %v1671_v3  ;;  %3433 = vmatprep.mubr.f32.mxu0 %v5437_v63  ;;  %v1794_v39 = vmul.f32 %v5401_v49, %v1758_v14 }
 0x4e0   : > { %v3849_v17 = vpop.eup %3848  ;;  %v1702_v44 = vadd.f32 1e-05, %v1670_v31  ;;  %v1627_v29 = vpop.xlane.xlu1 %1626  ;;  %3434 = vmatmul.mubr.f32.gmra.mrb[36].mxu0 %v5441_v5  ;;  %v1761_v8 = vmul.f32 %v3847_v11, %v5280_v36  ;;  %v5453_v25 = vadd.f32 %v5407_v45, %v1795_v18 }
 0x4e1   : > { %3858 = vrsqrt.f32 %v1703_v46  ;;  %v1673_v2 = vmul.f32 0.0078125, %v1627_v29  ;;  %v1625_v20 = vpop.xlane.xlu0 %1624  ;;  %v5449_v51 = vadd.f32 %v5407_v45, %v1794_v39  ;;  %v1760_v54 = vmul.f32 %v3849_v17, %v5283_v62 }
 0x4e2   : > { %3860 = vrsqrt.f32 %v1702_v44  ;;  %v1672_v33 = vmul.f32 0.0078125, %v1625_v20  ;;  %v1797_v19 = vmul.f32 %v5401_v49, %v1761_v8 }
 0x4e3   : > { %v3851_v26 = vpop.eup %3850  ;;  %v1705_v59 = vadd.f32 1e-05, %v1673_v2  ;;  %3436 = vmatprep.mubr.f32.mxu0 %v5449_v51  ;;  %v1796_v36 = vmul.f32 %v5401_v49, %v1760_v54 }
 0x4e4   : > { %v3853_v34 = vpop.eup %3852  ;;  %v1704_v47 = vadd.f32 1e-05, %v1672_v33  ;;  %v1631_v22 = vpop.xlane.xlu1 %1630  ;;  %3437 = vmatmul.mubr.f32.gmra.mrb[38].mxu0 %v5453_v25  ;;  %v1763_v62 = vmul.f32 %v3851_v26, %v5290_v32  ;;  %v5465_v3 = vadd.f32 %v5407_v45, %v1797_v19 }
 0x4e5   : > { %3862 = vrsqrt.f32 %v1705_v59  ;;  %v1675_v42 = vmul.f32 0.0078125, %v1631_v22  ;;  %v1629_v57 = vpop.xlane.xlu0 %1628  ;;  %v5461_v56 = vadd.f32 %v5407_v45, %v1796_v36  ;;  %v1762_v9 = vmul.f32 %v3853_v34, %v5293_v4 }
 0x4e6   : > { %3864 = vrsqrt.f32 %v1704_v47  ;;  %v1674_v6 = vmul.f32 0.0078125, %v1629_v57  ;;  %v1799_v61 = vmul.f32 %v5401_v49, %v1763_v62 }
 0x4e7   : > { %v3855_v14 = vpop.eup %3854  ;;  %v1707_v31 = vadd.f32 1e-05, %v1675_v42  ;;  %3439 = vmatprep.mubr.f32.mxu0 %v5461_v56  ;;  %v1798_v32 = vmul.f32 %v5401_v49, %v1762_v9 }
 0x4e8   : > { %v3857_v18 = vpop.eup %3856  ;;  %v1706_v11 = vadd.f32 1e-05, %v1674_v6  ;;  %v1635_v46 = vpop.xlane.xlu1 %1634  ;;  %3440 = vmatmul.mubr.f32.gmra.mrb[40].mxu0 %v5465_v3  ;;  %v1765_v4 = vmul.f32 %v3855_v14, %v5300_v60  ;;  %v5477_v2 = vadd.f32 %v5407_v45, %v1799_v61 }
 0x4e9   : > { %3866 = vrsqrt.f32 %v1707_v31  ;;  %v1677_v39 = vmul.f32 0.0078125, %v1635_v46  ;;  %v1633_v17 = vpop.xlane.xlu0 %1632  ;;  %v5473_v44 = vadd.f32 %v5407_v45, %v1798_v32  ;;  %v1764_v29 = vmul.f32 %v3857_v18, %v5303_v30 }
 0x4ea   : > { %3868 = vrsqrt.f32 %v1706_v11  ;;  %v1676_v8 = vmul.f32 0.0078125, %v1633_v17  ;;  %v1801_v20 = vmul.f32 %v5401_v49, %v1765_v4 }
 0x4eb   : > { %v3859_v54 = vpop.eup %3858  ;;  %v1709_v33 = vadd.f32 1e-05, %v1677_v39  ;;  %3442 = vmatprep.mubr.f32.mxu0 %v5473_v44  ;;  %v1800_v60 = vmul.f32 %v5401_v49, %v1764_v29 }
 0x4ec   : > { %v3861_v19 = vpop.eup %3860  ;;  %v1708_v26 = vadd.f32 1e-05, %v1676_v8  ;;  %v1639_v59 = vpop.xlane.xlu1 %1638  ;;  %3443 = vmatmul.mubr.f32.gmra.mrb[42].mxu0 %v5477_v2  ;;  %v1767_v30 = vmul.f32 %v3859_v54, %v5310_v50  ;;  %v5489_v42 = vadd.f32 %v5407_v45, %v1801_v20 }
 0x4ed   : > { %3870 = vrsqrt.f32 %v1709_v33  ;;  %v1679_v36 = vmul.f32 0.0078125, %v1639_v59  ;;  %v1637_v34 = vpop.xlane.xlu0 %1636  ;;  %v5485_v47 = vadd.f32 %v5407_v45, %v1800_v60  ;;  %v1766_v22 = vmul.f32 %v3861_v19, %v5313_v55 }
 0x4ee   : > { %3872 = vrsqrt.f32 %v1708_v26  ;;  %v1678_v62 = vmul.f32 0.0078125, %v1637_v34  ;;  %v1803_v57 = vmul.f32 %v5401_v49, %v1767_v30 }
 0x4ef   : > { %v3863_v9 = vpop.eup %3862  ;;  %v1711_v6 = vadd.f32 1e-05, %v1679_v36  ;;  %3445 = vmatprep.mubr.f32.mxu0 %v5485_v47  ;;  %v1802_v50 = vmul.f32 %v5401_v49, %v1766_v22 }
 0x4f0   : > { %v3865_v61 = vpop.eup %3864  ;;  %v1710_v14 = vadd.f32 1e-05, %v1678_v62  ;;  %v1643_v31 = vpop.xlane.xlu1 %1642  ;;  %3446 = vmatmul.mubr.f32.gmra.mrb[44].mxu0 %v5489_v42  ;;  %v1769_v55 = vmul.f32 %v3863_v9, %v5320_v37  ;;  %v5501_v39 = vadd.f32 %v5407_v45, %v1803_v57 }
 0x4f1   : > { %3874 = vrsqrt.f32 %v1711_v6  ;;  %v1681_v32 = vmul.f32 0.0078125, %v1643_v31  ;;  %v1641_v18 = vpop.xlane.xlu0 %1640  ;;  %v5497_v11 = vadd.f32 %v5407_v45, %v1802_v50  ;;  %v1768_v46 = vmul.f32 %v3865_v61, %v5323_v15 }
 0x4f2   : > { %3876 = vrsqrt.f32 %v1710_v14  ;;  %v1680_v4 = vmul.f32 0.0078125, %v1641_v18  ;;  %v1805_v17 = vmul.f32 %v5401_v49, %v1769_v55 }
 0x4f3   : > { %v3867_v29 = vpop.eup %3866  ;;  %v1713_v8 = vadd.f32 1e-05, %v1681_v32  ;;  %3448 = vmatprep.mubr.f32.mxu0 %v5497_v11  ;;  %v1804_v37 = vmul.f32 %v5401_v49, %v1768_v46 }
 0x4f4   : > { %v3869_v20 = vpop.eup %3868  ;;  %v1712_v54 = vadd.f32 1e-05, %v1680_v4  ;;  %v1647_v33 = vpop.xlane.xlu1 %1646  ;;  %3449 = vmatmul.mubr.f32.gmra.mrb[46].mxu0 %v5501_v39  ;;  %v1771_v15 = vmul.f32 %v3867_v29, %v5330_v27  ;;  %v5513_v36 = vadd.f32 %v5407_v45, %v1805_v17 }
 0x4f5   : > { %3878 = vrsqrt.f32 %v1713_v8  ;;  %v1683_v60 = vmul.f32 0.0078125, %v1647_v33  ;;  %v1645_v19 = vpop.xlane.xlu0 %1644  ;;  %v5509_v26 = vadd.f32 %v5407_v45, %v1804_v37  ;;  %v1770_v59 = vmul.f32 %v3869_v20, %v5333_v35 }
 0x4f6   : > { %3880 = vrsqrt.f32 %v1712_v54  ;;  %v1682_v30 = vmul.f32 0.0078125, %v1645_v19  ;;  %v1807_v34 = vmul.f32 %v5401_v49, %v1771_v15 }
 0x4f7   : > { %v3871_v22 = vpop.eup %3870  ;;  %v1715_v62 = vadd.f32 1e-05, %v1683_v60  ;;  %3451 = vmatprep.mubr.f32.mxu0 %v5509_v26  ;;  %v1806_v27 = vmul.f32 %v5401_v49, %v1770_v59 }
 0x4f8   : > { %v3873_v57 = vpop.eup %3872  ;;  %v1714_v9 = vadd.f32 1e-05, %v1682_v30  ;;  %v1651_v6 = vpop.xlane.xlu1 %1650  ;;  %3452 = vmatmul.mubr.f32.gmra.mrb[48].mxu0 %v5513_v36  ;;  %v1773_v35 = vmul.f32 %v3871_v22, %v5340_v38  ;;  %v5525_v32 = vadd.f32 %v5407_v45, %v1807_v34 }
 0x4f9   : > { %3882 = vrsqrt.f32 %v1715_v62  ;;  %v1685_v50 = vmul.f32 0.0078125, %v1651_v6  ;;  %v1649_v61 = vpop.xlane.xlu0 %1648  ;;  %v5521_v14 = vadd.f32 %v5407_v45, %v1806_v27  ;;  %v1772_v31 = vmul.f32 %v3873_v57, %v5343_v0 }
 0x4fa   : > { %3884 = vrsqrt.f32 %v1714_v9  ;;  %v1684_v55 = vmul.f32 0.0078125, %v1649_v61  ;;  %v1809_v18 = vmul.f32 %v5401_v49, %v1773_v35 }
 0x4fb   : > { %v3875_v46 = vpop.eup %3874  ;;  %v1717_v4 = vadd.f32 1e-05, %v1685_v50  ;;  %3454 = vmatprep.mubr.f32.mxu0 %v5521_v14  ;;  %v1808_v38 = vmul.f32 %v5401_v49, %v1772_v31 }
 0x4fc   : > { %v3877_v17 = vpop.eup %3876  ;;  %v1716_v29 = vadd.f32 1e-05, %v1684_v55  ;;  %v1655_v8 = vpop.xlane.xlu1 %1654  ;;  %3455 = vmatmul.mubr.f32.gmra.mrb[50].mxu0 %v5525_v32  ;;  %v1775_v0 = vmul.f32 %v3875_v46, %v5350_v53  ;;  %v5537_v60 = vadd.f32 %v5407_v45, %v1809_v18 }
 0x4fd   : > { %3886 = vrsqrt.f32 %v1717_v4  ;;  %v1687_v37 = vmul.f32 0.0078125, %v1655_v8  ;;  %v1653_v20 = vpop.xlane.xlu0 %1652  ;;  %v5533_v54 = vadd.f32 %v5407_v45, %v1808_v38  ;;  %v1774_v33 = vmul.f32 %v3877_v17, %v5353_v52 }
 0x4fe   : > { %3888 = vrsqrt.f32 %v1716_v29  ;;  %v1686_v15 = vmul.f32 0.0078125, %v1653_v20  ;;  %v1811_v19 = vmul.f32 %v5401_v49, %v1775_v0 }
 0x4ff   : > { %v3879_v59 = vpop.eup %3878  ;;  %v1719_v30 = vadd.f32 1e-05, %v1687_v37  ;;  %3457 = vmatprep.mubr.f32.mxu0 %v5533_v54  ;;  %v1810_v53 = vmul.f32 %v5401_v49, %v1774_v33 }
 0x500   : > { %v3881_v34 = vpop.eup %3880  ;;  %v1718_v22 = vadd.f32 1e-05, %v1686_v15  ;;  %3458 = vmatmul.mubr.f32.gmra.mrb[52].mxu0 %v5537_v60  ;;  %v1777_v62 = vmul.f32 %v3879_v59, %v5360_v41  ;;  %v5549_v57 = vadd.f32 %v5407_v45, %v1811_v19 }
 0x501   : > { %3890 = vrsqrt.f32 %v1719_v30  ;;  %v5545_v52 = vadd.f32 %v5407_v45, %v1810_v53  ;;  %v1776_v27 = vmul.f32 %v3881_v34, %v5363_v7 }
 0x502   : > { %3892 = vrsqrt.f32 %v1718_v22  ;;  %v1813_v9 = vmul.f32 %v5401_v49, %v1777_v62 }
 0x503   : > { %v3883_v6 = vpop.eup %3882  ;;  %3460 = vmatprep.mubr.f32.mxu0 %v5545_v52  ;;  %v1812_v35 = vmul.f32 %v5401_v49, %v1776_v27 }
 0x504   : > { %v3885_v50 = vpop.eup %3884  ;;  %3461 = vmatmul.mubr.f32.gmra.mrb[54].mxu0 %v5549_v57  ;;  %v1779_v41 = vmul.f32 %v3883_v6, %v5370_v28  ;;  %v5561_v31 = vadd.f32 %v5407_v45, %v1813_v9 }
 0x505   : > { %v5557_v61 = vadd.f32 %v5407_v45, %v1812_v35  ;;  %v1778_v7 = vmul.f32 %v3885_v50, %v5373_v12 }
 0x506   : > { %v1815_v55 = vmul.f32 %v5401_v49, %v1779_v41 }
 0x507   : > { %v3887_v18 = vpop.eup %3886  ;;  %3463 = vmatprep.mubr.f32.mxu0 %v5557_v61  ;;  %v1814_v46 = vmul.f32 %v5401_v49, %v1778_v7 }
 0x508   : > { %v3889_v4 = vpop.eup %3888  ;;  %3464 = vmatmul.mubr.f32.gmra.mrb[56].mxu0 %v5561_v31  ;;  %v1781_v28 = vmul.f32 %v3887_v18, %v5380_v23  ;;  %v5573_v17 = vadd.f32 %v5407_v45, %v1815_v55 }
 0x509   : > { %v5569_v38 = vadd.f32 %v5407_v45, %v1814_v46  ;;  %v1780_v12 = vmul.f32 %v3889_v4, %v5383_v43 }
 0x50a   : > { %v1817_v29 = vmul.f32 %v5401_v49, %v1781_v28 }
 0x50b   : > { %v3891_v8 = vpop.eup %3890  ;;  %3466 = vmatprep.mubr.f32.mxu0 %v5569_v38  ;;  %v1816_v0 = vmul.f32 %v5401_v49, %v1780_v12 }
 0x50c   : > { %v3893_v37 = vpop.eup %3892  ;;  %3467 = vmatmul.mubr.f32.gmra.mrb[58].mxu0 %v5573_v17  ;;  %v1783_v23 = vmul.f32 %v3891_v8, %v5390_v24  ;;  %v5585_v33 = vadd.f32 %v5407_v45, %v1817_v29 }
 0x50d   : > { %v5581_v20 = vadd.f32 %v5407_v45, %v1816_v0  ;;  %v1782_v43 = vmul.f32 %v3893_v37, %v5393_v1  ;;  %v5599_v1 = vld [vmem:[#allocation7 + $0x8] sm:$0x7] }
 0x50e   : > { %v1819_v15 = vmul.f32 %v5401_v49, %v1783_v23  ;;  %v5603_v30 = vrot.slane %v5599_v1, %v4539_v58 }
 0x50f   : > { %3469 = vmatprep.mubr.f32.mxu0 %v5581_v20  ;;  %v1818_v19 = vmul.f32 %v5401_v49, %v1782_v43 }
 0x510   : > { %3470 = vmatmul.mubr.f32.gmra.mrb[60].mxu0 %v5585_v33  ;;  %v5595_v24 = vadd.f32 %v5407_v45, %v1819_v15 }
 0x511   : > { %v5592_v59 = vadd.f32 %v5407_v45, %v1818_v19 }
 0x513   : > { %3472 = vmatprep.mubr.f32.mxu0 %v5592_v59 }
 0x514   : > { %3473 = vmatmul.mubr.f32.gmra.mrb[62].mxu0 %v5595_v24 }
 0x5ab   : > { %v3429_v53 = vpop.f32.mrb[32].mxu0 }
 0x5ac   : > { %v1951_v49 = vadd.f32 %v3429_v53, %v5603_v30  ;;  %v1945_v34 = vpop.f32.mrb[33].mxu0 }
 0x5ad   : > { %v1946_v22 = vadd.f32 %v1945_v34, %v5603_v30 }
 0x5ae   : > { %v2105_v62 = vmul.f32 0.01, %v1951_v49 }
 0x5af   : > { %v2104_v27 = vmul.f32 0.01, %v1946_v22  ;;  %v3432_v45 = vpop.f32.mrb[34].mxu0 }
 0x5b0   : > { %v2137_v9 = vmax.f32 %v1951_v49, %v2105_v62  ;;  %v1961_v6 = vadd.f32 %v3432_v45, %v5603_v30  ;;  %v1955_v35 = vpop.f32.mrb[35].mxu0 }
 0x5b1   : > { %v2136_v50 = vmax.f32 %v1946_v22, %v2104_v27  ;;  %v1956_v41 = vadd.f32 %v1955_v35, %v5603_v30 }
 0x5b2   : > { %v2107_v7 = vmul.f32 0.01, %v1961_v6  ;;  %v5610_v58 = vadd.f32 %v2137_v9, %v5417_v16 }
 0x5b3   : > { %v2106_v55 = vmul.f32 0.01, %v1956_v41  ;;  %v3435_v18 = vpop.f32.mrb[36].mxu0  ;;  %v5613_v46 = vadd.f32 %v2136_v50, %v5413_v10 }
 0x5b4   : > { %v2139_v4 = vmax.f32 %v1961_v6, %v2107_v7  ;;  %v1971_v28 = vadd.f32 %v3435_v18, %v5603_v30  ;;  %2202 = vadd.xlane.f32.xlu1 %v5610_v58  ;;  %v1965_v12 = vpop.f32.mrb[37].mxu0 }
 0x5b5   : > { %v2138_v29 = vmax.f32 %v1956_v41, %v2106_v55  ;;  %v1966_v8 = vadd.f32 %v1965_v12, %v5603_v30  ;;  %2200 = vadd.xlane.f32.xlu0 %v5613_v46 }
 0x5b6   : > { %v2109_v0 = vmul.f32 0.01, %v1971_v28  ;;  %v5620_v16 = vadd.f32 %v2139_v4, %v5429_v40 }
 0x5b7   : > { %v2108_v37 = vmul.f32 0.01, %v1966_v8  ;;  %v3438_v23 = vpop.f32.mrb[38].mxu0  ;;  %v5623_v10 = vadd.f32 %v2138_v29, %v5425_v13 }
 0x5b8   : > { %v2141_v43 = vmax.f32 %v1971_v28, %v2109_v0  ;;  %v1981_v15 = vadd.f32 %v3438_v23, %v5603_v30  ;;  %2206 = vadd.xlane.f32.xlu1 %v5620_v16  ;;  %v1975_v19 = vpop.f32.mrb[39].mxu0 }
 0x5b9   : > { %v2140_v53 = vmax.f32 %v1966_v8, %v2108_v37  ;;  %v1976_v49 = vadd.f32 %v1975_v19, %v5603_v30  ;;  %2204 = vadd.xlane.f32.xlu0 %v5623_v10 }
 0x5ba   : > { %v2111_v34 = vmul.f32 0.01, %v1981_v15  ;;  %v5630_v40 = vadd.f32 %v2141_v43, %v5441_v5 }
 0x5bb   : > { %v2110_v22 = vmul.f32 0.01, %v1976_v49  ;;  %v3441_v62 = vpop.f32.mrb[40].mxu0  ;;  %v5633_v13 = vadd.f32 %v2140_v53, %v5437_v63 }
 0x5bc   : > { %v2143_v27 = vmax.f32 %v1981_v15, %v2111_v34  ;;  %v1991_v45 = vadd.f32 %v3441_v62, %v5603_v30  ;;  %2210 = vadd.xlane.f32.xlu1 %v5630_v40  ;;  %v1985_v9 = vpop.f32.mrb[41].mxu0 }
 0x5bd   : > { %v2142_v6 = vmax.f32 %v1976_v49, %v2110_v22  ;;  %v1986_v35 = vadd.f32 %v1985_v9, %v5603_v30  ;;  %2208 = vadd.xlane.f32.xlu0 %v5633_v13 }
 0x5be   : > { %v2113_v50 = vmul.f32 0.01, %v1991_v45  ;;  %v5640_v5 = vadd.f32 %v2143_v27, %v5453_v25 }
 0x5bf   : > { %v2112_v41 = vmul.f32 0.01, %v1986_v35  ;;  %v3444_v7 = vpop.f32.mrb[42].mxu0  ;;  %v5643_v63 = vadd.f32 %v2142_v6, %v5449_v51 }
 0x5c0   : > { %v2145_v55 = vmax.f32 %v1991_v45, %v2113_v50  ;;  %v2001_v18 = vadd.f32 %v3444_v7, %v5603_v30  ;;  %2214 = vadd.xlane.f32.xlu1 %v5640_v5  ;;  %v1995_v4 = vpop.f32.mrb[43].mxu0 }
 0x5c1   : > { %v2144_v28 = vmax.f32 %v1986_v35, %v2112_v41  ;;  %v1996_v12 = vadd.f32 %v1995_v4, %v5603_v30  ;;  %2212 = vadd.xlane.f32.xlu0 %v5643_v63 }
 0x5c2   : > { %v2115_v29 = vmul.f32 0.01, %v2001_v18  ;;  %v5650_v25 = vadd.f32 %v2145_v55, %v5465_v3 }
 0x5c3   : > { %v2114_v8 = vmul.f32 0.01, %v1996_v12  ;;  %v3447_v0 = vpop.f32.mrb[44].mxu0  ;;  %v5653_v51 = vadd.f32 %v2144_v28, %v5461_v56 }
 0x5c4   : > { %v2147_v37 = vmax.f32 %v2001_v18, %v2115_v29  ;;  %v2011_v23 = vadd.f32 %v3447_v0, %v5603_v30  ;;  %2218 = vadd.xlane.f32.xlu1 %v5650_v25  ;;  %v2005_v43 = vpop.f32.mrb[45].mxu0 }
 0x5c5   : > { %v2146_v15 = vmax.f32 %v1996_v12, %v2114_v8  ;;  %v2006_v19 = vadd.f32 %v2005_v43, %v5603_v30  ;;  %2216 = vadd.xlane.f32.xlu0 %v5653_v51 }
 0x5c6   : > { %v2117_v53 = vmul.f32 0.01, %v2011_v23  ;;  %v5660_v3 = vadd.f32 %v2147_v37, %v5477_v2 }
 0x5c7   : > { %v2116_v49 = vmul.f32 0.01, %v2006_v19  ;;  %v3450_v34 = vpop.f32.mrb[46].mxu0  ;;  %v5663_v56 = vadd.f32 %v2146_v15, %v5473_v44 }
 0x5c8   : > { %v2149_v22 = vmax.f32 %v2011_v23, %v2117_v53  ;;  %v2021_v62 = vadd.f32 %v3450_v34, %v5603_v30  ;;  %2222 = vadd.xlane.f32.xlu1 %v5660_v3  ;;  %v2015_v27 = vpop.f32.mrb[47].mxu0 }
 0x5c9   : > { %v2148_v45 = vmax.f32 %v2006_v19, %v2116_v49  ;;  %v2016_v9 = vadd.f32 %v2015_v27, %v5603_v30  ;;  %2220 = vadd.xlane.f32.xlu0 %v5663_v56 }
 0x5ca   : > { %v2119_v6 = vmul.f32 0.01, %v2021_v62  ;;  %v5670_v2 = vadd.f32 %v2149_v22, %v5489_v42 }
 0x5cb   : > { %v2118_v35 = vmul.f32 0.01, %v2016_v9  ;;  %v3453_v50 = vpop.f32.mrb[48].mxu0  ;;  %v5673_v44 = vadd.f32 %v2148_v45, %v5485_v47 }
 0x5cc   : > { %v2151_v41 = vmax.f32 %v2021_v62, %v2119_v6  ;;  %v2031_v7 = vadd.f32 %v3453_v50, %v5603_v30  ;;  %2226 = vadd.xlane.f32.xlu1 %v5670_v2  ;;  %v2025_v55 = vpop.f32.mrb[49].mxu0 }
 0x5cd   : > { %v2150_v18 = vmax.f32 %v2016_v9, %v2118_v35  ;;  %v2026_v4 = vadd.f32 %v2025_v55, %v5603_v30  ;;  %2224 = vadd.xlane.f32.xlu0 %v5673_v44 }
 0x5ce   : > { %v2121_v28 = vmul.f32 0.01, %v2031_v7  ;;  %v5680_v42 = vadd.f32 %v2151_v41, %v5501_v39 }
 0x5cf   : > { %v2120_v12 = vmul.f32 0.01, %v2026_v4  ;;  %v3456_v29 = vpop.f32.mrb[50].mxu0  ;;  %v5683_v47 = vadd.f32 %v2150_v18, %v5497_v11 }
 0x5d0   : > { %v2153_v8 = vmax.f32 %v2031_v7, %v2121_v28  ;;  %v2041_v0 = vadd.f32 %v3456_v29, %v5603_v30  ;;  %2230 = vadd.xlane.f32.xlu1 %v5680_v42  ;;  %v2035_v37 = vpop.f32.mrb[51].mxu0 }
 0x5d1   : > { %v2152_v23 = vmax.f32 %v2026_v4, %v2120_v12  ;;  %v2036_v43 = vadd.f32 %v2035_v37, %v5603_v30  ;;  %2228 = vadd.xlane.f32.xlu0 %v5683_v47 }
 0x5d2   : > { %v2123_v15 = vmul.f32 0.01, %v2041_v0  ;;  %v5690_v39 = vadd.f32 %v2153_v8, %v5513_v36 }
 0x5d3   : > { %v2122_v19 = vmul.f32 0.01, %v2036_v43  ;;  %v3459_v53 = vpop.f32.mrb[52].mxu0  ;;  %v5693_v11 = vadd.f32 %v2152_v23, %v5509_v26 }
 0x5d4   : > { %v2155_v49 = vmax.f32 %v2041_v0, %v2123_v15  ;;  %v2051_v34 = vadd.f32 %v3459_v53, %v5603_v30  ;;  %2234 = vadd.xlane.f32.xlu1 %v5690_v39  ;;  %v2045_v22 = vpop.f32.mrb[53].mxu0 }
 0x5d5   : > { %v2154_v62 = vmax.f32 %v2036_v43, %v2122_v19  ;;  %v2046_v27 = vadd.f32 %v2045_v22, %v5603_v30  ;;  %2232 = vadd.xlane.f32.xlu0 %v5693_v11 }
 0x5d6   : > { %v2125_v45 = vmul.f32 0.01, %v2051_v34  ;;  %v5700_v36 = vadd.f32 %v2155_v49, %v5525_v32 }
 0x5d7   : > { %v2124_v9 = vmul.f32 0.01, %v2046_v27  ;;  %v3462_v6 = vpop.f32.mrb[54].mxu0  ;;  %v5703_v26 = vadd.f32 %v2154_v62, %v5521_v14 }
 0x5d8   : > { %v2157_v35 = vmax.f32 %v2051_v34, %v2125_v45  ;;  %v2061_v50 = vadd.f32 %v3462_v6, %v5603_v30  ;;  %2238 = vadd.xlane.f32.xlu1 %v5700_v36  ;;  %v2055_v41 = vpop.f32.mrb[55].mxu0 }
 0x5d9   : > { %v2156_v7 = vmax.f32 %v2046_v27, %v2124_v9  ;;  %v2056_v55 = vadd.f32 %v2055_v41, %v5603_v30  ;;  %2236 = vadd.xlane.f32.xlu0 %v5703_v26 }
 0x5da   : > { %v2127_v18 = vmul.f32 0.01, %v2061_v50  ;;  %v5710_v32 = vadd.f32 %v2157_v35, %v5537_v60 }
 0x5db   : > { %v2126_v4 = vmul.f32 0.01, %v2056_v55  ;;  %v3465_v28 = vpop.f32.mrb[56].mxu0  ;;  %v5713_v14 = vadd.f32 %v2156_v7, %v5533_v54 }
 0x5dc   : > { %v2159_v12 = vmax.f32 %v2061_v50, %v2127_v18  ;;  %v2071_v29 = vadd.f32 %v3465_v28, %v5603_v30  ;;  %2242 = vadd.xlane.f32.xlu1 %v5710_v32  ;;  %v2065_v8 = vpop.f32.mrb[57].mxu0 }
 0x5dd   : > { %v2158_v0 = vmax.f32 %v2056_v55, %v2126_v4  ;;  %v2066_v37 = vadd.f32 %v2065_v8, %v5603_v30  ;;  %2240 = vadd.xlane.f32.xlu0 %v5713_v14 }
 0x5de   : > { %v2129_v23 = vmul.f32 0.01, %v2071_v29  ;;  %v5720_v60 = vadd.f32 %v2159_v12, %v5549_v57 }
 0x5df   : > { %v2128_v43 = vmul.f32 0.01, %v2066_v37  ;;  %v3468_v15 = vpop.f32.mrb[58].mxu0  ;;  %v5723_v54 = vadd.f32 %v2158_v0, %v5545_v52 }
 0x5e0   : > { %v2161_v19 = vmax.f32 %v2071_v29, %v2129_v23  ;;  %v2081_v53 = vadd.f32 %v3468_v15, %v5603_v30  ;;  %2246 = vadd.xlane.f32.xlu1 %v5720_v60  ;;  %v2075_v49 = vpop.f32.mrb[59].mxu0 }
 0x5e1   : > { %v2160_v34 = vmax.f32 %v2066_v37, %v2128_v43  ;;  %v2076_v22 = vadd.f32 %v2075_v49, %v5603_v30  ;;  %2244 = vadd.xlane.f32.xlu0 %v5723_v54  ;;  %v2627_v49 = vld [vmem:[#allocation8 + $0x18] sm:$0xff] }
 0x5e2   : > { %v2131_v62 = vmul.f32 0.01, %v2081_v53  ;;  %v5730_v57 = vadd.f32 %v2161_v19, %v5561_v31  ;;  %v2625_v19 = vld [vmem:[#allocation8 + $0x8] sm:$0xff] }
 0x5e3   : > { %v2130_v27 = vmul.f32 0.01, %v2076_v22  ;;  %v3471_v45 = vpop.f32.mrb[60].mxu0  ;;  %v5733_v52 = vadd.f32 %v2160_v34, %v5557_v61 }
 0x5e4   : > { %v2163_v9 = vmax.f32 %v2081_v53, %v2131_v62  ;;  %v2091_v6 = vadd.f32 %v3471_v45, %v5603_v30  ;;  %2250 = vadd.xlane.f32.xlu1 %v5730_v57  ;;  %v2085_v35 = vpop.f32.mrb[61].mxu0  ;;  %v2629_v62 = vld [vmem:[#allocation8 + $0x28] sm:$0xff]  ;;  %v2631_v45 = vld [vmem:[#allocation8 + $0x38] sm:$0xff] }
 0x5e5   : > { %v2162_v50 = vmax.f32 %v2076_v22, %v2130_v27  ;;  %v2086_v41 = vadd.f32 %v2085_v35, %v5603_v30  ;;  %2248 = vadd.xlane.f32.xlu0 %v5733_v52  ;;  %v2628_v22 = vld [vmem:[#allocation8 + $0x20] sm:$0xff]  ;;  %v2630_v27 = vld [vmem:[#allocation8 + $0x30] sm:$0xff] }
 0x5e6   : > { %v2133_v7 = vmul.f32 0.01, %v2091_v6  ;;  %v5740_v31 = vadd.f32 %v2163_v9, %v5573_v17  ;;  %v2632_v9 = vld [vmem:[#allocation8 + $0x40] sm:$0xff] }
 0x5e7   : > { %v2132_v55 = vmul.f32 0.01, %v2086_v41  ;;  %v3474_v18 = vpop.f32.mrb[62].mxu0  ;;  %v5743_v61 = vadd.f32 %v2162_v50, %v5569_v38  ;;  %v2634_v50 = vld [vmem:[#allocation8 + $0x50] sm:$0xff] }
 0x5e8   : > { %v2165_v4 = vmax.f32 %v2091_v6, %v2133_v7  ;;  %v2101_v28 = vadd.f32 %v3474_v18, %v5603_v30  ;;  %2254 = vadd.xlane.f32.xlu1 %v5740_v31  ;;  %v2095_v12 = vpop.f32.mrb[63].mxu0  ;;  %v2633_v6 = vld [vmem:[#allocation8 + $0x48] sm:$0xff] }
 0x5e9   : > { %v2164_v29 = vmax.f32 %v2086_v41, %v2132_v55  ;;  %v2096_v8 = vadd.f32 %v2095_v12, %v5603_v30  ;;  %2252 = vadd.xlane.f32.xlu0 %v5743_v61  ;;  %v3667_v35 = vpack.c.bf16 %v2633_v6, %v2632_v9  ;;  %v2635_v41 = vld [vmem:[#allocation8 + $0x58] sm:$0xff] }
 0x5ea   : > { %v2135_v0 = vmul.f32 0.01, %v2101_v28  ;;  %v5750_v17 = vadd.f32 %v2165_v4, %v5585_v33  ;;  %v2624_v33 = vld [vmem:[#allocation8] sm:$0xff]  ;;  %v3671_v7 = vpack.c.bf16 %v2635_v41, %v2634_v50 }
 0x5eb   : > { %v2134_v37 = vmul.f32 0.01, %v2096_v8  ;;  %v5753_v23 = vadd.f32 %v2164_v29, %v5581_v20  ;;  %v2626_v20 = vld [vmem:[#allocation8 + $0x10] sm:$0xff]  ;;  %v3651_v53 = vpack.c.bf16 %v2625_v19, %v2624_v33 }
 0x5ec   : > { %v2167_v38 = vmax.f32 %v2101_v28, %v2135_v0  ;;  %2258 = vadd.xlane.f32.xlu1 %v5750_v17  ;;  %v3655_v34 = vpack.c.bf16 %v2627_v49, %v2626_v20 }
 0x5ed   : > { %v2166_v43 = vmax.f32 %v2096_v8, %v2134_v37  ;;  %2256 = vadd.xlane.f32.xlu0 %v5753_v23  ;;  %3652 = vmatprep.subr.bf16.mxu1 %v3651_v53 }
 0x5ee   : > { %v5758_v15 = vadd.f32 %v2167_v38, %v5595_v24  ;;  %3654 = vmatpush3.bf16.msra.mxu1 %v3651_v53  ;;  %v3659_v24 = vpack.c.bf16 %v2629_v62, %v2628_v22 }
 0x5ef   : > { %v5761_v30 = vadd.f32 %v2166_v43, %v5592_v59  ;;  %3656 = vmatprep.subr.bf16.mxu1 %v3655_v34  ;;  %v3663_v59 = vpack.c.bf16 %v2631_v45, %v2630_v27 }
 0x5f0   : > { %2262 = vadd.xlane.f32.xlu1 %v5758_v15 }
 0x5f1   : > { %2260 = vadd.xlane.f32.xlu0 %v5761_v30 }
 0x5f2   : > { %3658 = vmatpush3.bf16.msra.mxu1 %v3655_v34 }
 0x5f3   : > { %3660 = vmatprep.subr.bf16.mxu1 %v3659_v24 }
 0x5f6   : > { %3662 = vmatpush3.bf16.msra.mxu1 %v3659_v24 }
 0x5f7   : > { %3664 = vmatprep.subr.bf16.mxu1 %v3663_v59 }
 0x5fa   : > { %3666 = vmatpush3.bf16.msra.mxu1 %v3663_v59 }
 0x5fb   : > { %3668 = vmatprep.subr.bf16.mxu1 %v3667_v35 }
 0x5fe   : > { %3670 = vmatpush3.bf16.msra.mxu1 %v3667_v35 }
 0x5ff   : > { %3672 = vmatprep.subr.bf16.mxu1 %v3671_v7 }
 0x602   : > { %3674 = vmatpush3.bf16.msra.mxu1 %v3671_v7 }
 0x641   : > { %v2203_v55 = vpop.xlane.xlu1 %2202 }
 0x642   : > { %v2265_v18 = vmul.f32 0.0078125, %v2203_v55  ;;  %v2201_v4 = vpop.xlane.xlu0 %2200 }
 0x643   : > { %v2264_v28 = vmul.f32 0.0078125, %v2201_v4 }
 0x644   : > { %v5766_v12 = vsub.f32 %v5610_v58, %v2265_v18 }
 0x645   : > { %v5769_v29 = vsub.f32 %v5613_v46, %v2264_v28  ;;  %v2207_v8 = vpop.xlane.xlu1 %2206 }
 0x646   : > { %v2267_v0 = vmul.f32 0.0078125, %v2207_v8  ;;  %v2205_v37 = vpop.xlane.xlu0 %2204  ;;  %v2329_v38 = vmul.f32 %v5766_v12, %v5766_v12 }
 0x647   : > { %v2266_v43 = vmul.f32 0.0078125, %v2205_v37  ;;  %v2328_v33 = vmul.f32 %v5769_v29, %v5769_v29 }
 0x648   : > { %v5776_v19 = vsub.f32 %v5620_v16, %v2267_v0  ;;  %2362 = vadd.xlane.f32.xlu1 %v2329_v38 }
 0x649   : > { %v5779_v58 = vsub.f32 %v5623_v10, %v2266_v43  ;;  %v2211_v20 = vpop.xlane.xlu1 %2210  ;;  %2360 = vadd.xlane.f32.xlu0 %v2328_v33 }
 0x64a   : > { %v2269_v46 = vmul.f32 0.0078125, %v2211_v20  ;;  %v2209_v53 = vpop.xlane.xlu0 %2208  ;;  %v2331_v49 = vmul.f32 %v5776_v19, %v5776_v19 }
 0x64b   : > { %v2268_v34 = vmul.f32 0.0078125, %v2209_v53  ;;  %v2330_v22 = vmul.f32 %v5779_v58, %v5779_v58 }
 0x64c   : > { %v5786_v62 = vsub.f32 %v5630_v40, %v2269_v46  ;;  %2366 = vadd.xlane.f32.xlu1 %v2331_v49 }
 0x64d   : > { %v5789_v16 = vsub.f32 %v5633_v13, %v2268_v34  ;;  %v2215_v10 = vpop.xlane.xlu1 %2214  ;;  %2364 = vadd.xlane.f32.xlu0 %v2330_v22 }
 0x64e   : > { %v2271_v24 = vmul.f32 0.0078125, %v2215_v10  ;;  %v2213_v27 = vpop.xlane.xlu0 %2212  ;;  %v2333_v45 = vmul.f32 %v5786_v62, %v5786_v62 }
 0x64f   : > { %v2270_v59 = vmul.f32 0.0078125, %v2213_v27  ;;  %v2332_v9 = vmul.f32 %v5789_v16, %v5789_v16 }
 0x650   : > { %v5796_v6 = vsub.f32 %v5640_v5, %v2271_v24  ;;  %2370 = vadd.xlane.f32.xlu1 %v2333_v45 }
 0x651   : > { %v5799_v40 = vsub.f32 %v5643_v63, %v2270_v59  ;;  %v2219_v13 = vpop.xlane.xlu1 %2218  ;;  %2368 = vadd.xlane.f32.xlu0 %v2332_v9 }
 0x652   : > { %v2273_v35 = vmul.f32 0.0078125, %v2219_v13  ;;  %v2217_v50 = vpop.xlane.xlu0 %2216  ;;  %v2335_v41 = vmul.f32 %v5796_v6, %v5796_v6 }
 0x653   : > { %v2272_v7 = vmul.f32 0.0078125, %v2217_v50  ;;  %v2334_v55 = vmul.f32 %v5799_v40, %v5799_v40 }
 0x654   : > { %v5806_v18 = vsub.f32 %v5650_v25, %v2273_v35  ;;  %2374 = vadd.xlane.f32.xlu1 %v2335_v41 }
 0x655   : > { %v5809_v5 = vsub.f32 %v5653_v51, %v2272_v7  ;;  %v2223_v63 = vpop.xlane.xlu1 %2222  ;;  %2372 = vadd.xlane.f32.xlu0 %v2334_v55  ;;  %v2637_v7 = vld [vmem:[#allocation8 + $0x68] sm:$0xff] }
 0x656   : > { %v2275_v4 = vmul.f32 0.0078125, %v2223_v63  ;;  %v2221_v28 = vpop.xlane.xlu0 %2220  ;;  %v2337_v8 = vmul.f32 %v5806_v18, %v5806_v18 }
 0x657   : > { %v2274_v0 = vmul.f32 0.0078125, %v2221_v28  ;;  %v2336_v37 = vmul.f32 %v5809_v5, %v5809_v5 }
 0x658   : > { %v5816_v38 = vsub.f32 %v5660_v3, %v2275_v4  ;;  %2378 = vadd.xlane.f32.xlu1 %v2337_v8 }
 0x659   : > { %v5819_v25 = vsub.f32 %v5663_v56, %v2274_v0  ;;  %v2227_v51 = vpop.xlane.xlu1 %2226  ;;  %2376 = vadd.xlane.f32.xlu0 %v2336_v37 }
 0x65a   : > { %v2277_v43 = vmul.f32 0.0078125, %v2227_v51  ;;  %v2225_v33 = vpop.xlane.xlu0 %2224  ;;  %v2339_v20 = vmul.f32 %v5816_v38, %v5816_v38  ;;  %v2639_v51 = vld [vmem:[#allocation8 + $0x78] sm:$0xff] }
 0x65b   : > { %v2276_v46 = vmul.f32 0.0078125, %v2225_v33  ;;  %v2338_v53 = vmul.f32 %v5819_v25, %v5819_v25 }
 0x65c   : > { %v5826_v49 = vsub.f32 %v5670_v2, %v2277_v43  ;;  %2382 = vadd.xlane.f32.xlu1 %v2339_v20 }
 0x65d   : > { %v5829_v3 = vsub.f32 %v5673_v44, %v2276_v46  ;;  %v2231_v56 = vpop.xlane.xlu1 %2230  ;;  %2380 = vadd.xlane.f32.xlu0 %v2338_v53 }
 0x65e   : > { %v2279_v34 = vmul.f32 0.0078125, %v2231_v56  ;;  %v2229_v22 = vpop.xlane.xlu0 %2228  ;;  %v2341_v10 = vmul.f32 %v5826_v49, %v5826_v49 }
 0x65f   : > { %v2278_v24 = vmul.f32 0.0078125, %v2229_v22  ;;  %v2340_v27 = vmul.f32 %v5829_v3, %v5829_v3 }
 0x660   : > { %v5836_v45 = vsub.f32 %v5680_v42, %v2279_v34  ;;  %2386 = vadd.xlane.f32.xlu1 %v2341_v10  ;;  %v2636_v42 = vld [vmem:[#allocation8 + $0x60] sm:$0xff] }
 0x661   : > { %v5839_v2 = vsub.f32 %v5683_v47, %v2278_v24  ;;  %v2235_v44 = vpop.xlane.xlu1 %2234  ;;  %2384 = vadd.xlane.f32.xlu0 %v2340_v27  ;;  %v3675_v63 = vpack.c.bf16 %v2637_v7, %v2636_v42 }
 0x662   : > { %v2281_v59 = vmul.f32 0.0078125, %v2235_v44  ;;  %v2233_v9 = vpop.xlane.xlu0 %2232  ;;  %v2343_v13 = vmul.f32 %v5836_v45, %v5836_v45 }
 0x663   : > { %v2280_v35 = vmul.f32 0.0078125, %v2233_v9  ;;  %v2342_v50 = vmul.f32 %v5839_v2, %v5839_v2  ;;  %3676 = vmatprep.subr.bf16.mxu1 %v3675_v63 }
 0x664   : > { %v5846_v41 = vsub.f32 %v5690_v39, %v2281_v59  ;;  %2390 = vadd.xlane.f32.xlu1 %v2343_v13  ;;  %v2638_v39 = vld [vmem:[#allocation8 + $0x70] sm:$0xff]  ;;  %3678 = vmatpush3.bf16.msra.mxu1 %v3675_v63 }
 0x665   : > { %v5849_v47 = vsub.f32 %v5693_v11, %v2280_v35  ;;  %v2239_v55 = vpop.xlane.xlu1 %2238  ;;  %2388 = vadd.xlane.f32.xlu0 %v2342_v50  ;;  %v3679_v11 = vpack.c.bf16 %v2639_v51, %v2638_v39 }
 0x666   : > { %v2283_v4 = vmul.f32 0.0078125, %v2239_v55  ;;  %v2237_v28 = vpop.xlane.xlu0 %2236  ;;  %v2345_v8 = vmul.f32 %v5846_v41, %v5846_v41 }
 0x667   : > { %v2282_v0 = vmul.f32 0.0078125, %v2237_v28  ;;  %v2344_v37 = vmul.f32 %v5849_v47, %v5849_v47  ;;  %3680 = vmatprep.subr.bf16.mxu1 %v3679_v11 }
 0x668   : > { %v5856_v43 = vsub.f32 %v5700_v36, %v2283_v4  ;;  %2394 = vadd.xlane.f32.xlu1 %v2345_v8  ;;  %3682 = vmatpush3.bf16.msra.mxu1 %v3679_v11 }
 0x669   : > { %v5859_v33 = vsub.f32 %v5703_v26, %v2282_v0  ;;  %v2243_v20 = vpop.xlane.xlu1 %2242  ;;  %2392 = vadd.xlane.f32.xlu0 %v2344_v37 }
 0x66a   : > { %v2285_v46 = vmul.f32 0.0078125, %v2243_v20  ;;  %v2241_v53 = vpop.xlane.xlu0 %2240  ;;  %v2347_v56 = vmul.f32 %v5856_v43, %v5856_v43 }
 0x66b   : > { %v2284_v34 = vmul.f32 0.0078125, %v2241_v53  ;;  %v2346_v22 = vmul.f32 %v5859_v33, %v5859_v33 }
 0x66c   : > { %v5866_v36 = vsub.f32 %v5710_v32, %v2285_v46  ;;  %2398 = vadd.xlane.f32.xlu1 %v2347_v56 }
 0x66d   : > { %v5869_v26 = vsub.f32 %v5713_v14, %v2284_v34  ;;  %v2247_v10 = vpop.xlane.xlu1 %2246  ;;  %2396 = vadd.xlane.f32.xlu0 %v2346_v22 }
 0x66e   : > { %v2287_v24 = vmul.f32 0.0078125, %v2247_v10  ;;  %v2245_v27 = vpop.xlane.xlu0 %2244  ;;  %v2349_v44 = vmul.f32 %v5866_v36, %v5866_v36 }
 0x66f   : > { %v2286_v59 = vmul.f32 0.0078125, %v2245_v27  ;;  %v2348_v9 = vmul.f32 %v5869_v26, %v5869_v26 }
 0x670   : > { %v5876_v13 = vsub.f32 %v5720_v60, %v2287_v24  ;;  %2402 = vadd.xlane.f32.xlu1 %v2349_v44 }
 0x671   : > { %v5879_v32 = vsub.f32 %v5723_v54, %v2286_v59  ;;  %v2251_v14 = vpop.xlane.xlu1 %2250  ;;  %2400 = vadd.xlane.f32.xlu0 %v2348_v9 }
 0x672   : > { %v2289_v35 = vmul.f32 0.0078125, %v2251_v14  ;;  %v2249_v50 = vpop.xlane.xlu0 %2248  ;;  %v2351_v42 = vmul.f32 %v5876_v13, %v5876_v13 }
 0x673   : > { %v2288_v7 = vmul.f32 0.0078125, %v2249_v50  ;;  %v2350_v55 = vmul.f32 %v5879_v32, %v5879_v32 }
 0x674   : > { %v5886_v63 = vsub.f32 %v5730_v57, %v2289_v35  ;;  %2406 = vadd.xlane.f32.xlu1 %v2351_v42 }
 0x675   : > { %v5889_v60 = vsub.f32 %v5733_v52, %v2288_v7  ;;  %v2255_v54 = vpop.xlane.xlu1 %2254  ;;  %2404 = vadd.xlane.f32.xlu0 %v2350_v55 }
 0x676   : > { %v2291_v4 = vmul.f32 0.0078125, %v2255_v54  ;;  %v2253_v28 = vpop.xlane.xlu0 %2252  ;;  %v2353_v8 = vmul.f32 %v5886_v63, %v5886_v63 }
 0x677   : > { %v2290_v0 = vmul.f32 0.0078125, %v2253_v28  ;;  %v2352_v37 = vmul.f32 %v5889_v60, %v5889_v60 }
 0x678   : > { %v5896_v39 = vsub.f32 %v5740_v31, %v2291_v4  ;;  %2410 = vadd.xlane.f32.xlu1 %v2353_v8 }
 0x679   : > { %v5899_v57 = vsub.f32 %v5743_v61, %v2290_v0  ;;  %v2259_v52 = vpop.xlane.xlu1 %2258  ;;  %2408 = vadd.xlane.f32.xlu0 %v2352_v37 }
 0x67a   : > { %v2293_v51 = vmul.f32 0.0078125, %v2259_v52  ;;  %v2257_v11 = vpop.xlane.xlu0 %2256  ;;  %v2355_v20 = vmul.f32 %v5896_v39, %v5896_v39 }
 0x67b   : > { %v2292_v46 = vmul.f32 0.0078125, %v2257_v11  ;;  %v2354_v53 = vmul.f32 %v5899_v57, %v5899_v57 }
 0x67c   : > { %v5906_v56 = vsub.f32 %v5750_v17, %v2293_v51  ;;  %2414 = vadd.xlane.f32.xlu1 %v2355_v20 }
 0x67d   : > { %v5909_v31 = vsub.f32 %v5753_v23, %v2292_v46  ;;  %v2263_v61 = vpop.xlane.xlu1 %2262  ;;  %2412 = vadd.xlane.f32.xlu0 %v2354_v53 }
 0x67e   : > { %v2295_v34 = vmul.f32 0.0078125, %v2263_v61  ;;  %v2261_v22 = vpop.xlane.xlu0 %2260  ;;  %v2357_v10 = vmul.f32 %v5906_v56, %v5906_v56 }
 0x67f   : > { %v2294_v24 = vmul.f32 0.0078125, %v2261_v22  ;;  %v2356_v27 = vmul.f32 %v5909_v31, %v5909_v31 }
 0x680   : > { %v5916_v44 = vsub.f32 %v5758_v15, %v2295_v34  ;;  %2418 = vadd.xlane.f32.xlu1 %v2357_v10  ;;  %v5927_v34 = vrot.slane %v5599_v1, %v4868_v21 }
 0x681   : > { %v5919_v17 = vsub.f32 %v5761_v30, %v2294_v24  ;;  %2416 = vadd.xlane.f32.xlu0 %v2356_v27 }
 0x682   : > { %v2359_v23 = vmul.f32 %v5916_v44, %v5916_v44 }
 0x683   : > { %v2358_v59 = vmul.f32 %v5919_v17, %v5919_v17 }
 0x684   : > { %2422 = vadd.xlane.f32.xlu1 %v2359_v23 }
 0x685   : > { %2420 = vadd.xlane.f32.xlu0 %v2358_v59 }
 0x6d5   : > { %v2363_v9 = vpop.xlane.xlu1 %2362 }
 0x6d6   : > { %v2425_v14 = vmul.f32 0.0078125, %v2363_v9  ;;  %v2361_v35 = vpop.xlane.xlu0 %2360 }
 0x6d7   : > { %v2424_v50 = vmul.f32 0.0078125, %v2361_v35 }
 0x6d8   : > { %v2457_v42 = vadd.f32 1e-05, %v2425_v14 }
 0x6d9   : > { %v2456_v15 = vadd.f32 1e-05, %v2424_v50  ;;  %v2367_v7 = vpop.xlane.xlu1 %2366  ;;  %v5933_v50 = vrot.slane %v5599_v1, %v4871_v48 }
 0x6da   : > { %3894 = vrsqrt.f32 %v2457_v42  ;;  %v2427_v55 = vmul.f32 0.0078125, %v2367_v7  ;;  %v2365_v30 = vpop.xlane.xlu0 %2364 }
 0x6db   : > { %3896 = vrsqrt.f32 %v2456_v15  ;;  %v2426_v54 = vmul.f32 0.0078125, %v2365_v30 }
 0x6dc   : > { %v2459_v4 = vadd.f32 1e-05, %v2427_v55 }
 0x6dd   : > { %v2458_v28 = vadd.f32 1e-05, %v2426_v54  ;;  %v2371_v8 = vpop.xlane.xlu1 %2370 }
 0x6de   : > { %3898 = vrsqrt.f32 %v2459_v4  ;;  %v2429_v0 = vmul.f32 0.0078125, %v2371_v8  ;;  %v2369_v37 = vpop.xlane.xlu0 %2368 }
 0x6df   : > { %3900 = vrsqrt.f32 %v2458_v28  ;;  %v2428_v52 = vmul.f32 0.0078125, %v2369_v37 }
 0x6e0   : > { %v2461_v51 = vadd.f32 1e-05, %v2429_v0 }
 0x6e1   : > { %v2460_v11 = vadd.f32 1e-05, %v2428_v52  ;;  %v2375_v20 = vpop.xlane.xlu1 %2374 }
 0x6e2   : > { %3902 = vrsqrt.f32 %v2461_v51  ;;  %v2431_v46 = vmul.f32 0.0078125, %v2375_v20  ;;  %v2373_v53 = vpop.xlane.xlu0 %2372 }
 0x6e3   : > { %3904 = vrsqrt.f32 %v2460_v11  ;;  %v2430_v61 = vmul.f32 0.0078125, %v2373_v53 }
 0x6e4   : > { %v3895_v22 = vpop.eup %3894  ;;  %v2463_v10 = vadd.f32 1e-05, %v2431_v46 }
 0x6e5   : > { %v3897_v24 = vpop.eup %3896  ;;  %v2521_v27 = vmul.f32 %v3895_v22, %v5766_v12  ;;  %v2462_v23 = vadd.f32 1e-05, %v2430_v61  ;;  %v2379_v59 = vpop.xlane.xlu1 %2378 }
 0x6e6   : > { %3906 = vrsqrt.f32 %v2463_v10  ;;  %v2433_v9 = vmul.f32 0.0078125, %v2379_v59  ;;  %v2377_v14 = vpop.xlane.xlu0 %2376  ;;  %v2520_v35 = vmul.f32 %v3897_v24, %v5769_v29 }
 0x6e7   : > { %3908 = vrsqrt.f32 %v2462_v23  ;;  %v2432_v42 = vmul.f32 0.0078125, %v2377_v14  ;;  %v2557_v21 = vmul.f32 %v5927_v34, %v2521_v27 }
 0x6e8   : > { %v3899_v15 = vpop.eup %3898  ;;  %v2465_v7 = vadd.f32 1e-05, %v2433_v9  ;;  %v2556_v55 = vmul.f32 %v5927_v34, %v2520_v35 }
 0x6e9   : > { %v3901_v12 = vpop.eup %3900  ;;  %v2464_v30 = vadd.f32 1e-05, %v2432_v42  ;;  %v2383_v54 = vpop.xlane.xlu1 %2382  ;;  %v2523_v4 = vmul.f32 %v3899_v15, %v5776_v19  ;;  %v2593_v0 = vadd.f32 %v5933_v50, %v2557_v21 }
 0x6ea   : > { %3910 = vrsqrt.f32 %v2465_v7  ;;  %v2435_v28 = vmul.f32 0.0078125, %v2383_v54  ;;  %v2381_v29 = vpop.xlane.xlu0 %2380  ;;  %v2592_v8 = vadd.f32 %v5933_v50, %v2556_v55  ;;  %v2522_v48 = vmul.f32 %v3901_v12, %v5779_v58 }
 0x6eb   : > { %3912 = vrsqrt.f32 %v2464_v30  ;;  %v2434_v1 = vmul.f32 0.0078125, %v2381_v29  ;;  %v2559_v37 = vmul.f32 %v5927_v34, %v2523_v4 }
 0x6ec   : > { %v3903_v52 = vpop.eup %3902  ;;  %v2467_v51 = vadd.f32 1e-05, %v2435_v28  ;;  %3507 = vmatprep.mubr.f32.mxu1 %v2592_v8  ;;  %v2558_v11 = vmul.f32 %v5927_v34, %v2522_v48 }
 0x6ed   : > { %v3905_v20 = vpop.eup %3904  ;;  %v2466_v19 = vadd.f32 1e-05, %v2434_v1  ;;  %v2387_v46 = vpop.xlane.xlu1 %2386  ;;  %3508 = vmatmul.mubr.f32.vlgmr.msra.gmra.mrb[32].mxu1 %v2593_v0  ;;  %v2525_v53 = vmul.f32 %v3903_v52, %v5786_v62  ;;  %v2595_v27 = vadd.f32 %v5933_v50, %v2559_v37 }
 0x6ee   : > { %3914 = vrsqrt.f32 %v2467_v51  ;;  %v2437_v61 = vmul.f32 0.0078125, %v2387_v46  ;;  %v2385_v58 = vpop.xlane.xlu0 %2384  ;;  %v2594_v22 = vadd.f32 %v5933_v50, %v2558_v11  ;;  %v2524_v10 = vmul.f32 %v3905_v20, %v5789_v16 }
 0x6ef   : > { %3916 = vrsqrt.f32 %v2466_v19  ;;  %v2436_v24 = vmul.f32 0.0078125, %v2385_v58  ;;  %v2561_v23 = vmul.f32 %v5927_v34, %v2525_v53 }
 0x6f0   : > { %v3907_v59 = vpop.eup %3906  ;;  %v2469_v9 = vadd.f32 1e-05, %v2437_v61  ;;  %3510 = vmatprep.mubr.f32.mxu1 %v2594_v22  ;;  %v2560_v14 = vmul.f32 %v5927_v34, %v2524_v10 }
 0x6f1   : > { %v3909_v35 = vpop.eup %3908  ;;  %v2468_v62 = vadd.f32 1e-05, %v2436_v24  ;;  %v2391_v42 = vpop.xlane.xlu1 %2390  ;;  %3511 = vmatmul.mubr.f32.gmra.mrb[34].mxu1 %v2595_v27  ;;  %v2527_v21 = vmul.f32 %v3907_v59, %v5796_v6  ;;  %v2597_v30 = vadd.f32 %v5933_v50, %v2561_v23 }
 0x6f2   : > { %3918 = vrsqrt.f32 %v2469_v9  ;;  %v2439_v15 = vmul.f32 0.0078125, %v2391_v42  ;;  %v2389_v16 = vpop.xlane.xlu0 %2388  ;;  %v2596_v7 = vadd.f32 %v5933_v50, %v2560_v14  ;;  %v2526_v55 = vmul.f32 %v3909_v35, %v5799_v40 }
 0x6f3   : > { %3920 = vrsqrt.f32 %v2468_v62  ;;  %v2438_v12 = vmul.f32 0.0078125, %v2389_v16  ;;  %v2563_v54 = vmul.f32 %v5927_v34, %v2527_v21 }
 0x6f4   : > { %v3911_v4 = vpop.eup %3910  ;;  %v2471_v28 = vadd.f32 1e-05, %v2439_v15  ;;  %3513 = vmatprep.mubr.f32.mxu1 %v2596_v7  ;;  %v2562_v29 = vmul.f32 %v5927_v34, %v2526_v55 }
 0x6f5   : > { %v3913_v8 = vpop.eup %3912  ;;  %v2470_v6 = vadd.f32 1e-05, %v2438_v12  ;;  %v2395_v48 = vpop.xlane.xlu1 %2394  ;;  %3514 = vmatmul.mubr.f32.gmra.mrb[36].mxu1 %v2597_v30  ;;  %v2529_v1 = vmul.f32 %v3911_v4, %v5806_v18  ;;  %v2599_v11 = vadd.f32 %v5933_v50, %v2563_v54 }
 0x6f6   : > { %3922 = vrsqrt.f32 %v2471_v28  ;;  %v2441_v0 = vmul.f32 0.0078125, %v2395_v48  ;;  %v2393_v40 = vpop.xlane.xlu0 %2392  ;;  %v2598_v37 = vadd.f32 %v5933_v50, %v2562_v29  ;;  %v2528_v52 = vmul.f32 %v3913_v8, %v5809_v5 }
 0x6f7   : > { %3924 = vrsqrt.f32 %v2470_v6  ;;  %v2440_v51 = vmul.f32 0.0078125, %v2393_v40  ;;  %v2565_v20 = vmul.f32 %v5927_v34, %v2529_v1 }
 0x6f8   : > { %v3915_v19 = vpop.eup %3914  ;;  %v2473_v46 = vadd.f32 1e-05, %v2441_v0  ;;  %3516 = vmatprep.mubr.f32.mxu1 %v2598_v37  ;;  %v2564_v53 = vmul.f32 %v5927_v34, %v2528_v52 }
 0x6f9   : > { %v3917_v61 = vpop.eup %3916  ;;  %v2472_v18 = vadd.f32 1e-05, %v2440_v51  ;;  %v2399_v58 = vpop.xlane.xlu1 %2398  ;;  %3517 = vmatmul.mubr.f32.gmra.mrb[38].mxu1 %v2599_v11  ;;  %v2531_v22 = vmul.f32 %v3915_v19, %v5816_v38  ;;  %v2601_v59 = vadd.f32 %v5933_v50, %v2565_v20 }
 0x6fa   : > { %3926 = vrsqrt.f32 %v2473_v46  ;;  %v2443_v10 = vmul.f32 0.0078125, %v2399_v58  ;;  %v2397_v5 = vpop.xlane.xlu0 %2396  ;;  %v2600_v24 = vadd.f32 %v5933_v50, %v2564_v53  ;;  %v2530_v27 = vmul.f32 %v3917_v61, %v5819_v25 }
 0x6fb   : > { %3928 = vrsqrt.f32 %v2472_v18  ;;  %v2442_v23 = vmul.f32 0.0078125, %v2397_v5  ;;  %v2567_v9 = vmul.f32 %v5927_v34, %v2531_v22 }
 0x6fc   : > { %v3919_v14 = vpop.eup %3918  ;;  %v2475_v35 = vadd.f32 1e-05, %v2443_v10  ;;  %3519 = vmatprep.mubr.f32.mxu1 %v2600_v24  ;;  %v2566_v62 = vmul.f32 %v5927_v34, %v2530_v27 }
 0x6fd   : > { %v3921_v42 = vpop.eup %3920  ;;  %v2474_v38 = vadd.f32 1e-05, %v2442_v23  ;;  %v2403_v21 = vpop.xlane.xlu1 %2402  ;;  %3520 = vmatmul.mubr.f32.gmra.mrb[40].mxu1 %v2601_v59  ;;  %v2533_v15 = vmul.f32 %v3919_v14, %v5826_v49  ;;  %v2603_v30 = vadd.f32 %v5933_v50, %v2567_v9 }
 0x6fe   : > { %3930 = vrsqrt.f32 %v2475_v35  ;;  %v2445_v16 = vmul.f32 0.0078125, %v2403_v21  ;;  %v2401_v25 = vpop.xlane.xlu0 %2400  ;;  %v2602_v7 = vadd.f32 %v5933_v50, %v2566_v62  ;;  %v2532_v55 = vmul.f32 %v3921_v42, %v5829_v3 }
 0x6ff   : > { %3932 = vrsqrt.f32 %v2474_v38  ;;  %v2444_v12 = vmul.f32 0.0078125, %v2401_v25  ;;  %v2569_v54 = vmul.f32 %v5927_v34, %v2533_v15 }
 0x700   : > { %v3923_v4 = vpop.eup %3922  ;;  %v2477_v28 = vadd.f32 1e-05, %v2445_v16  ;;  %3522 = vmatprep.mubr.f32.mxu1 %v2602_v7  ;;  %v2568_v29 = vmul.f32 %v5927_v34, %v2532_v55 }
 0x701   : > { %v3925_v8 = vpop.eup %3924  ;;  %v2476_v49 = vadd.f32 1e-05, %v2444_v12  ;;  %v2407_v6 = vpop.xlane.xlu1 %2406  ;;  %3523 = vmatmul.mubr.f32.gmra.mrb[42].mxu1 %v2603_v30  ;;  %v2535_v48 = vmul.f32 %v3923_v4, %v5836_v45  ;;  %v2605_v52 = vadd.f32 %v5933_v50, %v2569_v54 }
 0x702   : > { %3934 = vrsqrt.f32 %v2477_v28  ;;  %v2447_v1 = vmul.f32 0.0078125, %v2407_v6  ;;  %v2405_v3 = vpop.xlane.xlu0 %2404  ;;  %v2604_v0 = vadd.f32 %v5933_v50, %v2568_v29  ;;  %v2534_v40 = vmul.f32 %v3925_v8, %v5839_v2 }
 0x703   : > { %3936 = vrsqrt.f32 %v2476_v49  ;;  %v2446_v37 = vmul.f32 0.0078125, %v2405_v3  ;;  %v2571_v51 = vmul.f32 %v5927_v34, %v2535_v48 }
 0x704   : > { %v3927_v11 = vpop.eup %3926  ;;  %v2479_v20 = vadd.f32 1e-05, %v2447_v1  ;;  %3525 = vmatprep.mubr.f32.mxu1 %v2604_v0  ;;  %v2570_v19 = vmul.f32 %v5927_v34, %v2534_v40 }
 0x705   : > { %v3929_v46 = vpop.eup %3928  ;;  %v2478_v45 = vadd.f32 1e-05, %v2446_v37  ;;  %v2411_v53 = vpop.xlane.xlu1 %2410  ;;  %3526 = vmatmul.mubr.f32.gmra.mrb[44].mxu1 %v2605_v52  ;;  %v2537_v61 = vmul.f32 %v3927_v11, %v5846_v41  ;;  %v2607_v5 = vadd.f32 %v5933_v50, %v2571_v51 }
 0x706   : > { %3938 = vrsqrt.f32 %v2479_v20  ;;  %v2449_v18 = vmul.f32 0.0078125, %v2411_v53  ;;  %v2409_v2 = vpop.xlane.xlu0 %2408  ;;  %v2606_v58 = vadd.f32 %v5933_v50, %v2570_v19  ;;  %v2536_v22 = vmul.f32 %v3929_v46, %v5849_v47 }
 0x707   : > { %3940 = vrsqrt.f32 %v2478_v45  ;;  %v2448_v10 = vmul.f32 0.0078125, %v2409_v2  ;;  %v2573_v24 = vmul.f32 %v5927_v34, %v2537_v61 }
 0x708   : > { %v3931_v27 = vpop.eup %3930  ;;  %v2481_v23 = vadd.f32 1e-05, %v2449_v18  ;;  %3528 = vmatprep.mubr.f32.mxu1 %v2606_v58  ;;  %v2572_v59 = vmul.f32 %v5927_v34, %v2536_v22 }
 0x709   : > { %v3933_v9 = vpop.eup %3932  ;;  %v2480_v41 = vadd.f32 1e-05, %v2448_v10  ;;  %v2415_v14 = vpop.xlane.xlu1 %2414  ;;  %3529 = vmatmul.mubr.f32.gmra.mrb[46].mxu1 %v2607_v5  ;;  %v2539_v35 = vmul.f32 %v3931_v27, %v5856_v43  ;;  %v2609_v15 = vadd.f32 %v5933_v50, %v2573_v24 }
 0x70a   : > { %3942 = vrsqrt.f32 %v2481_v23  ;;  %v2451_v62 = vmul.f32 0.0078125, %v2415_v14  ;;  %v2413_v47 = vpop.xlane.xlu0 %2412  ;;  %v2608_v42 = vadd.f32 %v5933_v50, %v2572_v59  ;;  %v2538_v38 = vmul.f32 %v3933_v9, %v5859_v33 }
 0x70b   : > { %3944 = vrsqrt.f32 %v2480_v41  ;;  %v2450_v21 = vmul.f32 0.0078125, %v2413_v47  ;;  %v2575_v16 = vmul.f32 %v5927_v34, %v2539_v35 }
 0x70c   : > { %v3935_v25 = vpop.eup %3934  ;;  %v2483_v7 = vadd.f32 1e-05, %v2451_v62  ;;  %3531 = vmatprep.mubr.f32.mxu1 %v2608_v42  ;;  %v2574_v55 = vmul.f32 %v5927_v34, %v2538_v38 }
 0x70d   : > { %v3937_v12 = vpop.eup %3936  ;;  %v2482_v43 = vadd.f32 1e-05, %v2450_v21  ;;  %v2419_v30 = vpop.xlane.xlu1 %2418  ;;  %3532 = vmatmul.mubr.f32.gmra.mrb[48].mxu1 %v2609_v15  ;;  %v2541_v54 = vmul.f32 %v3935_v25, %v5866_v36  ;;  %v2611_v49 = vadd.f32 %v5933_v50, %v2575_v16 }
 0x70e   : > { %3946 = vrsqrt.f32 %v2483_v7  ;;  %v2453_v4 = vmul.f32 0.0078125, %v2419_v30  ;;  %v2417_v33 = vpop.xlane.xlu0 %2416  ;;  %v2610_v28 = vadd.f32 %v5933_v50, %v2574_v55  ;;  %v2540_v29 = vmul.f32 %v3937_v12, %v5869_v26 }
 0x70f   : > { %3948 = vrsqrt.f32 %v2482_v43  ;;  %v2452_v8 = vmul.f32 0.0078125, %v2417_v33  ;;  %v2577_v6 = vmul.f32 %v5927_v34, %v2541_v54 }
 0x710   : > { %v3939_v48 = vpop.eup %3938  ;;  %v2485_v1 = vadd.f32 1e-05, %v2453_v4  ;;  %3534 = vmatprep.mubr.f32.mxu1 %v2610_v28  ;;  %v2576_v3 = vmul.f32 %v5927_v34, %v2540_v29 }
 0x711   : > { %v3941_v0 = vpop.eup %3940  ;;  %v2484_v36 = vadd.f32 1e-05, %v2452_v8  ;;  %v2423_v40 = vpop.xlane.xlu1 %2422  ;;  %3535 = vmatmul.mubr.f32.gmra.mrb[50].mxu1 %v2611_v49  ;;  %v2543_v37 = vmul.f32 %v3939_v48, %v5876_v13  ;;  %v2613_v19 = vadd.f32 %v5933_v50, %v2577_v6 }
 0x712   : > { %3950 = vrsqrt.f32 %v2485_v1  ;;  %v2455_v52 = vmul.f32 0.0078125, %v2423_v40  ;;  %v2421_v26 = vpop.xlane.xlu0 %2420  ;;  %v2612_v51 = vadd.f32 %v5933_v50, %v2576_v3  ;;  %v2542_v11 = vmul.f32 %v3941_v0, %v5879_v32 }
 0x713   : > { %3952 = vrsqrt.f32 %v2484_v36  ;;  %v2454_v20 = vmul.f32 0.0078125, %v2421_v26  ;;  %v2579_v46 = vmul.f32 %v5927_v34, %v2543_v37 }
 0x714   : > { %v3943_v45 = vpop.eup %3942  ;;  %v2487_v53 = vadd.f32 1e-05, %v2455_v52  ;;  %3537 = vmatprep.mubr.f32.mxu1 %v2612_v51  ;;  %v2578_v61 = vmul.f32 %v5927_v34, %v2542_v11 }
 0x715   : > { %v3945_v18 = vpop.eup %3944  ;;  %v2486_v13 = vadd.f32 1e-05, %v2454_v20  ;;  %3538 = vmatmul.mubr.f32.gmra.mrb[52].mxu1 %v2613_v19  ;;  %v2545_v2 = vmul.f32 %v3943_v45, %v5886_v63  ;;  %v2615_v22 = vadd.f32 %v5933_v50, %v2579_v46 }
 0x716   : > { %3954 = vrsqrt.f32 %v2487_v53  ;;  %v2614_v58 = vadd.f32 %v5933_v50, %v2578_v61  ;;  %v2544_v32 = vmul.f32 %v3945_v18, %v5889_v60 }
 0x717   : > { %3956 = vrsqrt.f32 %v2486_v13  ;;  %v2581_v10 = vmul.f32 %v5927_v34, %v2545_v2 }
 0x718   : > { %v3947_v5 = vpop.eup %3946  ;;  %3540 = vmatprep.mubr.f32.mxu1 %v2614_v58  ;;  %v2580_v24 = vmul.f32 %v5927_v34, %v2544_v32 }
 0x719   : > { %v3949_v27 = vpop.eup %3948  ;;  %3541 = vmatmul.mubr.f32.gmra.mrb[54].mxu1 %v2615_v22  ;;  %v2547_v23 = vmul.f32 %v3947_v5, %v5896_v39  ;;  %v2617_v9 = vadd.f32 %v5933_v50, %v2581_v10 }
 0x71a   : > { %v2616_v63 = vadd.f32 %v5933_v50, %v2580_v24  ;;  %v2546_v59 = vmul.f32 %v3949_v27, %v5899_v57 }
 0x71b   : > { %v2583_v60 = vmul.f32 %v5927_v34, %v2547_v23 }
 0x71c   : > { %v3951_v41 = vpop.eup %3950  ;;  %3543 = vmatprep.mubr.f32.mxu1 %v2616_v63  ;;  %v2582_v14 = vmul.f32 %v5927_v34, %v2546_v59 }
 0x71d   : > { %v3953_v35 = vpop.eup %3952  ;;  %3544 = vmatmul.mubr.f32.gmra.mrb[56].mxu1 %v2617_v9  ;;  %v2549_v62 = vmul.f32 %v3951_v41, %v5906_v56  ;;  %v2619_v42 = vadd.f32 %v5933_v50, %v2583_v60 }
 0x71e   : > { %v2618_v47 = vadd.f32 %v5933_v50, %v2582_v14  ;;  %v2548_v39 = vmul.f32 %v3953_v35, %v5909_v31 }
 0x71f   : > { %v2585_v57 = vmul.f32 %v5927_v34, %v2549_v62 }
 0x720   : > { %v3955_v38 = vpop.eup %3954  ;;  %3546 = vmatprep.mubr.f32.mxu1 %v2618_v47  ;;  %v2584_v21 = vmul.f32 %v5927_v34, %v2548_v39 }
 0x721   : > { %v3957_v15 = vpop.eup %3956  ;;  %3547 = vmatmul.mubr.f32.gmra.mrb[58].mxu1 %v2619_v42  ;;  %v2551_v16 = vmul.f32 %v3955_v38, %v5916_v44  ;;  %v2621_v7 = vadd.f32 %v5933_v50, %v2585_v57  ;;  %v6032_v44 = vld [vmem:[%s6157_s4] ss:$0 sm:$0xff] }
 0x722   : > { %v2620_v25 = vadd.f32 %v5933_v50, %v2584_v21  ;;  %v2550_v56 = vmul.f32 %v3957_v15, %v5919_v17 }
 0x723   : > { %v2587_v31 = vmul.f32 %v5927_v34, %v2551_v16 }
 0x724   : > { %3549 = vmatprep.mubr.f32.mxu1 %v2620_v25  ;;  %v2586_v55 = vmul.f32 %v5927_v34, %v2550_v56 }
 0x725   : > { %3550 = vmatmul.mubr.f32.gmra.mrb[60].mxu1 %v2621_v7  ;;  %v2623_v43 = vadd.f32 %v5933_v50, %v2587_v31 }
 0x726   : > { %v2622_v12 = vadd.f32 %v5933_v50, %v2586_v55 }
 0x728   : > { %3552 = vmatprep.mubr.f32.mxu1 %v2622_v12 }
 0x729   : > { %3553 = vmatmul.mubr.f32.gmra.mrb[62].mxu1 %v2623_v43 }
 0x7c0   : > { %v3509_v17 = vpop.f32.mrb[32].mxu1 }
 0x7c1   : > { %v2719_v30 = vadd.f32 %v3509_v17, %v6032_v44  ;;  %v2713_v54 = vpop.f32.mrb[33].mxu1 }
 0x7c2   : > { %v2714_v4 = vadd.f32 %v6032_v44, %v2713_v54 }
 0x7c3   : > { %2873 = vst [vmem:[%s6038_s14 + $0x8] sm:$0xff] %v2719_v30 }
 0x7c4   : > { %2872 = vst [vmem:[%s6038_s14] sm:$0xff] %v2714_v4  ;;  %v3512_v34 = vpop.f32.mrb[34].mxu1 }
 0x7c5   : > { %v2729_v50 = vadd.f32 %v3512_v34, %v6032_v44  ;;  %v2723_v33 = vpop.f32.mrb[35].mxu1 }
 0x7c6   : > { %v2724_v28 = vadd.f32 %v6032_v44, %v2723_v33 }
 0x7c7   : > { %2875 = vst [vmem:[%s6038_s14 + $0x18] sm:$0xff] %v2729_v50 }
 0x7c8   : > { %2874 = vst [vmem:[%s6038_s14 + $0x10] sm:$0xff] %v2724_v28  ;;  %v3515_v29 = vpop.f32.mrb[36].mxu1 }
 0x7c9   : > { %v2739_v8 = vadd.f32 %v3515_v29, %v6032_v44  ;;  %v2733_v49 = vpop.f32.mrb[37].mxu1 }
 0x7ca   : > { %v2734_v6 = vadd.f32 %v6032_v44, %v2733_v49 }
 0x7cb   : > { %2877 = vst [vmem:[%s6038_s14 + $0x28] sm:$0xff] %v2739_v8 }
 0x7cc   : > { %2876 = vst [vmem:[%s6038_s14 + $0x20] sm:$0xff] %v2734_v6  ;;  %v3518_v48 = vpop.f32.mrb[38].mxu1 }
 0x7cd   : > { %v2749_v1 = vadd.f32 %v3518_v48, %v6032_v44  ;;  %v2743_v3 = vpop.f32.mrb[39].mxu1 }
 0x7ce   : > { %v2744_v0 = vadd.f32 %v6032_v44, %v2743_v3 }
 0x7cf   : > { %2879 = vst [vmem:[%s6038_s14 + $0x38] sm:$0xff] %v2749_v1 }
 0x7d0   : > { %2878 = vst [vmem:[%s6038_s14 + $0x30] sm:$0xff] %v2744_v0  ;;  %v3521_v36 = vpop.f32.mrb[40].mxu1 }
 0x7d1   : > { %v2759_v40 = vadd.f32 %v3521_v36, %v6032_v44  ;;  %v2753_v37 = vpop.f32.mrb[41].mxu1 }
 0x7d2   : > { %v2754_v52 = vadd.f32 %v6032_v44, %v2753_v37 }
 0x7d3   : > { %2881 = vst [vmem:[%s6038_s14 + $0x48] sm:$0xff] %v2759_v40 }
 0x7d4   : > { %2880 = vst [vmem:[%s6038_s14 + $0x40] sm:$0xff] %v2754_v52  ;;  %v3524_v26 = vpop.f32.mrb[42].mxu1 }
 0x7d5   : > { %v2769_v51 = vadd.f32 %v3524_v26, %v6032_v44  ;;  %v2763_v11 = vpop.f32.mrb[43].mxu1 }
 0x7d6   : > { %v2764_v20 = vadd.f32 %v6032_v44, %v2763_v11 }
 0x7d7   : > { %2883 = vst [vmem:[%s6038_s14 + $0x58] sm:$0xff] %v2769_v51 }
 0x7d8   : > { %2882 = vst [vmem:[%s6038_s14 + $0x50] sm:$0xff] %v2764_v20  ;;  %v3527_v19 = vpop.f32.mrb[44].mxu1 }
 0x7d9   : > { %v2779_v46 = vadd.f32 %v3527_v19, %v6032_v44  ;;  %v2773_v45 = vpop.f32.mrb[45].mxu1 }
 0x7da   : > { %v2774_v53 = vadd.f32 %v6032_v44, %v2773_v45 }
 0x7db   : > { %2885 = vst [vmem:[%s6038_s14 + $0x68] sm:$0xff] %v2779_v46 }
 0x7dc   : > { %2884 = vst [vmem:[%s6038_s14 + $0x60] sm:$0xff] %v2774_v53  ;;  %v3530_v61 = vpop.f32.mrb[46].mxu1 }
 0x7dd   : > { %v2789_v18 = vadd.f32 %v3530_v61, %v6032_v44  ;;  %v2783_v13 = vpop.f32.mrb[47].mxu1 }
 0x7de   : > { %v2784_v2 = vadd.f32 %v6032_v44, %v2783_v13 }
 0x7df   : > { %2887 = vst [vmem:[%s6038_s14 + $0x78] sm:$0xff] %v2789_v18 }
 0x7e0   : > { %2886 = vst [vmem:[%s6038_s14 + $0x70] sm:$0xff] %v2784_v2  ;;  %v3533_v58 = vpop.f32.mrb[48].mxu1 }
 0x7e1   : > { %v2799_v32 = vadd.f32 %v3533_v58, %v6032_v44  ;;  %v2793_v22 = vpop.f32.mrb[49].mxu1 }
 0x7e2   : > { %v2794_v10 = vadd.f32 %v6032_v44, %v2793_v22 }
 0x7e3   : > { %2889 = vst [vmem:[%s6038_s14 + $0x88] sm:$0xff] %v2799_v32 }
 0x7e4   : > { %2888 = vst [vmem:[%s6038_s14 + $0x80] sm:$0xff] %v2794_v10  ;;  %v3536_v5 = vpop.f32.mrb[50].mxu1 }
 0x7e5   : > { %v2809_v24 = vadd.f32 %v3536_v5, %v6032_v44  ;;  %v2803_v27 = vpop.f32.mrb[51].mxu1 }
 0x7e6   : > { %v2804_v23 = vadd.f32 %v6032_v44, %v2803_v27 }
 0x7e7   : > { %2891 = vst [vmem:[%s6038_s14 + $0x98] sm:$0xff] %v2809_v24 }
 0x7e8   : > { %2890 = vst [vmem:[%s6038_s14 + $0x90] sm:$0xff] %v2804_v23  ;;  %v3539_v63 = vpop.f32.mrb[52].mxu1 }
 0x7e9   : > { %v2819_v59 = vadd.f32 %v3539_v63, %v6032_v44  ;;  %v2813_v9 = vpop.f32.mrb[53].mxu1 }
 0x7ea   : > { %v2814_v60 = vadd.f32 %v6032_v44, %v2813_v9 }
 0x7eb   : > { %2893 = vst [vmem:[%s6038_s14 + $0xa8] sm:$0xff] %v2819_v59 }
 0x7ec   : > { %2892 = vst [vmem:[%s6038_s14 + $0xa0] sm:$0xff] %v2814_v60  ;;  %v3542_v41 = vpop.f32.mrb[54].mxu1 }
 0x7ed   : > { %v2829_v14 = vadd.f32 %v3542_v41, %v6032_v44  ;;  %v2823_v35 = vpop.f32.mrb[55].mxu1 }
 0x7ee   : > { %v2824_v62 = vadd.f32 %v6032_v44, %v2823_v35 }
 0x7ef   : > { %2895 = vst [vmem:[%s6038_s14 + $0xb8] sm:$0xff] %v2829_v14 }
 0x7f0   : > { %2894 = vst [vmem:[%s6038_s14 + $0xb0] sm:$0xff] %v2824_v62  ;;  %v3545_v47 = vpop.f32.mrb[56].mxu1 }
 0x7f1   : > { %v2839_v39 = vadd.f32 %v3545_v47, %v6032_v44  ;;  %v2833_v42 = vpop.f32.mrb[57].mxu1 }
 0x7f2   : > { %v2834_v57 = vadd.f32 %v6032_v44, %v2833_v42 }
 0x7f3   : > { %2897 = vst [vmem:[%s6038_s14 + $0xc8] sm:$0xff] %v2839_v39 }
 0x7f4   : > { %2896 = vst [vmem:[%s6038_s14 + $0xc0] sm:$0xff] %v2834_v57  ;;  %v3548_v38 = vpop.f32.mrb[58].mxu1 }
 0x7f5   : > { %v2849_v21 = vadd.f32 %v3548_v38, %v6032_v44  ;;  %v2843_v15 = vpop.f32.mrb[59].mxu1 }
 0x7f6   : > { %v2844_v16 = vadd.f32 %v6032_v44, %v2843_v15 }
 0x7f7   : > { %2899 = vst [vmem:[%s6038_s14 + $0xd8] sm:$0xff] %v2849_v21 }
 0x7f8   : > { %2898 = vst [vmem:[%s6038_s14 + $0xd0] sm:$0xff] %v2844_v16  ;;  %v3551_v25 = vpop.f32.mrb[60].mxu1 }
 0x7f9   : > { %v2859_v56 = vadd.f32 %v3551_v25, %v6032_v44  ;;  %v2853_v7 = vpop.f32.mrb[61].mxu1 }
 0x7fa   : > { %v2854_v31 = vadd.f32 %v6032_v44, %v2853_v7 }
 0x7fb   : > { %2901 = vst [vmem:[%s6038_s14 + $0xe8] sm:$0xff] %v2859_v56 }
 0x7fc   : > { %2900 = vst [vmem:[%s6038_s14 + $0xe0] sm:$0xff] %v2854_v31  ;;  %v3554_v55 = vpop.f32.mrb[62].mxu1 }
 0x7fd   : > { %v2869_v12 = vadd.f32 %v3554_v55, %v6032_v44  ;;  %v2863_v43 = vpop.f32.mrb[63].mxu1 }
 0x7fe   : > { %v2864_v17 = vadd.f32 %v6032_v44, %v2863_v43 }
 0x7ff   : > { %2903 = vst [vmem:[%s6038_s14 + $0xf8] sm:$0xff] %v2869_v12 }
 0x800   : > { %2902 = vst [vmem:[%s6038_s14 + $0xf0] sm:$0xff] %v2864_v17 }
 0x801   : > { %4085 = shalt.err (!%p4082_p4)
}
 0x802   : > { %s4086_s10 = scalar_lea.hbm %s6104_s13, 4096  ;;  %s4090_s24 = scalar_lea.hbm %s6158_s5, 8192 }
 0x803   : > { %p4087_p9 = scmp.ne.s32.totalorder %s6104_s13, %s4086_s10  ;;  %p4091_p8 = scmp.lt.u32.totalorder %s6104_s13, %s6158_s5 }
 0x804   : > { %p4092_p13 = scmp.lt.u32.totalorder %s4090_s24, %s4086_s10  ;;  %p4094_p10 = scmp.lt.u32.totalorder %s4086_s10, %s6104_s13 }
 0x805   : > { %p4088_p0 = pnand %p4087_p9, %p4337_p5 }
 0x806   : > { %p4093_p6 = por %p4092_p13, %p4091_p8 }
 0x807   : > { %p4089_p11 = pneg %p4088_p0 }
 0x808   : > { %p4095_p3 = por %p4094_p10, %p4093_p6 }
 0x80a   : > { %p4096_p7 = pnand %p4095_p3, %p4089_p11 }
 0x80c   : > { %4099 = shalt.err (!%p4096_p7)
}
 0x80d   : > { %s4157_s15 = smov 128   ;;  %s4158_s6 = smov 8  }
 0x80e   : > { %3697 = dma.vmem_to_hbm [thread:$0]  (%p4337_p5), %s6106_s7, 4096, %s6104_s13, %s2905_s22, %s4157_s15, %s4157_s15, %s4158_s6  }
 0x80f PF: > { %s2933_s17 = sand.u32 1, %s4134_s18   ;;  %p6182_p12 = scmp.ne.s32.totalorder %s6167_s25, 0 }
 0x810   : > { %p6183_p1 = scmp.ge.s32.totalorder %s4146_s21, 2  ;;  %s2934_s30 = scalar_lea.sflag [#allocation4], %s2933_s17 }
 0x812   : > { %p3714_p2 = pnand %p6183_p1, %p6182_p12 }
 0x814   : > { %4129 = dma.done.wait (!%p3714_p2), %s2934_s30, 4096  }
 0x815   : > { %4131 = vsyncadd (!%p3714_p2), %s2934_s30, 4294963200  ;;  %p20_p4 = scmp.ge.s32.totalorder %s4302_s8, 4   ;;  %s6184_s18 = smov %s4138_s19 }
 0x816   : > { %s6185_s19 = smov %s4142_s20  ;;  %s6186_s20 = smov %s4333_s23 }
 0x817   : > { %s6187_s21 = smov %s4302_s8  ;;  %22 = sbr.rel (!%p20_p4) target bundleno = 7 (0x7), region = 101 }
 0x81e   :  { %2939 = vsyncpa [#allocation3], 1 }
 0x81f   :  { %2941 = vsyncpa [#allocation3 + $0x1], 1 }
 0x820   :  { %2942 = vsyncpa [#allocation6], 1 }
 0x821   :  { %2943 = vsyncpa [#allocation9], 1 }
 0x822   :  { %2944 = vsyncpa [#allocation4], 1 }
 0x823   :  { %2946 = vsyncpa [#allocation4 + $0x1], 1 }

</bundles_post_ra>
